<compile_context>
chip_gen: v5e
topology: v5e:2x2
jax: 0.10.0
libtpu: 0.0.40
codegen_flags: <defaults>
</compile_context>

<pallas_src>
import functools
import math

import jax
import jax.numpy as jnp
from jax.experimental import pallas as pl
from jax.experimental.pallas import tpu as pltpu

# ---------------------------------------------------------------------------
# Small synthetic BERT config (BERT-base semantics, toy sizes, lane-dense).
# ---------------------------------------------------------------------------
VOCAB = 128
HIDDEN = 128                 # multiple of 128 -> lane-dense activations
LAYERS = 2
HEADS = 2
HEAD_DIM = HIDDEN // HEADS   # 64 = real per-head width
DP = 128                     # per-head width padded to a full lane tile
INTER = 4 * HIDDEN           # 512
MAX_POS = 64
TYPE_VOCAB = 2
NUM_LABELS = 2
LN_EPS = 1e-12

_VMEM = pl.BlockSpec(memory_space=pltpu.MemorySpace.VMEM)


def _layernorm(x, g, b, eps):
    mean = jnp.mean(x, axis=-1, keepdims=True)
    var = jnp.mean((x - mean) ** 2, axis=-1, keepdims=True)
    return (x - mean) * jax.lax.rsqrt(var + eps) * g + b


# ---------------------------------------------------------------------------
# Kernel 1: embedding LayerNorm (no residual)
# ---------------------------------------------------------------------------
def _emb_ln_kernel(x_ref, g_ref, b_ref, o_ref, *, eps):
    o_ref[...] = _layernorm(x_ref[...], g_ref[...], b_ref[...], eps)


def emb_layernorm(x, g, b):
    return pl.pallas_call(
        functools.partial(_emb_ln_kernel, eps=LN_EPS),
        out_shape=jax.ShapeDtypeStruct(x.shape, jnp.float32),
        in_specs=[_VMEM, _VMEM, _VMEM],
        out_specs=_VMEM,
    )(x, g, b)


# ---------------------------------------------------------------------------
# Kernel 2: one full transformer encoder layer, fully fused
# ---------------------------------------------------------------------------
def _bert_layer_kernel(x_ref, bias_ref,
                       wqkv_ref, bqkv_ref, wo_ref, bo_ref,
                       ln1_g_ref, ln1_b_ref,
                       w1_ref, b1_ref, w2_ref, b2_ref,
                       ln2_g_ref, ln2_b_ref,
                       o_ref, qkv_ref, ctx_ref,
                       *, batch, seq, heads, dp, scale, eps):
    x = x_ref[...]                                              # (B*S, H)

    # Fused QKV projection. Column layout is per-head, lane-padded:
    # [q_h0|k_h0|v_h0|q_h1|k_h1|v_h1], each block DP=128 wide (top DP-HEAD_DIM
    # columns are zero), so every slice below is 128-lane aligned.
    qkv_ref[...] = (
        jnp.dot(x, wqkv_ref[...], preferred_element_type=jnp.float32) + bqkv_ref[...]
    )

    # Multi-head self-attention: static (batch, head) loops, fully unrolled.
    for b in range(batch):
        r0 = b * seq
        bias = bias_ref[b:b + 1, :]                             # (1, S) additive mask
        for h in range(heads):
            c0 = 3 * h * dp
            q = qkv_ref[r0:r0 + seq, c0:c0 + dp]                # (S, DP)
            k = qkv_ref[r0:r0 + seq, c0 + dp:c0 + 2 * dp]
            v = qkv_ref[r0:r0 + seq, c0 + 2 * dp:c0 + 3 * dp]
            s = jnp.einsum("qd,kd->qk", q, k,
                           preferred_element_type=jnp.float32)  # (S, S)
            s = s * scale + bias
            s = s - jnp.max(s, axis=-1, keepdims=True)
            p = jnp.exp(s)
            p = p * pl.reciprocal(jnp.sum(p, axis=-1, keepdims=True), approx=True)
            ctx_ref[r0:r0 + seq, h * dp:(h + 1) * dp] = jnp.dot(
                p, v, preferred_element_type=jnp.float32)

    # Output projection + residual + LayerNorm (padded ctx rows of wo are zero,
    # so this equals concat_heads(ctx) @ Wo exactly).
    attn = jnp.dot(ctx_ref[...], wo_ref[...],
                   preferred_element_type=jnp.float32) + bo_ref[...]
    x1 = _layernorm(attn + x, ln1_g_ref[...], ln1_b_ref[...], eps)

    # Feed-forward (exact erf GELU, as in BERT) + residual + LayerNorm.
    h1 = jnp.dot(x1, w1_ref[...], preferred_element_type=jnp.float32) + b1_ref[...]
    h1 = 0.5 * h1 * (1.0 + jax.lax.erf(h1 * 0.7071067811865476))
    ffn = jnp.dot(h1, w2_ref[...], preferred_element_type=jnp.float32) + b2_ref[...]
    o_ref[...] = _layernorm(ffn + x1, ln2_g_ref[...], ln2_b_ref[...], eps)


def bert_layer(x, mask_bias, lp, *, batch, seq):
    rows, hid = x.shape
    kernel = functools.partial(
        _bert_layer_kernel, batch=batch, seq=seq, heads=HEADS, dp=DP,
        scale=1.0 / math.sqrt(HEAD_DIM), eps=LN_EPS)
    return pl.pallas_call(
        kernel,
        out_shape=jax.ShapeDtypeStruct((rows, hid), jnp.float32),
        in_specs=[_VMEM] * 14,
        out_specs=_VMEM,
        scratch_shapes=[
            pltpu.VMEM((rows, 3 * HEADS * DP), jnp.float32),    # padded QKV
            pltpu.VMEM((rows, HEADS * DP), jnp.float32),        # padded context
        ],
    )(x, mask_bias,
      lp["wqkv"], lp["bqkv"], lp["wo"], lp["bo"],
      lp["ln1_g"], lp["ln1_b"],
      lp["w1"], lp["b1"], lp["w2"], lp["b2"],
      lp["ln2_g"], lp["ln2_b"])


# ---------------------------------------------------------------------------
# Kernel 3: pooler (CLS dense+tanh) + classifier, fused
# ---------------------------------------------------------------------------
def _head_kernel(cls_ref, pw_ref, pb_ref, cw_ref, cb_ref, o_ref):
    pooled = jnp.tanh(
        jnp.dot(cls_ref[...], pw_ref[...], preferred_element_type=jnp.float32)
        + pb_ref[...])
    o_ref[...] = jnp.dot(pooled, cw_ref[...],
                         preferred_element_type=jnp.float32) + cb_ref[...]


def pooler_classifier(cls, pw, pb, cw, cb):
    B = cls.shape[0]
    return pl.pallas_call(
        _head_kernel,
        out_shape=jax.ShapeDtypeStruct((B, NUM_LABELS), jnp.float32),
        in_specs=[_VMEM] * 5,
        out_specs=_VMEM,
    )(cls, pw, pb, cw, cb)


# ---------------------------------------------------------------------------
# Parameters (deterministic synthetic init, packed into the fused layout)
# ---------------------------------------------------------------------------
def _pad_head_cols(w, b, h):
    """Extract head h's columns of a (H, H) projection; pad HEAD_DIM -> DP."""
    wc = w[:, h * HEAD_DIM:(h + 1) * HEAD_DIM]
    bc = b[h * HEAD_DIM:(h + 1) * HEAD_DIM]
    wp = jnp.zeros((w.shape[0], DP), jnp.float32).at[:, :HEAD_DIM].set(wc)
    bp = jnp.zeros((DP,), jnp.float32).at[:HEAD_DIM].set(bc)
    return wp, bp


def pack_layer(wq, bq, wk, bk, wv, bv, wo, bo,
               ln1_g, ln1_b, w1, b1, w2, b2, ln2_g, ln2_b):
    """Pack standard BERT layer weights into the fused, lane-padded layout."""
    wcols, bcols, worows = [], [], []
    for h in range(HEADS):
        for w, b in ((wq, bq), (wk, bk), (wv, bv)):
            wp, bp = _pad_head_cols(w, b, h)
            wcols.append(wp)
            bcols.append(bp)
        wop = jnp.zeros((DP, HIDDEN), jnp.float32).at[:HEAD_DIM, :].set(
            wo[h * HEAD_DIM:(h + 1) * HEAD_DIM, :])
        worows.append(wop)
    return {
        "wqkv": jnp.concatenate(wcols, axis=1),           # (H, 3*HEADS*DP)
        "bqkv": jnp.concatenate(bcols).reshape(1, -1),    # (1, 3*HEADS*DP)
        "wo": jnp.concatenate(worows, axis=0),            # (HEADS*DP, H)
        "bo": bo.reshape(1, -1),
        "ln1_g": ln1_g.reshape(1, -1), "ln1_b": ln1_b.reshape(1, -1),
        "w1": w1, "b1": b1.reshape(1, -1),
        "w2": w2, "b2": b2.reshape(1, -1),
        "ln2_g": ln2_g.reshape(1, -1), "ln2_b": ln2_b.reshape(1, -1),
    }


def init_params(key):
    def nrm(k, shape):
        return jax.random.normal(k, shape, jnp.float32) * 0.02

    keys = iter(jax.random.split(key, 8 * LAYERS + 16))
    p = {
        "word_emb": nrm(next(keys), (VOCAB, HIDDEN)),
        "pos_emb": nrm(next(keys), (MAX_POS, HIDDEN)),
        "type_emb": nrm(next(keys), (TYPE_VOCAB, HIDDEN)),
        "emb_ln_g": jnp.ones((1, HIDDEN), jnp.float32),
        "emb_ln_b": jnp.zeros((1, HIDDEN), jnp.float32),
        "layers": [],
    }
    for _ in range(LAYERS):
        wq = nrm(next(keys), (HIDDEN, HIDDEN)); bq = jnp.zeros((HIDDEN,), jnp.float32)
        wk = nrm(next(keys), (HIDDEN, HIDDEN)); bk = jnp.zeros((HIDDEN,), jnp.float32)
        wv = nrm(next(keys), (HIDDEN, HIDDEN)); bv = jnp.zeros((HIDDEN,), jnp.float32)
        wo = nrm(next(keys), (HIDDEN, HIDDEN)); bo = jnp.zeros((HIDDEN,), jnp.float32)
        w1 = nrm(next(keys), (HIDDEN, INTER)); b1 = jnp.zeros((INTER,), jnp.float32)
        w2 = nrm(next(keys), (INTER, HIDDEN)); b2 = jnp.zeros((HIDDEN,), jnp.float32)
        ln1_g = jnp.ones((HIDDEN,), jnp.float32); ln1_b = jnp.zeros((HIDDEN,), jnp.float32)
        ln2_g = jnp.ones((HIDDEN,), jnp.float32); ln2_b = jnp.zeros((HIDDEN,), jnp.float32)
        p["layers"].append(pack_layer(wq, bq, wk, bk, wv, bv, wo, bo,
                                      ln1_g, ln1_b, w1, b1, w2, b2, ln2_g, ln2_b))
    p["pool_w"] = nrm(next(keys), (HIDDEN, HIDDEN))
    p["pool_b"] = jnp.zeros((1, HIDDEN), jnp.float32)
    p["cls_w"] = nrm(next(keys), (HIDDEN, NUM_LABELS))
    p["cls_b"] = jnp.zeros((1, NUM_LABELS), jnp.float32)
    return p


# ---------------------------------------------------------------------------
# Forward pass (== FrustrationBert.forward, returning logits)
# ---------------------------------------------------------------------------
@jax.jit
def frustration_bert_forward(params, input_ids, attention_mask):
    # TODO(synk): BertTokenizer (strings -> token ids) is pure string processing
    # with no Pallas equivalent; the kernel consumes input_ids / attention_mask.
    B, S = input_ids.shape
    H = HIDDEN

    # Embedding gathers are glue (XLA); LayerNorm runs in a Pallas kernel.
    emb = (
        params["word_emb"][input_ids]
        + params["pos_emb"][jnp.arange(S)][None, :, :]
        + params["type_emb"][jnp.zeros((B, S), jnp.int32)]
    )
    x = emb_layernorm(emb.reshape(B * S, H), params["emb_ln_g"], params["emb_ln_b"])

    # Additive attention-mask bias, computed once for all layers.  (-1e9 has the
    # same masking semantics as HF's finfo.min after max-subtraction.)
    mask_bias = (1.0 - attention_mask.astype(jnp.float32)) * (-1e9)   # (B, S)

    # Transformer encoder: one fused Pallas kernel per layer.
    for lp in params["layers"]:
        x = bert_layer(x, mask_bias, lp, batch=B, seq=S)   # dropout = identity (eval)

    # Pooler (CLS token) + classifier head, fused into one tiny kernel.
    cls = x.reshape(B, S, H)[:, 0, :]
    return pooler_classifier(cls, params["pool_w"], params["pool_b"],
                             params["cls_w"], params["cls_b"])


# ---------------------------------------------------------------------------
if __name__ == "__main__":
    key = jax.random.PRNGKey(0)
    pkey, ikey = jax.random.split(key)
    params = init_params(pkey)

    B, S = 2, 8
    input_ids = jax.random.randint(ikey, (B, S), 0, VOCAB, dtype=jnp.int32)
    attention_mask = jnp.array(
        [[1, 1, 1, 1, 1, 1, 1, 1],
         [1, 1, 1, 1, 1, 1, 0, 0]], dtype=jnp.int32)

    logits = frustration_bert_forward(params, input_ids, attention_mask)
    jax.block_until_ready(logits)
    assert logits.shape == (B, NUM_LABELS)
    print("KERNEL_OK")
</pallas_src>

<mosaic_0001>
module attributes {stable_mosaic.version = 11 : i64} {
  func.func @_emb_ln_kernel(%arg0: memref<16x128xf32, #tpu.memory_space<vmem>>, %arg1: memref<1x128xf32, #tpu.memory_space<vmem>>, %arg2: memref<1x128xf32, #tpu.memory_space<vmem>>, %arg3: memref<16x128xf32, #tpu.memory_space<vmem>>) attributes {dimension_semantics = [], scalar_prefetch = 0 : i64, scratch_operands = 0 : i64, tpu.core_type = #tpu.core_type<tc>} {
    %c0 = arith.constant 0 : index
    %c0_0 = arith.constant 0 : index
    %0 = vector.load %arg0[%c0, %c0_0] : memref<16x128xf32, #tpu.memory_space<vmem>>, vector<16x128xf32>
    %c0_1 = arith.constant 0 : index
    %c0_2 = arith.constant 0 : index
    %1 = vector.load %arg1[%c0_1, %c0_2] : memref<1x128xf32, #tpu.memory_space<vmem>>, vector<1x128xf32>
    %c0_3 = arith.constant 0 : index
    %c0_4 = arith.constant 0 : index
    %2 = vector.load %arg2[%c0_3, %c0_4] : memref<1x128xf32, #tpu.memory_space<vmem>>, vector<1x128xf32>
    %cst = arith.constant dense<0.000000e+00> : vector<16xf32>
    %3 = vector.multi_reduction <add>, %0, %cst [1] : vector<16x128xf32> to vector<16xf32>
    %4 = vector.shape_cast %3 : vector<16xf32> to vector<16x1xf32>
    %cst_5 = arith.constant 1.280000e+02 : f32
    %5 = vector.broadcast %cst_5 : f32 to vector<16x1xf32>
    %6 = arith.divf %4, %5 : vector<16x1xf32>
    %7 = vector.broadcast %6 : vector<16x1xf32> to vector<16x128xf32>
    %8 = arith.subf %0, %7 : vector<16x128xf32>
    %9 = arith.mulf %8, %8 : vector<16x128xf32>
    %cst_6 = arith.constant dense<0.000000e+00> : vector<16xf32>
    %10 = vector.multi_reduction <add>, %9, %cst_6 [1] : vector<16x128xf32> to vector<16xf32>
    %11 = vector.shape_cast %10 : vector<16xf32> to vector<16x1xf32>
    %cst_7 = arith.constant 1.280000e+02 : f32
    %12 = vector.broadcast %cst_7 : f32 to vector<16x1xf32>
    %13 = arith.divf %11, %12 : vector<16x1xf32>
    %14 = vector.broadcast %6 : vector<16x1xf32> to vector<16x128xf32>
    %15 = arith.subf %0, %14 : vector<16x128xf32>
    %cst_8 = arith.constant 9.99999996E-13 : f32
    %16 = vector.broadcast %cst_8 : f32 to vector<16x1xf32>
    %17 = arith.addf %13, %16 : vector<16x1xf32>
    %18 = math.rsqrt %17 : vector<16x1xf32>
    %19 = vector.broadcast %18 : vector<16x1xf32> to vector<16x128xf32>
    %20 = arith.mulf %15, %19 : vector<16x128xf32>
    %21 = vector.broadcast %1 : vector<1x128xf32> to vector<16x128xf32>
    %22 = arith.mulf %20, %21 : vector<16x128xf32>
    %23 = vector.broadcast %2 : vector<1x128xf32> to vector<16x128xf32>
    %24 = arith.addf %22, %23 : vector<16x128xf32>
    %c0_9 = arith.constant 0 : index
    %c0_10 = arith.constant 0 : index
    %25 = vector.load %arg3[%c0_9, %c0_10] : memref<16x128xf32, #tpu.memory_space<vmem>>, vector<16x128xf32>
    tpu.vector_store %arg3[%c0_9, %c0_10], %24 {strides = array<i32>} : memref<16x128xf32, #tpu.memory_space<vmem>>, vector<16x128xf32>,
    return
  }
}

module attributes {stable_mosaic.version = 11 : i64} {
  func.func @_bert_layer_kernel(%arg0: memref<16x128xf32, #tpu.memory_space<vmem>>, %arg1: memref<2x8xf32, #tpu.memory_space<vmem>>, %arg2: memref<128x768xf32, #tpu.memory_space<vmem>>, %arg3: memref<1x768xf32, #tpu.memory_space<vmem>>, %arg4: memref<256x128xf32, #tpu.memory_space<vmem>>, %arg5: memref<1x128xf32, #tpu.memory_space<vmem>>, %arg6: memref<1x128xf32, #tpu.memory_space<vmem>>, %arg7: memref<1x128xf32, #tpu.memory_space<vmem>>, %arg8: memref<128x512xf32, #tpu.memory_space<vmem>>, %arg9: memref<1x512xf32, #tpu.memory_space<vmem>>, %arg10: memref<512x128xf32, #tpu.memory_space<vmem>>, %arg11: memref<1x128xf32, #tpu.memory_space<vmem>>, %arg12: memref<1x128xf32, #tpu.memory_space<vmem>>, %arg13: memref<1x128xf32, #tpu.memory_space<vmem>>, %arg14: memref<16x128xf32, #tpu.memory_space<vmem>>, %arg15: memref<16x768xf32, #tpu.memory_space<vmem>>, %arg16: memref<16x256xf32, #tpu.memory_space<vmem>>) attributes {dimension_semantics = [], scalar_prefetch = 0 : i64, scratch_operands = 2 : i64, tpu.core_type = #tpu.core_type<tc>} {
    %c0 = arith.constant 0 : index
    %c0_0 = arith.constant 0 : index
    %0 = vector.load %arg0[%c0, %c0_0] : memref<16x128xf32, #tpu.memory_space<vmem>>, vector<16x128xf32>
    %c0_1 = arith.constant 0 : index
    %c0_2 = arith.constant 0 : index
    %1 = vector.load %arg2[%c0_1, %c0_2] : memref<128x768xf32, #tpu.memory_space<vmem>>, vector<128x768xf32>
    %cst = arith.constant dense<0.000000e+00> : vector<16x768xf32>
    %2 = tpu.matmul %0, %1, %cst {dimension_numbers = #tpu.dot_dimension_numbers<[1], [0], [0], [1], [0, 0, 1, 1], [], []>} : vector<16x128xf32>, vector<128x768xf32>, vector<16x768xf32> -> vector<16x768xf32>
    %c0_3 = arith.constant 0 : index
    %c0_4 = arith.constant 0 : index
    %3 = vector.load %arg3[%c0_3, %c0_4] : memref<1x768xf32, #tpu.memory_space<vmem>>, vector<1x768xf32>
    %4 = vector.broadcast %3 : vector<1x768xf32> to vector<16x768xf32>
    %5 = arith.addf %2, %4 : vector<16x768xf32>
    %c0_5 = arith.constant 0 : index
    %c0_6 = arith.constant 0 : index
    %6 = vector.load %arg15[%c0_5, %c0_6] : memref<16x768xf32, #tpu.memory_space<vmem>>, vector<16x768xf32>
    tpu.vector_store %arg15[%c0_5, %c0_6], %5 {strides = array<i32>} : memref<16x768xf32, #tpu.memory_space<vmem>>, vector<16x768xf32>,
    %c0_7 = arith.constant 0 : index
    %c0_8 = arith.constant 0 : index
    %7 = vector.load %arg1[%c0_7, %c0_8] : memref<2x8xf32, #tpu.memory_space<vmem>>, vector<1x8xf32>
    %c0_9 = arith.constant 0 : index
    %c0_10 = arith.constant 0 : index
    %8 = vector.load %arg15[%c0_9, %c0_10] : memref<16x768xf32, #tpu.memory_space<vmem>>, vector<8x128xf32>
    %c0_11 = arith.constant 0 : index
    %c128 = arith.constant 128 : index
    %9 = vector.load %arg15[%c0_11, %c128] : memref<16x768xf32, #tpu.memory_space<vmem>>, vector<8x128xf32>
    %c0_12 = arith.constant 0 : index
    %c256 = arith.constant 256 : index
    %10 = vector.load %arg15[%c0_12, %c256] : memref<16x768xf32, #tpu.memory_space<vmem>>, vector<8x128xf32>
    "tpu.trace_start"() <{level = 10 : i32, message = "qd,kd->qk"}> : () -> ()
    %cst_13 = arith.constant dense<0.000000e+00> : vector<8x8xf32>
    %11 = tpu.matmul %8, %9, %cst_13 {dimension_numbers = #tpu.dot_dimension_numbers<[1], [1], [0], [0], [0, 0, 1, 0], [], []>} : vector<8x128xf32>, vector<8x128xf32>, vector<8x8xf32> -> vector<8x8xf32>
    "tpu.trace_stop"() : () -> ()
    %cst_14 = arith.constant 1.250000e-01 : f32
    %12 = vector.broadcast %cst_14 : f32 to vector<8x8xf32>
    %13 = arith.mulf %11, %12 : vector<8x8xf32>
    %14 = vector.broadcast %7 : vector<1x8xf32> to vector<8x8xf32>
    %15 = arith.addf %13, %14 : vector<8x8xf32>
    %cst_15 = arith.constant dense<0xFF800000> : vector<8xf32>
    %16 = vector.multi_reduction <maximumf>, %15, %cst_15 [1] : vector<8x8xf32> to vector<8xf32>
    %17 = vector.shape_cast %16 : vector<8xf32> to vector<8x1xf32>
    %18 = vector.broadcast %17 : vector<8x1xf32> to vector<8x8xf32>
    %19 = arith.subf %15, %18 : vector<8x8xf32>
    %20 = math.exp %19 : vector<8x8xf32>
    %cst_16 = arith.constant dense<0.000000e+00> : vector<8xf32>
    %21 = vector.multi_reduction <add>, %20, %cst_16 [1] : vector<8x8xf32> to vector<8xf32>
    %22 = vector.shape_cast %21 : vector<8xf32> to vector<8x1xf32>
    %23 = tpu.reciprocal %22 {approx = true} : vector<8x1xf32> -> vector<8x1xf32>
    %24 = vector.broadcast %23 : vector<8x1xf32> to vector<8x8xf32>
    %25 = arith.mulf %20, %24 : vector<8x8xf32>
    %cst_17 = arith.constant dense<0.000000e+00> : vector<8x128xf32>
    %26 = tpu.matmul %25, %10, %cst_17 {dimension_numbers = #tpu.dot_dimension_numbers<[1], [0], [0], [1], [0, 0, 1, 1], [], []>} : vector<8x8xf32>, vector<8x128xf32>, vector<8x128xf32> -> vector<8x128xf32>
    %c0_18 = arith.constant 0 : index
    %c0_19 = arith.constant 0 : index
    %27 = vector.load %arg16[%c0_18, %c0_19] : memref<16x256xf32, #tpu.memory_space<vmem>>, vector<8x128xf32>
    tpu.vector_store %arg16[%c0_18, %c0_19], %26 {strides = array<i32>} : memref<16x256xf32, #tpu.memory_space<vmem>>, vector<8x128xf32>,
    %c0_20 = arith.constant 0 : index
    %c384 = arith.constant 384 : index
    %28 = vector.load %arg15[%c0_20, %c384] : memref<16x768xf32, #tpu.memory_space<vmem>>, vector<8x128xf32>
    %c0_21 = arith.constant 0 : index
    %c512 = arith.constant 512 : index
    %29 = vector.load %arg15[%c0_21, %c512] : memref<16x768xf32, #tpu.memory_space<vmem>>, vector<8x128xf32>
    %c0_22 = arith.constant 0 : index
    %c640 = arith.constant 640 : index
    %30 = vector.load %arg15[%c0_22, %c640] : memref<16x768xf32, #tpu.memory_space<vmem>>, vector<8x128xf32>
    "tpu.trace_start"() <{level = 10 : i32, message = "qd,kd->qk"}> : () -> ()
    %cst_23 = arith.constant dense<0.000000e+00> : vector<8x8xf32>
    %31 = tpu.matmul %28, %29, %cst_23 {dimension_numbers = #tpu.dot_dimension_numbers<[1], [1], [0], [0], [0, 0, 1, 0], [], []>} : vector<8x128xf32>, vector<8x128xf32>, vector<8x8xf32> -> vector<8x8xf32>
    "tpu.trace_stop"() : () -> ()
    %cst_24 = arith.constant 1.250000e-01 : f32
    %32 = vector.broadcast %cst_24 : f32 to vector<8x8xf32>
    %33 = arith.mulf %31, %32 : vector<8x8xf32>
    %34 = vector.broadcast %7 : vector<1x8xf32> to vector<8x8xf32>
    %35 = arith.addf %33, %34 : vector<8x8xf32>
    %cst_25 = arith.constant dense<0xFF800000> : vector<8xf32>
    %36 = vector.multi_reduction <maximumf>, %35, %cst_25 [1] : vector<8x8xf32> to vector<8xf32>
    %37 = vector.shape_cast %36 : vector<8xf32> to vector<8x1xf32>
    %38 = vector.broadcast %37 : vector<8x1xf32> to vector<8x8xf32>
    %39 = arith.subf %35, %38 : vector<8x8xf32>
    %40 = math.exp %39 : vector<8x8xf32>
    %cst_26 = arith.constant dense<0.000000e+00> : vector<8xf32>
    %41 = vector.multi_reduction <add>, %40, %cst_26 [1] : vector<8x8xf32> to vector<8xf32>
    %42 = vector.shape_cast %41 : vector<8xf32> to vector<8x1xf32>
    %43 = tpu.reciprocal %42 {approx = true} : vector<8x1xf32> -> vector<8x1xf32>
    %44 = vector.broadcast %43 : vector<8x1xf32> to vector<8x8xf32>
    %45 = arith.mulf %40, %44 : vector<8x8xf32>
    %cst_27 = arith.constant dense<0.000000e+00> : vector<8x128xf32>
    %46 = tpu.matmul %45, %30, %cst_27 {dimension_numbers = #tpu.dot_dimension_numbers<[1], [0], [0], [1], [0, 0, 1, 1], [], []>} : vector<8x8xf32>, vector<8x128xf32>, vector<8x128xf32> -> vector<8x128xf32>
    %c0_28 = arith.constant 0 : index
    %c128_29 = arith.constant 128 : index
    %47 = vector.load %arg16[%c0_28, %c128_29] : memref<16x256xf32, #tpu.memory_space<vmem>>, vector<8x128xf32>
    tpu.vector_store %arg16[%c0_28, %c128_29], %46 {strides = array<i32>} : memref<16x256xf32, #tpu.memory_space<vmem>>, vector<8x128xf32>,
    %c1 = arith.constant 1 : index
    %c0_30 = arith.constant 0 : index
    %48 = vector.load %arg1[%c1, %c0_30] : memref<2x8xf32, #tpu.memory_space<vmem>>, vector<1x8xf32>
    %c8 = arith.constant 8 : index
    %c0_31 = arith.constant 0 : index
    %49 = vector.load %arg15[%c8, %c0_31] : memref<16x768xf32, #tpu.memory_space<vmem>>, vector<8x128xf32>
    %c8_32 = arith.constant 8 : index
    %c128_33 = arith.constant 128 : index
    %50 = vector.load %arg15[%c8_32, %c128_33] : memref<16x768xf32, #tpu.memory_space<vmem>>, vector<8x128xf32>
    %c8_34 = arith.constant 8 : index
    %c256_35 = arith.constant 256 : index
    %51 = vector.load %arg15[%c8_34, %c256_35] : memref<16x768xf32, #tpu.memory_space<vmem>>, vector<8x128xf32>
    "tpu.trace_start"() <{level = 10 : i32, message = "qd,kd->qk"}> : () -> ()
    %cst_36 = arith.constant dense<0.000000e+00> : vector<8x8xf32>
    %52 = tpu.matmul %49, %50, %cst_36 {dimension_numbers = #tpu.dot_dimension_numbers<[1], [1], [0], [0], [0, 0, 1, 0], [], []>} : vector<8x128xf32>, vector<8x128xf32>, vector<8x8xf32> -> vector<8x8xf32>
    "tpu.trace_stop"() : () -> ()
    %cst_37 = arith.constant 1.250000e-01 : f32
    %53 = vector.broadcast %cst_37 : f32 to vector<8x8xf32>
    %54 = arith.mulf %52, %53 : vector<8x8xf32>
    %55 = vector.broadcast %48 : vector<1x8xf32> to vector<8x8xf32>
    %56 = arith.addf %54, %55 : vector<8x8xf32>
    %cst_38 = arith.constant dense<0xFF800000> : vector<8xf32>
    %57 = vector.multi_reduction <maximumf>, %56, %cst_38 [1] : vector<8x8xf32> to vector<8xf32>
    %58 = vector.shape_cast %57 : vector<8xf32> to vector<8x1xf32>
    %59 = vector.broadcast %58 : vector<8x1xf32> to vector<8x8xf32>
    %60 = arith.subf %56, %59 : vector<8x8xf32>
    %61 = math.exp %60 : vector<8x8xf32>
    %cst_39 = arith.constant dense<0.000000e+00> : vector<8xf32>
    %62 = vector.multi_reduction <add>, %61, %cst_39 [1] : vector<8x8xf32> to vector<8xf32>
    %63 = vector.shape_cast %62 : vector<8xf32> to vector<8x1xf32>
    %64 = tpu.reciprocal %63 {approx = true} : vector<8x1xf32> -> vector<8x1xf32>
    %65 = vector.broadcast %64 : vector<8x1xf32> to vector<8x8xf32>
    %66 = arith.mulf %61, %65 : vector<8x8xf32>
    %cst_40 = arith.constant dense<0.000000e+00> : vector<8x128xf32>
    %67 = tpu.matmul %66, %51, %cst_40 {dimension_numbers = #tpu.dot_dimension_numbers<[1], [0], [0], [1], [0, 0, 1, 1], [], []>} : vector<8x8xf32>, vector<8x128xf32>, vector<8x128xf32> -> vector<8x128xf32>
    %c8_41 = arith.constant 8 : index
    %c0_42 = arith.constant 0 : index
    %68 = vector.load %arg16[%c8_41, %c0_42] : memref<16x256xf32, #tpu.memory_space<vmem>>, vector<8x128xf32>
    tpu.vector_store %arg16[%c8_41, %c0_42], %67 {strides = array<i32>} : memref<16x256xf32, #tpu.memory_space<vmem>>, vector<8x128xf32>,
    %c8_43 = arith.constant 8 : index
    %c384_44 = arith.constant 384 : index
    %69 = vector.load %arg15[%c8_43, %c384_44] : memref<16x768xf32, #tpu.memory_space<vmem>>, vector<8x128xf32>
    %c8_45 = arith.constant 8 : index
    %c512_46 = arith.constant 512 : index
    %70 = vector.load %arg15[%c8_45, %c512_46] : memref<16x768xf32, #tpu.memory_space<vmem>>, vector<8x128xf32>
    %c8_47 = arith.constant 8 : index
    %c640_48 = arith.constant 640 : index
    %71 = vector.load %arg15[%c8_47, %c640_48] : memref<16x768xf32, #tpu.memory_space<vmem>>, vector<8x128xf32>
    "tpu.trace_start"() <{level = 10 : i32, message = "qd,kd->qk"}> : () -> ()
    %cst_49 = arith.constant dense<0.000000e+00> : vector<8x8xf32>
    %72 = tpu.matmul %69, %70, %cst_49 {dimension_numbers = #tpu.dot_dimension_numbers<[1], [1], [0], [0], [0, 0, 1, 0], [], []>} : vector<8x128xf32>, vector<8x128xf32>, vector<8x8xf32> -> vector<8x8xf32>
    "tpu.trace_stop"() : () -> ()
    %cst_50 = arith.constant 1.250000e-01 : f32
    %73 = vector.broadcast %cst_50 : f32 to vector<8x8xf32>
    %74 = arith.mulf %72, %73 : vector<8x8xf32>
    %75 = vector.broadcast %48 : vector<1x8xf32> to vector<8x8xf32>
    %76 = arith.addf %74, %75 : vector<8x8xf32>
    %cst_51 = arith.constant dense<0xFF800000> : vector<8xf32>
    %77 = vector.multi_reduction <maximumf>, %76, %cst_51 [1] : vector<8x8xf32> to vector<8xf32>
    %78 = vector.shape_cast %77 : vector<8xf32> to vector<8x1xf32>
    %79 = vector.broadcast %78 : vector<8x1xf32> to vector<8x8xf32>
    %80 = arith.subf %76, %79 : vector<8x8xf32>
    %81 = math.exp %80 : vector<8x8xf32>
    %cst_52 = arith.constant dense<0.000000e+00> : vector<8xf32>
    %82 = vector.multi_reduction <add>, %81, %cst_52 [1] : vector<8x8xf32> to vector<8xf32>
    %83 = vector.shape_cast %82 : vector<8xf32> to vector<8x1xf32>
    %84 = tpu.reciprocal %83 {approx = true} : vector<8x1xf32> -> vector<8x1xf32>
    %85 = vector.broadcast %84 : vector<8x1xf32> to vector<8x8xf32>
    %86 = arith.mulf %81, %85 : vector<8x8xf32>
    %cst_53 = arith.constant dense<0.000000e+00> : vector<8x128xf32>
    %87 = tpu.matmul %86, %71, %cst_53 {dimension_numbers = #tpu.dot_dimension_numbers<[1], [0], [0], [1], [0, 0, 1, 1], [], []>} : vector<8x8xf32>, vector<8x128xf32>, vector<8x128xf32> -> vector<8x128xf32>
    %c8_54 = arith.constant 8 : index
    %c128_55 = arith.constant 128 : index
    %88 = vector.load %arg16[%c8_54, %c128_55] : memref<16x256xf32, #tpu.memory_space<vmem>>, vector<8x128xf32>
    tpu.vector_store %arg16[%c8_54, %c128_55], %87 {strides = array<i32>} : memref<16x256xf32, #tpu.memory_space<vmem>>, vector<8x128xf32>,
    %c0_56 = arith.constant 0 : index
    %c0_57 = arith.constant 0 : index
    %89 = vector.load %arg16[%c0_56, %c0_57] : memref<16x256xf32, #tpu.memory_space<vmem>>, vector<16x256xf32>
    %c0_58 = arith.constant 0 : index
    %c0_59 = arith.constant 0 : index
    %90 = vector.load %arg4[%c0_58, %c0_59] : memref<256x128xf32, #tpu.memory_space<vmem>>, vector<256x128xf32>
    %cst_60 = arith.constant dense<0.000000e+00> : vector<16x128xf32>
    %91 = tpu.matmul %89, %90, %cst_60 {dimension_numbers = #tpu.dot_dimension_numbers<[1], [0], [0], [1], [0, 0, 1, 1], [], []>} : vector<16x256xf32>, vector<256x128xf32>, vector<16x128xf32> -> vector<16x128xf32>
    %c0_61 = arith.constant 0 : index
    %c0_62 = arith.constant 0 : index
    %92 = vector.load %arg5[%c0_61, %c0_62] : memref<1x128xf32, #tpu.memory_space<vmem>>, vector<1x128xf32>
    %93 = vector.broadcast %92 : vector<1x128xf32> to vector<16x128xf32>
    %94 = arith.addf %91, %93 : vector<16x128xf32>
    %95 = arith.addf %94, %0 : vector<16x128xf32>
    %c0_63 = arith.constant 0 : index
    %c0_64 = arith.constant 0 : index
    %96 = vector.load %arg6[%c0_63, %c0_64] : memref<1x128xf32, #tpu.memory_space<vmem>>, vector<1x128xf32>
    %c0_65 = arith.constant 0 : index
    %c0_66 = arith.constant 0 : index
    %97 = vector.load %arg7[%c0_65, %c0_66] : memref<1x128xf32, #tpu.memory_space<vmem>>, vector<1x128xf32>
    %cst_67 = arith.constant dense<0.000000e+00> : vector<16xf32>
    %98 = vector.multi_reduction <add>, %95, %cst_67 [1] : vector<16x128xf32> to vector<16xf32>
    %99 = vector.shape_cast %98 : vector<16xf32> to vector<16x1xf32>
    %cst_68 = arith.constant 1.280000e+02 : f32
    %100 = vector.broadcast %cst_68 : f32 to vector<16x1xf32>
    %101 = arith.divf %99, %100 : vector<16x1xf32>
    %102 = vector.broadcast %101 : vector<16x1xf32> to vector<16x128xf32>
    %103 = arith.subf %95, %102 : vector<16x128xf32>
    %104 = arith.mulf %103, %103 : vector<16x128xf32>
    %cst_69 = arith.constant dense<0.000000e+00> : vector<16xf32>
    %105 = vector.multi_reduction <add>, %104, %cst_69 [1] : vector<16x128xf32> to vector<16xf32>
    %106 = vector.shape_cast %105 : vector<16xf32> to vector<16x1xf32>
    %cst_70 = arith.constant 1.280000e+02 : f32
    %107 = vector.broadcast %cst_70 : f32 to vector<16x1xf32>
    %108 = arith.divf %106, %107 : vector<16x1xf32>
    %109 = vector.broadcast %101 : vector<16x1xf32> to vector<16x128xf32>
    %110 = arith.subf %95, %109 : vector<16x128xf32>
    %cst_71 = arith.constant 9.99999996E-13 : f32
    %111 = vector.broadcast %cst_71 : f32 to vector<16x1xf32>
    %112 = arith.addf %108, %111 : vector<16x1xf32>
    %113 = math.rsqrt %112 : vector<16x1xf32>
    %114 = vector.broadcast %113 : vector<16x1xf32> to vector<16x128xf32>
    %115 = arith.mulf %110, %114 : vector<16x128xf32>
    %116 = vector.broadcast %96 : vector<1x128xf32> to vector<16x128xf32>
    %117 = arith.mulf %115, %116 : vector<16x128xf32>
    %118 = vector.broadcast %97 : vector<1x128xf32> to vector<16x128xf32>
    %119 = arith.addf %117, %118 : vector<16x128xf32>
    %c0_72 = arith.constant 0 : index
    %c0_73 = arith.constant 0 : index
    %120 = vector.load %arg8[%c0_72, %c0_73] : memref<128x512xf32, #tpu.memory_space<vmem>>, vector<128x512xf32>
    %cst_74 = arith.constant dense<0.000000e+00> : vector<16x512xf32>
    %121 = tpu.matmul %119, %120, %cst_74 {dimension_numbers = #tpu.dot_dimension_numbers<[1], [0], [0], [1], [0, 0, 1, 1], [], []>} : vector<16x128xf32>, vector<128x512xf32>, vector<16x512xf32> -> vector<16x512xf32>
    %c0_75 = arith.constant 0 : index
    %c0_76 = arith.constant 0 : index
    %122 = vector.load %arg9[%c0_75, %c0_76] : memref<1x512xf32, #tpu.memory_space<vmem>>, vector<1x512xf32>
    %123 = vector.broadcast %122 : vector<1x512xf32> to vector<16x512xf32>
    %124 = arith.addf %121, %123 : vector<16x512xf32>
    %cst_77 = arith.constant 5.000000e-01 : f32
    %125 = vector.broadcast %cst_77 : f32 to vector<16x512xf32>
    %126 = arith.mulf %125, %124 : vector<16x512xf32>
    %cst_78 = arith.constant 0.707106769 : f32
    %127 = vector.broadcast %cst_78 : f32 to vector<16x512xf32>
    %128 = arith.mulf %124, %127 : vector<16x512xf32>
    %129 = math.erf %128 : vector<16x512xf32>
    %cst_79 = arith.constant 1.000000e+00 : f32
    %130 = vector.broadcast %cst_79 : f32 to vector<16x512xf32>
    %131 = arith.addf %130, %129 : vector<16x512xf32>
    %132 = arith.mulf %126, %131 : vector<16x512xf32>
    %c0_80 = arith.constant 0 : index
    %c0_81 = arith.constant 0 : index
    %133 = vector.load %arg10[%c0_80, %c0_81] : memref<512x128xf32, #tpu.memory_space<vmem>>, vector<512x128xf32>
    %cst_82 = arith.constant dense<0.000000e+00> : vector<16x128xf32>
    %134 = tpu.matmul %132, %133, %cst_82 {dimension_numbers = #tpu.dot_dimension_numbers<[1], [0], [0], [1], [0, 0, 1, 1], [], []>} : vector<16x512xf32>, vector<512x128xf32>, vector<16x128xf32> -> vector<16x128xf32>
    %c0_83 = arith.constant 0 : index
    %c0_84 = arith.constant 0 : index
    %135 = vector.load %arg11[%c0_83, %c0_84] : memref<1x128xf32, #tpu.memory_space<vmem>>, vector<1x128xf32>
    %136 = vector.broadcast %135 : vector<1x128xf32> to vector<16x128xf32>
    %137 = arith.addf %134, %136 : vector<16x128xf32>
    %138 = arith.addf %137, %119 : vector<16x128xf32>
    %c0_85 = arith.constant 0 : index
    %c0_86 = arith.constant 0 : index
    %139 = vector.load %arg12[%c0_85, %c0_86] : memref<1x128xf32, #tpu.memory_space<vmem>>, vector<1x128xf32>
    %c0_87 = arith.constant 0 : index
    %c0_88 = arith.constant 0 : index
    %140 = vector.load %arg13[%c0_87, %c0_88] : memref<1x128xf32, #tpu.memory_space<vmem>>, vector<1x128xf32>
    %cst_89 = arith.constant dense<0.000000e+00> : vector<16xf32>
    %141 = vector.multi_reduction <add>, %138, %cst_89 [1] : vector<16x128xf32> to vector<16xf32>
    %142 = vector.shape_cast %141 : vector<16xf32> to vector<16x1xf32>
    %cst_90 = arith.constant 1.280000e+02 : f32
    %143 = vector.broadcast %cst_90 : f32 to vector<16x1xf32>
    %144 = arith.divf %142, %143 : vector<16x1xf32>
    %145 = vector.broadcast %144 : vector<16x1xf32> to vector<16x128xf32>
    %146 = arith.subf %138, %145 : vector<16x128xf32>
    %147 = arith.mulf %146, %146 : vector<16x128xf32>
    %cst_91 = arith.constant dense<0.000000e+00> : vector<16xf32>
    %148 = vector.multi_reduction <add>, %147, %cst_91 [1] : vector<16x128xf32> to vector<16xf32>
    %149 = vector.shape_cast %148 : vector<16xf32> to vector<16x1xf32>
    %cst_92 = arith.constant 1.280000e+02 : f32
    %150 = vector.broadcast %cst_92 : f32 to vector<16x1xf32>
    %151 = arith.divf %149, %150 : vector<16x1xf32>
    %152 = vector.broadcast %144 : vector<16x1xf32> to vector<16x128xf32>
    %153 = arith.subf %138, %152 : vector<16x128xf32>
    %cst_93 = arith.constant 9.99999996E-13 : f32
    %154 = vector.broadcast %cst_93 : f32 to vector<16x1xf32>
    %155 = arith.addf %151, %154 : vector<16x1xf32>
    %156 = math.rsqrt %155 : vector<16x1xf32>
    %157 = vector.broadcast %156 : vector<16x1xf32> to vector<16x128xf32>
    %158 = arith.mulf %153, %157 : vector<16x128xf32>
    %159 = vector.broadcast %139 : vector<1x128xf32> to vector<16x128xf32>
    %160 = arith.mulf %158, %159 : vector<16x128xf32>
    %161 = vector.broadcast %140 : vector<1x128xf32> to vector<16x128xf32>
    %162 = arith.addf %160, %161 : vector<16x128xf32>
    %c0_94 = arith.constant 0 : index
    %c0_95 = arith.constant 0 : index
    %163 = vector.load %arg14[%c0_94, %c0_95] : memref<16x128xf32, #tpu.memory_space<vmem>>, vector<16x128xf32>
    tpu.vector_store %arg14[%c0_94, %c0_95], %162 {strides = array<i32>} : memref<16x128xf32, #tpu.memory_space<vmem>>, vector<16x128xf32>,
    return
  }
}

module attributes {stable_mosaic.version = 11 : i64} {
  func.func @_bert_layer_kernel(%arg0: memref<16x128xf32, #tpu.memory_space<vmem>>, %arg1: memref<2x8xf32, #tpu.memory_space<vmem>>, %arg2: memref<128x768xf32, #tpu.memory_space<vmem>>, %arg3: memref<1x768xf32, #tpu.memory_space<vmem>>, %arg4: memref<256x128xf32, #tpu.memory_space<vmem>>, %arg5: memref<1x128xf32, #tpu.memory_space<vmem>>, %arg6: memref<1x128xf32, #tpu.memory_space<vmem>>, %arg7: memref<1x128xf32, #tpu.memory_space<vmem>>, %arg8: memref<128x512xf32, #tpu.memory_space<vmem>>, %arg9: memref<1x512xf32, #tpu.memory_space<vmem>>, %arg10: memref<512x128xf32, #tpu.memory_space<vmem>>, %arg11: memref<1x128xf32, #tpu.memory_space<vmem>>, %arg12: memref<1x128xf32, #tpu.memory_space<vmem>>, %arg13: memref<1x128xf32, #tpu.memory_space<vmem>>, %arg14: memref<16x128xf32, #tpu.memory_space<vmem>>, %arg15: memref<16x768xf32, #tpu.memory_space<vmem>>, %arg16: memref<16x256xf32, #tpu.memory_space<vmem>>) attributes {dimension_semantics = [], scalar_prefetch = 0 : i64, scratch_operands = 2 : i64, tpu.core_type = #tpu.core_type<tc>} {
    %c0 = arith.constant 0 : index
    %c0_0 = arith.constant 0 : index
    %0 = vector.load %arg0[%c0, %c0_0] : memref<16x128xf32, #tpu.memory_space<vmem>>, vector<16x128xf32>
    %c0_1 = arith.constant 0 : index
    %c0_2 = arith.constant 0 : index
    %1 = vector.load %arg2[%c0_1, %c0_2] : memref<128x768xf32, #tpu.memory_space<vmem>>, vector<128x768xf32>
    %cst = arith.constant dense<0.000000e+00> : vector<16x768xf32>
    %2 = tpu.matmul %0, %1, %cst {dimension_numbers = #tpu.dot_dimension_numbers<[1], [0], [0], [1], [0, 0, 1, 1], [], []>} : vector<16x128xf32>, vector<128x768xf32>, vector<16x768xf32> -> vector<16x768xf32>
    %c0_3 = arith.constant 0 : index
    %c0_4 = arith.constant 0 : index
    %3 = vector.load %arg3[%c0_3, %c0_4] : memref<1x768xf32, #tpu.memory_space<vmem>>, vector<1x768xf32>
    %4 = vector.broadcast %3 : vector<1x768xf32> to vector<16x768xf32>
    %5 = arith.addf %2, %4 : vector<16x768xf32>
    %c0_5 = arith.constant 0 : index
    %c0_6 = arith.constant 0 : index
    %6 = vector.load %arg15[%c0_5, %c0_6] : memref<16x768xf32, #tpu.memory_space<vmem>>, vector<16x768xf32>
    tpu.vector_store %arg15[%c0_5, %c0_6], %5 {strides = array<i32>} : memref<16x768xf32, #tpu.memory_space<vmem>>, vector<16x768xf32>,
    %c0_7 = arith.constant 0 : index
    %c0_8 = arith.constant 0 : index
    %7 = vector.load %arg1[%c0_7, %c0_8] : memref<2x8xf32, #tpu.memory_space<vmem>>, vector<1x8xf32>
    %c0_9 = arith.constant 0 : index
    %c0_10 = arith.constant 0 : index
    %8 = vector.load %arg15[%c0_9, %c0_10] : memref<16x768xf32, #tpu.memory_space<vmem>>, vector<8x128xf32>
    %c0_11 = arith.constant 0 : index
    %c128 = arith.constant 128 : index
    %9 = vector.load %arg15[%c0_11, %c128] : memref<16x768xf32, #tpu.memory_space<vmem>>, vector<8x128xf32>
    %c0_12 = arith.constant 0 : index
    %c256 = arith.constant 256 : index
    %10 = vector.load %arg15[%c0_12, %c256] : memref<16x768xf32, #tpu.memory_space<vmem>>, vector<8x128xf32>
    "tpu.trace_start"() <{level = 10 : i32, message = "qd,kd->qk"}> : () -> ()
    %cst_13 = arith.constant dense<0.000000e+00> : vector<8x8xf32>
    %11 = tpu.matmul %8, %9, %cst_13 {dimension_numbers = #tpu.dot_dimension_numbers<[1], [1], [0], [0], [0, 0, 1, 0], [], []>} : vector<8x128xf32>, vector<8x128xf32>, vector<8x8xf32> -> vector<8x8xf32>
    "tpu.trace_stop"() : () -> ()
    %cst_14 = arith.constant 1.250000e-01 : f32
    %12 = vector.broadcast %cst_14 : f32 to vector<8x8xf32>
    %13 = arith.mulf %11, %12 : vector<8x8xf32>
    %14 = vector.broadcast %7 : vector<1x8xf32> to vector<8x8xf32>
    %15 = arith.addf %13, %14 : vector<8x8xf32>
    %cst_15 = arith.constant dense<0xFF800000> : vector<8xf32>
    %16 = vector.multi_reduction <maximumf>, %15, %cst_15 [1] : vector<8x8xf32> to vector<8xf32>
    %17 = vector.shape_cast %16 : vector<8xf32> to vector<8x1xf32>
    %18 = vector.broadcast %17 : vector<8x1xf32> to vector<8x8xf32>
    %19 = arith.subf %15, %18 : vector<8x8xf32>
    %20 = math.exp %19 : vector<8x8xf32>
    %cst_16 = arith.constant dense<0.000000e+00> : vector<8xf32>
    %21 = vector.multi_reduction <add>, %20, %cst_16 [1] : vector<8x8xf32> to vector<8xf32>
    %22 = vector.shape_cast %21 : vector<8xf32> to vector<8x1xf32>
    %23 = tpu.reciprocal %22 {approx = true} : vector<8x1xf32> -> vector<8x1xf32>
    %24 = vector.broadcast %23 : vector<8x1xf32> to vector<8x8xf32>
    %25 = arith.mulf %20, %24 : vector<8x8xf32>
    %cst_17 = arith.constant dense<0.000000e+00> : vector<8x128xf32>
    %26 = tpu.matmul %25, %10, %cst_17 {dimension_numbers = #tpu.dot_dimension_numbers<[1], [0], [0], [1], [0, 0, 1, 1], [], []>} : vector<8x8xf32>, vector<8x128xf32>, vector<8x128xf32> -> vector<8x128xf32>
    %c0_18 = arith.constant 0 : index
    %c0_19 = arith.constant 0 : index
    %27 = vector.load %arg16[%c0_18, %c0_19] : memref<16x256xf32, #tpu.memory_space<vmem>>, vector<8x128xf32>
    tpu.vector_store %arg16[%c0_18, %c0_19], %26 {strides = array<i32>} : memref<16x256xf32, #tpu.memory_space<vmem>>, vector<8x128xf32>,
    %c0_20 = arith.constant 0 : index
    %c384 = arith.constant 384 : index
    %28 = vector.load %arg15[%c0_20, %c384] : memref<16x768xf32, #tpu.memory_space<vmem>>, vector<8x128xf32>
    %c0_21 = arith.constant 0 : index
    %c512 = arith.constant 512 : index
    %29 = vector.load %arg15[%c0_21, %c512] : memref<16x768xf32, #tpu.memory_space<vmem>>, vector<8x128xf32>
    %c0_22 = arith.constant 0 : index
    %c640 = arith.constant 640 : index
    %30 = vector.load %arg15[%c0_22, %c640] : memref<16x768xf32, #tpu.memory_space<vmem>>, vector<8x128xf32>
    "tpu.trace_start"() <{level = 10 : i32, message = "qd,kd->qk"}> : () -> ()
    %cst_23 = arith.constant dense<0.000000e+00> : vector<8x8xf32>
    %31 = tpu.matmul %28, %29, %cst_23 {dimension_numbers = #tpu.dot_dimension_numbers<[1], [1], [0], [0], [0, 0, 1, 0], [], []>} : vector<8x128xf32>, vector<8x128xf32>, vector<8x8xf32> -> vector<8x8xf32>
    "tpu.trace_stop"() : () -> ()
    %cst_24 = arith.constant 1.250000e-01 : f32
    %32 = vector.broadcast %cst_24 : f32 to vector<8x8xf32>
    %33 = arith.mulf %31, %32 : vector<8x8xf32>
    %34 = vector.broadcast %7 : vector<1x8xf32> to vector<8x8xf32>
    %35 = arith.addf %33, %34 : vector<8x8xf32>
    %cst_25 = arith.constant dense<0xFF800000> : vector<8xf32>
    %36 = vector.multi_reduction <maximumf>, %35, %cst_25 [1] : vector<8x8xf32> to vector<8xf32>
    %37 = vector.shape_cast %36 : vector<8xf32> to vector<8x1xf32>
    %38 = vector.broadcast %37 : vector<8x1xf32> to vector<8x8xf32>
    %39 = arith.subf %35, %38 : vector<8x8xf32>
    %40 = math.exp %39 : vector<8x8xf32>
    %cst_26 = arith.constant dense<0.000000e+00> : vector<8xf32>
    %41 = vector.multi_reduction <add>, %40, %cst_26 [1] : vector<8x8xf32> to vector<8xf32>
    %42 = vector.shape_cast %41 : vector<8xf32> to vector<8x1xf32>
    %43 = tpu.reciprocal %42 {approx = true} : vector<8x1xf32> -> vector<8x1xf32>
    %44 = vector.broadcast %43 : vector<8x1xf32> to vector<8x8xf32>
    %45 = arith.mulf %40, %44 : vector<8x8xf32>
    %cst_27 = arith.constant dense<0.000000e+00> : vector<8x128xf32>
    %46 = tpu.matmul %45, %30, %cst_27 {dimension_numbers = #tpu.dot_dimension_numbers<[1], [0], [0], [1], [0, 0, 1, 1], [], []>} : vector<8x8xf32>, vector<8x128xf32>, vector<8x128xf32> -> vector<8x128xf32>
    %c0_28 = arith.constant 0 : index
    %c128_29 = arith.constant 128 : index
    %47 = vector.load %arg16[%c0_28, %c128_29] : memref<16x256xf32, #tpu.memory_space<vmem>>, vector<8x128xf32>
    tpu.vector_store %arg16[%c0_28, %c128_29], %46 {strides = array<i32>} : memref<16x256xf32, #tpu.memory_space<vmem>>, vector<8x128xf32>,
    %c1 = arith.constant 1 : index
    %c0_30 = arith.constant 0 : index
    %48 = vector.load %arg1[%c1, %c0_30] : memref<2x8xf32, #tpu.memory_space<vmem>>, vector<1x8xf32>
    %c8 = arith.constant 8 : index
    %c0_31 = arith.constant 0 : index
    %49 = vector.load %arg15[%c8, %c0_31] : memref<16x768xf32, #tpu.memory_space<vmem>>, vector<8x128xf32>
    %c8_32 = arith.constant 8 : index
    %c128_33 = arith.constant 128 : index
    %50 = vector.load %arg15[%c8_32, %c128_33] : memref<16x768xf32, #tpu.memory_space<vmem>>, vector<8x128xf32>
    %c8_34 = arith.constant 8 : index
    %c256_35 = arith.constant 256 : index
    %51 = vector.load %arg15[%c8_34, %c256_35] : memref<16x768xf32, #tpu.memory_space<vmem>>, vector<8x128xf32>
    "tpu.trace_start"() <{level = 10 : i32, message = "qd,kd->qk"}> : () -> ()
    %cst_36 = arith.constant dense<0.000000e+00> : vector<8x8xf32>
    %52 = tpu.matmul %49, %50, %cst_36 {dimension_numbers = #tpu.dot_dimension_numbers<[1], [1], [0], [0], [0, 0, 1, 0], [], []>} : vector<8x128xf32>, vector<8x128xf32>, vector<8x8xf32> -> vector<8x8xf32>
    "tpu.trace_stop"() : () -> ()
    %cst_37 = arith.constant 1.250000e-01 : f32
    %53 = vector.broadcast %cst_37 : f32 to vector<8x8xf32>
    %54 = arith.mulf %52, %53 : vector<8x8xf32>
    %55 = vector.broadcast %48 : vector<1x8xf32> to vector<8x8xf32>
    %56 = arith.addf %54, %55 : vector<8x8xf32>
    %cst_38 = arith.constant dense<0xFF800000> : vector<8xf32>
    %57 = vector.multi_reduction <maximumf>, %56, %cst_38 [1] : vector<8x8xf32> to vector<8xf32>
    %58 = vector.shape_cast %57 : vector<8xf32> to vector<8x1xf32>
    %59 = vector.broadcast %58 : vector<8x1xf32> to vector<8x8xf32>
    %60 = arith.subf %56, %59 : vector<8x8xf32>
    %61 = math.exp %60 : vector<8x8xf32>
    %cst_39 = arith.constant dense<0.000000e+00> : vector<8xf32>
    %62 = vector.multi_reduction <add>, %61, %cst_39 [1] : vector<8x8xf32> to vector<8xf32>
    %63 = vector.shape_cast %62 : vector<8xf32> to vector<8x1xf32>
    %64 = tpu.reciprocal %63 {approx = true} : vector<8x1xf32> -> vector<8x1xf32>
    %65 = vector.broadcast %64 : vector<8x1xf32> to vector<8x8xf32>
    %66 = arith.mulf %61, %65 : vector<8x8xf32>
    %cst_40 = arith.constant dense<0.000000e+00> : vector<8x128xf32>
    %67 = tpu.matmul %66, %51, %cst_40 {dimension_numbers = #tpu.dot_dimension_numbers<[1], [0], [0], [1], [0, 0, 1, 1], [], []>} : vector<8x8xf32>, vector<8x128xf32>, vector<8x128xf32> -> vector<8x128xf32>
    %c8_41 = arith.constant 8 : index
    %c0_42 = arith.constant 0 : index
    %68 = vector.load %arg16[%c8_41, %c0_42] : memref<16x256xf32, #tpu.memory_space<vmem>>, vector<8x128xf32>
    tpu.vector_store %arg16[%c8_41, %c0_42], %67 {strides = array<i32>} : memref<16x256xf32, #tpu.memory_space<vmem>>, vector<8x128xf32>,
    %c8_43 = arith.constant 8 : index
    %c384_44 = arith.constant 384 : index
    %69 = vector.load %arg15[%c8_43, %c384_44] : memref<16x768xf32, #tpu.memory_space<vmem>>, vector<8x128xf32>
    %c8_45 = arith.constant 8 : index
    %c512_46 = arith.constant 512 : index
    %70 = vector.load %arg15[%c8_45, %c512_46] : memref<16x768xf32, #tpu.memory_space<vmem>>, vector<8x128xf32>
    %c8_47 = arith.constant 8 : index
    %c640_48 = arith.constant 640 : index
    %71 = vector.load %arg15[%c8_47, %c640_48] : memref<16x768xf32, #tpu.memory_space<vmem>>, vector<8x128xf32>
    "tpu.trace_start"() <{level = 10 : i32, message = "qd,kd->qk"}> : () -> ()
    %cst_49 = arith.constant dense<0.000000e+00> : vector<8x8xf32>
    %72 = tpu.matmul %69, %70, %cst_49 {dimension_numbers = #tpu.dot_dimension_numbers<[1], [1], [0], [0], [0, 0, 1, 0], [], []>} : vector<8x128xf32>, vector<8x128xf32>, vector<8x8xf32> -> vector<8x8xf32>
    "tpu.trace_stop"() : () -> ()
    %cst_50 = arith.constant 1.250000e-01 : f32
    %73 = vector.broadcast %cst_50 : f32 to vector<8x8xf32>
    %74 = arith.mulf %72, %73 : vector<8x8xf32>
    %75 = vector.broadcast %48 : vector<1x8xf32> to vector<8x8xf32>
    %76 = arith.addf %74, %75 : vector<8x8xf32>
    %cst_51 = arith.constant dense<0xFF800000> : vector<8xf32>
    %77 = vector.multi_reduction <maximumf>, %76, %cst_51 [1] : vector<8x8xf32> to vector<8xf32>
    %78 = vector.shape_cast %77 : vector<8xf32> to vector<8x1xf32>
    %79 = vector.broadcast %78 : vector<8x1xf32> to vector<8x8xf32>
    %80 = arith.subf %76, %79 : vector<8x8xf32>
    %81 = math.exp %80 : vector<8x8xf32>
    %cst_52 = arith.constant dense<0.000000e+00> : vector<8xf32>
    %82 = vector.multi_reduction <add>, %81, %cst_52 [1] : vector<8x8xf32> to vector<8xf32>
    %83 = vector.shape_cast %82 : vector<8xf32> to vector<8x1xf32>
    %84 = tpu.reciprocal %83 {approx = true} : vector<8x1xf32> -> vector<8x1xf32>
    %85 = vector.broadcast %84 : vector<8x1xf32> to vector<8x8xf32>
    %86 = arith.mulf %81, %85 : vector<8x8xf32>
    %cst_53 = arith.constant dense<0.000000e+00> : vector<8x128xf32>
    %87 = tpu.matmul %86, %71, %cst_53 {dimension_numbers = #tpu.dot_dimension_numbers<[1], [0], [0], [1], [0, 0, 1, 1], [], []>} : vector<8x8xf32>, vector<8x128xf32>, vector<8x128xf32> -> vector<8x128xf32>
    %c8_54 = arith.constant 8 : index
    %c128_55 = arith.constant 128 : index
    %88 = vector.load %arg16[%c8_54, %c128_55] : memref<16x256xf32, #tpu.memory_space<vmem>>, vector<8x128xf32>
    tpu.vector_store %arg16[%c8_54, %c128_55], %87 {strides = array<i32>} : memref<16x256xf32, #tpu.memory_space<vmem>>, vector<8x128xf32>,
    %c0_56 = arith.constant 0 : index
    %c0_57 = arith.constant 0 : index
    %89 = vector.load %arg16[%c0_56, %c0_57] : memref<16x256xf32, #tpu.memory_space<vmem>>, vector<16x256xf32>
    %c0_58 = arith.constant 0 : index
    %c0_59 = arith.constant 0 : index
    %90 = vector.load %arg4[%c0_58, %c0_59] : memref<256x128xf32, #tpu.memory_space<vmem>>, vector<256x128xf32>
    %cst_60 = arith.constant dense<0.000000e+00> : vector<16x128xf32>
    %91 = tpu.matmul %89, %90, %cst_60 {dimension_numbers = #tpu.dot_dimension_numbers<[1], [0], [0], [1], [0, 0, 1, 1], [], []>} : vector<16x256xf32>, vector<256x128xf32>, vector<16x128xf32> -> vector<16x128xf32>
    %c0_61 = arith.constant 0 : index
    %c0_62 = arith.constant 0 : index
    %92 = vector.load %arg5[%c0_61, %c0_62] : memref<1x128xf32, #tpu.memory_space<vmem>>, vector<1x128xf32>
    %93 = vector.broadcast %92 : vector<1x128xf32> to vector<16x128xf32>
    %94 = arith.addf %91, %93 : vector<16x128xf32>
    %95 = arith.addf %94, %0 : vector<16x128xf32>
    %c0_63 = arith.constant 0 : index
    %c0_64 = arith.constant 0 : index
    %96 = vector.load %arg6[%c0_63, %c0_64] : memref<1x128xf32, #tpu.memory_space<vmem>>, vector<1x128xf32>
    %c0_65 = arith.constant 0 : index
    %c0_66 = arith.constant 0 : index
    %97 = vector.load %arg7[%c0_65, %c0_66] : memref<1x128xf32, #tpu.memory_space<vmem>>, vector<1x128xf32>
    %cst_67 = arith.constant dense<0.000000e+00> : vector<16xf32>
    %98 = vector.multi_reduction <add>, %95, %cst_67 [1] : vector<16x128xf32> to vector<16xf32>
    %99 = vector.shape_cast %98 : vector<16xf32> to vector<16x1xf32>
    %cst_68 = arith.constant 1.280000e+02 : f32
    %100 = vector.broadcast %cst_68 : f32 to vector<16x1xf32>
    %101 = arith.divf %99, %100 : vector<16x1xf32>
    %102 = vector.broadcast %101 : vector<16x1xf32> to vector<16x128xf32>
    %103 = arith.subf %95, %102 : vector<16x128xf32>
    %104 = arith.mulf %103, %103 : vector<16x128xf32>
    %cst_69 = arith.constant dense<0.000000e+00> : vector<16xf32>
    %105 = vector.multi_reduction <add>, %104, %cst_69 [1] : vector<16x128xf32> to vector<16xf32>
    %106 = vector.shape_cast %105 : vector<16xf32> to vector<16x1xf32>
    %cst_70 = arith.constant 1.280000e+02 : f32
    %107 = vector.broadcast %cst_70 : f32 to vector<16x1xf32>
    %108 = arith.divf %106, %107 : vector<16x1xf32>
    %109 = vector.broadcast %101 : vector<16x1xf32> to vector<16x128xf32>
    %110 = arith.subf %95, %109 : vector<16x128xf32>
    %cst_71 = arith.constant 9.99999996E-13 : f32
    %111 = vector.broadcast %cst_71 : f32 to vector<16x1xf32>
    %112 = arith.addf %108, %111 : vector<16x1xf32>
    %113 = math.rsqrt %112 : vector<16x1xf32>
    %114 = vector.broadcast %113 : vector<16x1xf32> to vector<16x128xf32>
    %115 = arith.mulf %110, %114 : vector<16x128xf32>
    %116 = vector.broadcast %96 : vector<1x128xf32> to vector<16x128xf32>
    %117 = arith.mulf %115, %116 : vector<16x128xf32>
    %118 = vector.broadcast %97 : vector<1x128xf32> to vector<16x128xf32>
    %119 = arith.addf %117, %118 : vector<16x128xf32>
    %c0_72 = arith.constant 0 : index
    %c0_73 = arith.constant 0 : index
    %120 = vector.load %arg8[%c0_72, %c0_73] : memref<128x512xf32, #tpu.memory_space<vmem>>, vector<128x512xf32>
    %cst_74 = arith.constant dense<0.000000e+00> : vector<16x512xf32>
    %121 = tpu.matmul %119, %120, %cst_74 {dimension_numbers = #tpu.dot_dimension_numbers<[1], [0], [0], [1], [0, 0, 1, 1], [], []>} : vector<16x128xf32>, vector<128x512xf32>, vector<16x512xf32> -> vector<16x512xf32>
    %c0_75 = arith.constant 0 : index
    %c0_76 = arith.constant 0 : index
    %122 = vector.load %arg9[%c0_75, %c0_76] : memref<1x512xf32, #tpu.memory_space<vmem>>, vector<1x512xf32>
    %123 = vector.broadcast %122 : vector<1x512xf32> to vector<16x512xf32>
    %124 = arith.addf %121, %123 : vector<16x512xf32>
    %cst_77 = arith.constant 5.000000e-01 : f32
    %125 = vector.broadcast %cst_77 : f32 to vector<16x512xf32>
    %126 = arith.mulf %125, %124 : vector<16x512xf32>
    %cst_78 = arith.constant 0.707106769 : f32
    %127 = vector.broadcast %cst_78 : f32 to vector<16x512xf32>
    %128 = arith.mulf %124, %127 : vector<16x512xf32>
    %129 = math.erf %128 : vector<16x512xf32>
    %cst_79 = arith.constant 1.000000e+00 : f32
    %130 = vector.broadcast %cst_79 : f32 to vector<16x512xf32>
    %131 = arith.addf %130, %129 : vector<16x512xf32>
    %132 = arith.mulf %126, %131 : vector<16x512xf32>
    %c0_80 = arith.constant 0 : index
    %c0_81 = arith.constant 0 : index
    %133 = vector.load %arg10[%c0_80, %c0_81] : memref<512x128xf32, #tpu.memory_space<vmem>>, vector<512x128xf32>
    %cst_82 = arith.constant dense<0.000000e+00> : vector<16x128xf32>
    %134 = tpu.matmul %132, %133, %cst_82 {dimension_numbers = #tpu.dot_dimension_numbers<[1], [0], [0], [1], [0, 0, 1, 1], [], []>} : vector<16x512xf32>, vector<512x128xf32>, vector<16x128xf32> -> vector<16x128xf32>
    %c0_83 = arith.constant 0 : index
    %c0_84 = arith.constant 0 : index
    %135 = vector.load %arg11[%c0_83, %c0_84] : memref<1x128xf32, #tpu.memory_space<vmem>>, vector<1x128xf32>
    %136 = vector.broadcast %135 : vector<1x128xf32> to vector<16x128xf32>
    %137 = arith.addf %134, %136 : vector<16x128xf32>
    %138 = arith.addf %137, %119 : vector<16x128xf32>
    %c0_85 = arith.constant 0 : index
    %c0_86 = arith.constant 0 : index
    %139 = vector.load %arg12[%c0_85, %c0_86] : memref<1x128xf32, #tpu.memory_space<vmem>>, vector<1x128xf32>
    %c0_87 = arith.constant 0 : index
    %c0_88 = arith.constant 0 : index
    %140 = vector.load %arg13[%c0_87, %c0_88] : memref<1x128xf32, #tpu.memory_space<vmem>>, vector<1x128xf32>
    %cst_89 = arith.constant dense<0.000000e+00> : vector<16xf32>
    %141 = vector.multi_reduction <add>, %138, %cst_89 [1] : vector<16x128xf32> to vector<16xf32>
    %142 = vector.shape_cast %141 : vector<16xf32> to vector<16x1xf32>
    %cst_90 = arith.constant 1.280000e+02 : f32
    %143 = vector.broadcast %cst_90 : f32 to vector<16x1xf32>
    %144 = arith.divf %142, %143 : vector<16x1xf32>
    %145 = vector.broadcast %144 : vector<16x1xf32> to vector<16x128xf32>
    %146 = arith.subf %138, %145 : vector<16x128xf32>
    %147 = arith.mulf %146, %146 : vector<16x128xf32>
    %cst_91 = arith.constant dense<0.000000e+00> : vector<16xf32>
    %148 = vector.multi_reduction <add>, %147, %cst_91 [1] : vector<16x128xf32> to vector<16xf32>
    %149 = vector.shape_cast %148 : vector<16xf32> to vector<16x1xf32>
    %cst_92 = arith.constant 1.280000e+02 : f32
    %150 = vector.broadcast %cst_92 : f32 to vector<16x1xf32>
    %151 = arith.divf %149, %150 : vector<16x1xf32>
    %152 = vector.broadcast %144 : vector<16x1xf32> to vector<16x128xf32>
    %153 = arith.subf %138, %152 : vector<16x128xf32>
    %cst_93 = arith.constant 9.99999996E-13 : f32
    %154 = vector.broadcast %cst_93 : f32 to vector<16x1xf32>
    %155 = arith.addf %151, %154 : vector<16x1xf32>
    %156 = math.rsqrt %155 : vector<16x1xf32>
    %157 = vector.broadcast %156 : vector<16x1xf32> to vector<16x128xf32>
    %158 = arith.mulf %153, %157 : vector<16x128xf32>
    %159 = vector.broadcast %139 : vector<1x128xf32> to vector<16x128xf32>
    %160 = arith.mulf %158, %159 : vector<16x128xf32>
    %161 = vector.broadcast %140 : vector<1x128xf32> to vector<16x128xf32>
    %162 = arith.addf %160, %161 : vector<16x128xf32>
    %c0_94 = arith.constant 0 : index
    %c0_95 = arith.constant 0 : index
    %163 = vector.load %arg14[%c0_94, %c0_95] : memref<16x128xf32, #tpu.memory_space<vmem>>, vector<16x128xf32>
    tpu.vector_store %arg14[%c0_94, %c0_95], %162 {strides = array<i32>} : memref<16x128xf32, #tpu.memory_space<vmem>>, vector<16x128xf32>,
    return
  }
}

module attributes {stable_mosaic.version = 11 : i64} {
  func.func @_head_kernel(%arg0: memref<2x128xf32, #tpu.memory_space<vmem>>, %arg1: memref<128x128xf32, #tpu.memory_space<vmem>>, %arg2: memref<1x128xf32, #tpu.memory_space<vmem>>, %arg3: memref<128x2xf32, #tpu.memory_space<vmem>>, %arg4: memref<1x2xf32, #tpu.memory_space<vmem>>, %arg5: memref<2x2xf32, #tpu.memory_space<vmem>>) attributes {dimension_semantics = [], scalar_prefetch = 0 : i64, scratch_operands = 0 : i64, tpu.core_type = #tpu.core_type<tc>} {
    %c0 = arith.constant 0 : index
    %c0_0 = arith.constant 0 : index
    %0 = vector.load %arg0[%c0, %c0_0] : memref<2x128xf32, #tpu.memory_space<vmem>>, vector<2x128xf32>
    %c0_1 = arith.constant 0 : index
    %c0_2 = arith.constant 0 : index
    %1 = vector.load %arg1[%c0_1, %c0_2] : memref<128x128xf32, #tpu.memory_space<vmem>>, vector<128x128xf32>
    %cst = arith.constant dense<0.000000e+00> : vector<2x128xf32>
    %2 = tpu.matmul %0, %1, %cst {dimension_numbers = #tpu.dot_dimension_numbers<[1], [0], [0], [1], [0, 0, 1, 1], [], []>} : vector<2x128xf32>, vector<128x128xf32>, vector<2x128xf32> -> vector<2x128xf32>
    %c0_3 = arith.constant 0 : index
    %c0_4 = arith.constant 0 : index
    %3 = vector.load %arg2[%c0_3, %c0_4] : memref<1x128xf32, #tpu.memory_space<vmem>>, vector<1x128xf32>
    %4 = vector.broadcast %3 : vector<1x128xf32> to vector<2x128xf32>
    %5 = arith.addf %2, %4 : vector<2x128xf32>
    %6 = math.tanh %5 : vector<2x128xf32>
    %c0_5 = arith.constant 0 : index
    %c0_6 = arith.constant 0 : index
    %7 = vector.load %arg3[%c0_5, %c0_6] : memref<128x2xf32, #tpu.memory_space<vmem>>, vector<128x2xf32>
    %cst_7 = arith.constant dense<0.000000e+00> : vector<2x2xf32>
    %8 = tpu.matmul %6, %7, %cst_7 {dimension_numbers = #tpu.dot_dimension_numbers<[1], [0], [0], [1], [0, 0, 1, 1], [], []>} : vector<2x128xf32>, vector<128x2xf32>, vector<2x2xf32> -> vector<2x2xf32>
    %c0_8 = arith.constant 0 : index
    %c0_9 = arith.constant 0 : index
    %9 = vector.load %arg4[%c0_8, %c0_9] : memref<1x2xf32, #tpu.memory_space<vmem>>, vector<1x2xf32>
    %10 = vector.broadcast %9 : vector<1x2xf32> to vector<2x2xf32>
    %11 = arith.addf %8, %10 : vector<2x2xf32>
    %c0_10 = arith.constant 0 : index
    %c0_11 = arith.constant 0 : index
    %12 = vector.load %arg5[%c0_10, %c0_11] : memref<2x2xf32, #tpu.memory_space<vmem>>, vector<2x2xf32>
    tpu.vector_store %arg5[%c0_10, %c0_11], %11 {strides = array<i32>} : memref<2x2xf32, #tpu.memory_space<vmem>>, vector<2x2xf32>,
    return
  }
}

</mosaic_0001>

<bundles_post_ra>
// kernel: frustration_bert_forward.4
= control target key start
LH: loop header
LB: loop body
LE: loop exit
PB: predicated region body
PF: predicated region fallthrough
CT: control target
= control target key end

     0   :  { %v90_v2 = vmov 128.0   ;;  %s129_s0 = inlined_call_operand.vmem [shape: f32[16,128], index: 0, kind: input, shape index: {}]   ;;  %s130_s1 = inlined_call_operand.vmem [shape: f32[1,128], index: 1, kind: input, shape index: {}]   ;;  %s131_s2 = inlined_call_operand.vmem [shape: f32[1,128], index: 2, kind: input, shape index: {}]   ;;  %s132_s3 = inlined_call_operand.vmem [shape: f32[16,128], index: 3, kind: output, shape index: {}]  }
   0x1   :  { %v14_v0 = vld [vmem:[%s129_s0] sm:$0xff]  ;;  %v15_v1 = vld [vmem:[%s129_s0 + $0x8] sm:$0xff]  ;;  %84 = vrcp.f32 %v90_v2 }
   0x2   :  { %18 = vadd.xlane.f32.xlu0 %v14_v0  ;;  %v82_v31 = vld [vmem:[%s130_s1] ss:$0 sm:$0xff] }
   0x3   :  { %v83_v34 = vld [vmem:[%s131_s2] ss:$0 sm:$0xff] }
   0x7   :  { %v85_v3 = vpop.eup %84 }
   0x8   :  { %v23_v4 = vmul.f32 128.0, %v85_v3  ;;  %vm27_vm0 = vweird.f32 %v85_v3 }
   0xa   :  { %20 = vadd.xlane.f32.xlu0 %v15_v1  ;;  %v24_v5 = vsub.f32 1.0, %v23_v4 }
   0xc   :  { %v25_v6 = vmul.f32 %v85_v3, %v24_v5 }
   0xe   :  { %v26_v7 = vadd.f32 %v85_v3, %v25_v6 }
  0x10   :  { %v28_v8 = vsel %vm27_vm0, %v85_v3, %v26_v7 }
  0x75   :  { %v19_v9 = vpop.xlane.xlu0 %18 }
  0x76   :  { %v29_v10 = vmul.f32 %v28_v8, %v19_v9 }
  0x78   :  { %v31_v11 = vsub.f32 %v14_v0, %v29_v10 }
  0x7a   :  { %v33_v12 = vmul.f32 %v31_v11, %v31_v11 }
  0x7c   :  { %35 = vadd.xlane.f32.xlu1 %v33_v12 }
  0x7d   :  { %v21_v13 = vpop.xlane.xlu0 %20 }
  0x7e   :  { %v30_v14 = vmul.f32 %v28_v8, %v21_v13 }
  0x80   :  { %v32_v15 = vsub.f32 %v15_v1, %v30_v14 }
  0x82   :  { %v34_v16 = vmul.f32 %v32_v15, %v32_v15 }
  0x84   :  { %37 = vadd.xlane.f32.xlu1 %v34_v16 }
  0xef   :  { %v36_v17 = vpop.xlane.xlu1 %35 }
  0xf0   :  { %v39_v18 = vmul.f32 %v36_v17, %v28_v8 }
  0xf2   :  { %v41_v19 = vadd.f32 1e-12, %v39_v18 }
  0xf4   :  { %86 = vrsqrt.f32 %v41_v19  ;;  %vm49_vm2 = vweird.f32 %v41_v19 }
  0xf7   :  { %v38_v20 = vpop.xlane.xlu1 %37 }
  0xf8   :  { %v40_v21 = vmul.f32 %v38_v20, %v28_v8 }
  0xfa   :  { %v87_v22 = vpop.eup %86  ;;  %v42_v23 = vadd.f32 1e-12, %v40_v21 }
  0xfb   :  { %v44_v24 = vmul.f32 %v87_v22, %v41_v19  ;;  %vm50_vm1 = vweird.f32 %v87_v22 }
  0xfc   :  { %88 = vrsqrt.f32 %v42_v23  ;;  %vm51_vm3 = vmor %vm49_vm2, %vm50_vm1  ;;  %vm59_vm5 = vweird.f32 %v42_v23 }
  0xfd   :  { %v45_v25 = vmul.f32 %v87_v22, %v44_v24 }
  0xff   :  { %v46_v26 = vmul.f32 0.5, %v45_v25 }
 0x101   :  { %v47_v27 = vsub.f32 1.5, %v46_v26 }
 0x102   :  { %v89_v28 = vpop.eup %88 }
 0x103   :  { %v48_v29 = vmul.f32 %v87_v22, %v47_v27  ;;  %v54_v30 = vmul.f32 %v89_v28, %v42_v23  ;;  %vm60_vm4 = vweird.f32 %v89_v28 }
 0x104   :  { %vm61_vm6 = vmor %vm59_vm5, %vm60_vm4 }
 0x105   :  { %v52_v32 = vsel %vm51_vm3, %v87_v22, %v48_v29  ;;  %v55_v33 = vmul.f32 %v89_v28, %v54_v30 }
 0x106   :  { %v63_v35 = vmul.f32 %v52_v32, %v31_v11 }
 0x107   :  { %v56_v36 = vmul.f32 0.5, %v55_v33 }
 0x108   :  { %v68_v37 = vmul.f32 %v82_v31, %v63_v35 }
 0x109   :  { %v57_v38 = vsub.f32 1.5, %v56_v36 }
 0x10a   :  { %v73_v39 = vadd.f32 %v83_v34, %v68_v37 }
 0x10b   :  { %v58_v40 = vmul.f32 %v89_v28, %v57_v38 }
 0x10c   :  { %75 = vst [vmem:[%s132_s3] sm:$0xff] %v73_v39 }
 0x10d   :  { %v62_v41 = vsel %vm61_vm6, %v89_v28, %v58_v40 }
 0x10e   :  { %v64_v42 = vmul.f32 %v62_v41, %v32_v15 }
 0x110   :  { %v69_v43 = vmul.f32 %v82_v31, %v64_v42 }
 0x112   :  { %v74_v44 = vadd.f32 %v83_v34, %v69_v43 }
 0x114   :  { %76 = vst [vmem:[%s132_s3 + $0x8] sm:$0xff] %v74_v44 }

// kernel: frustration_bert_forward.7
= control target key start
LH: loop header
LB: loop body
LE: loop exit
PB: predicated region body
PF: predicated region fallthrough
CT: control target
= control target key end

     0   :  { %s291_s0 = inlined_call_operand.vmem [shape: f32[2,128], index: 0, kind: input, shape index: {}]   ;;  %s292_s1 = inlined_call_operand.vmem [shape: f32[128,128], index: 1, kind: input, shape index: {}]   ;;  %s293_s2 = inlined_call_operand.vmem [shape: f32[1,128], index: 2, kind: input, shape index: {}]   ;;  %s294_s3 = inlined_call_operand.vmem [shape: f32[128,2], index: 3, kind: input, shape index: {}]   ;;  %s295_s4 = inlined_call_operand.vmem [shape: f32[1,2], index: 4, kind: input, shape index: {}]   ;;  %s296_s5 = inlined_call_operand.hbm [shape: f32[2,2], index: 5, kind: output, shape index: {}]  }
   0x1   :  { %v37_v0 = vld [vmem:[%s292_s1 + $0x78] sm:$0xff]  ;;  %v36_v1 = vld [vmem:[%s292_s1 + $0x70] sm:$0xff]  ;;  %v35_v2 = vld [vmem:[%s292_s1 + $0x68] sm:$0xff] }
   0x2   :  { %42 = vmatpush.msra.mxu0 %v37_v0  ;;  %v34_v3 = vld [vmem:[%s292_s1 + $0x60] sm:$0xff]  ;;  %v78_v4 = vld [vmem:[%s294_s3 + $0x78] sm:$0xff]  ;;  %v77_v6 = vld [vmem:[%s294_s3 + $0x70] sm:$0xff] }
   0x3   :  { %v33_v5 = vld [vmem:[%s292_s1 + $0x58] sm:$0xff]  ;;  %83 = vmatpush.msra.mxu1 %v78_v4  ;;  %v76_v7 = vld [vmem:[%s294_s3 + $0x68] sm:$0xff]  ;;  %v32_v8 = vld [vmem:[%s292_s1 + $0x50] sm:$0xff] }
   0x4   :  { %43 = vmatpush.msra.mxu0 %v36_v1  ;;  %v75_v9 = vld [vmem:[%s294_s3 + $0x60] sm:$0xff]  ;;  %v31_v10 = vld [vmem:[%s292_s1 + $0x48] sm:$0xff] }
   0x5   :  { %84 = vmatpush.msra.mxu1 %v77_v6 }
   0x6   :  { %44 = vmatpush.msra.mxu0 %v35_v2 }
   0x7   :  { %85 = vmatpush.msra.mxu1 %v76_v7 }
   0x8   :  { %45 = vmatpush.msra.mxu0 %v34_v3 }
   0xa   :  { %46 = vmatpush.msra.mxu0 %v33_v5 }
   0xb   :  { %10 = vsyncpa [#allocation3], 0  ;;  %v74_v11 = vld [vmem:[%s294_s3 + $0x58] sm:$0xff]  ;;  %v30_v12 = vld [vmem:[%s292_s1 + $0x40] sm:$0xff]  ;;  %86 = vmatpush.msra.mxu1 %v75_v9  ;;  %s152_s11 = smov [#allocation2]   ;;  %vm103_vm0 = vcmask 9216  }
   0xc   :  { %47 = vmatpush.msra.mxu0 %v32_v8  ;;  %v73_v13 = vld [vmem:[%s294_s3 + $0x50] sm:$0xff]  ;;  %v29_v14 = vld [vmem:[%s292_s1 + $0x38] sm:$0xff]  ;;  %v72_v15 = vld [vmem:[%s294_s3 + $0x48] sm:$0xff]  ;;  %s110_s12 = sshll.u32 %s152_s11, 4  ;;  %s111_s12 = int_to_ptr.vmem [resolvable:$true] %s110_s12 }
   0xd   :  { %87 = vmatpush.msra.mxu1 %v74_v11  ;;  %v28_v16 = vld [vmem:[%s292_s1 + $0x30] sm:$0xff]  ;;  %v71_v17 = vld [vmem:[%s294_s3 + $0x40] sm:$0xff]  ;;  %v27_v18 = vld [vmem:[%s292_s1 + $0x28] sm:$0xff] }
   0xe   :  { %48 = vmatpush.msra.mxu0 %v31_v10  ;;  %v70_v19 = vld [vmem:[%s294_s3 + $0x38] sm:$0xff]  ;;  %v26_v20 = vld [vmem:[%s292_s1 + $0x20] sm:$0xff]  ;;  %v69_v21 = vld [vmem:[%s294_s3 + $0x30] sm:$0xff] }
   0xf   :  { %88 = vmatpush.msra.mxu1 %v73_v13  ;;  %v25_v22 = vld [vmem:[%s292_s1 + $0x18] sm:$0xff]  ;;  %v68_v23 = vld [vmem:[%s294_s3 + $0x28] sm:$0xff]  ;;  %v24_v24 = vld [vmem:[%s292_s1 + $0x10] sm:$0xff] }
  0x10   :  { %49 = vmatpush.msra.mxu0 %v30_v12  ;;  %v23_v25 = vld [vmem:[%s292_s1 + $0x8] sm:$0xff]  ;;  %v22_v26 = vld [vmem:[%s292_s1] sm:$0xff]  ;;  %v66_v29 = vld [vmem:[%s294_s3 + $0x18] sm:$0xff] }
  0x11   :  { %89 = vmatpush.msra.mxu1 %v72_v15  ;;  %v21_v27 = vld [vmem:[%s291_s0] sm:$0x3]  ;;  %v65_v30 = vld [vmem:[%s294_s3 + $0x10] sm:$0xff]  ;;  %v64_v31 = vld [vmem:[%s294_s3 + $0x8] sm:$0xff] }
  0x12   :  { %50 = vmatpush.msra.mxu0 %v29_v14  ;;  %v67_v28 = vld [vmem:[%s294_s3 + $0x20] sm:$0xff] }
  0x13   :  { %90 = vmatpush.msra.mxu1 %v71_v17  ;;  %v63_v32 = vld [vmem:[%s294_s3] sm:$0xff]  ;;  %s112_s3 = sshll.u32 %s296_s5, 4  ;;  %s113_s3 = int_to_ptr.hbm [resolvable:$true] %s112_s3 }
  0x14   :  { %51 = vmatpush.msra.mxu0 %v28_v16  ;;  %v122_v33 = vld [vmem:[%s293_s2] ss:$0 sm:$0xff] }
  0x15   :  { %91 = vmatpush.msra.mxu1 %v70_v19  ;;  %v123_v37 = vld [vmem:[%s295_s4] ss:$0 sm:$0xff] }
  0x16   :  { %52 = vmatpush.msra.mxu0 %v27_v18 }
  0x17   :  { %92 = vmatpush.msra.mxu1 %v69_v21 }
  0x18   :  { %53 = vmatpush.msra.mxu0 %v26_v20 }
  0x19   :  { %93 = vmatpush.msra.mxu1 %v68_v23 }
  0x1a   :  { %54 = vmatpush.msra.mxu0 %v25_v22 }
  0x1b   :  { %94 = vmatpush.msra.mxu1 %v67_v28 }
  0x1c   :  { %55 = vmatpush.msra.mxu0 %v24_v24 }
  0x1d   :  { %95 = vmatpush.msra.mxu1 %v66_v29 }
  0x1e   :  { %56 = vmatpush.msra.mxu0 %v23_v25 }
  0x1f   :  { %96 = vmatpush.msra.mxu1 %v65_v30 }
  0x20   :  { %57 = vmatpush.msra.mxu0 %v22_v26 }
  0x21   :  { %58 = vmatmul.f32.vlgmr.msra.gmra.mxu0 %v21_v27  ;;  %97 = vmatpush.msra.mxu1 %v64_v31 }
  0x23   :  { %98 = vmatpush.msra.mxu1 %v63_v32 }
  0x9e   :  { %v59_v34 = vpop.f32.mrf.mxu0 }
  0x9f   :  { %v60_v35 = vadd.f32 %v122_v33, %v59_v34 }
  0xa1   :  { %124 = vtanh.f32 %v60_v35 }
  0xa7   :  { %v125_v36 = vpop.eup %124 }
  0xa8   :  { %99 = vmatmul.f32.vlgmr.msra.gmra.mxu1 %v125_v36 }
 0x125   :  { %v100_v38 = vpop.f32.mrf.mxu1 }
 0x126   :  { %v101_v39 = vadd.f32 %v123_v37, %v100_v38 }
 0x128   :  { %104 = vst.msk [vmem:[#allocation2] sm:$0x3] %vm103_vm0, %v101_v39 }
 0x129   :  { %115 = dma.vmem_to_hbm [thread:$0]  %s111_s12, 32, %s113_s3, [#allocation3]  }
 0x12a   :  { %150 = dma.done.wait [#allocation3], 32  }
 0x12b   :  { %151 = vsyncadd [#allocation3], 4294967264 }
 0x12c   :  { %120 = vsyncpa [#allocation3], 1 }

// kernel: frustration_bert_forward.5
= control target key start
LH: loop header
LB: loop body
LE: loop exit
PB: predicated region body
PF: predicated region fallthrough
CT: control target
= control target key end

     0   :  { %19 = vsyncpa [#allocation5], 0  ;;  %s2255_s0 = inlined_call_operand.vmem [shape: f32[16,128], index: 0, kind: input, shape index: {}]   ;;  %s2256_s1 = inlined_call_operand.vmem [shape: f32[2,8], index: 1, kind: input, shape index: {}]   ;;  %s2257_s2 = inlined_call_operand.hbm [shape: f32[128,768], index: 2, kind: input, shape index: {}]   ;;  %s2258_s3 = inlined_call_operand.vmem [shape: f32[1,768], index: 3, kind: input, shape index: {}]   ;;  %s2259_s4 = inlined_call_operand.vmem [shape: f32[256,128], index: 4, kind: input, shape index: {}]   ;;  %s2260_s5 = inlined_call_operand.vmem [shape: f32[1,128], index: 5, kind: input, shape index: {}]   ;;  %s2261_s6 = inlined_call_operand.vmem [shape: f32[1,128], index: 6, kind: input, shape index: {}]   ;;  %s2262_s7 = inlined_call_operand.vmem [shape: f32[1,128], index: 7, kind: input, shape index: {}]   ;;  %s2263_s8 = inlined_call_operand.hbm [shape: f32[128,512], index: 8, kind: input, shape index: {}]   ;;  %s2264_s9 = inlined_call_operand.vmem [shape: f32[1,512], index: 9, kind: input, shape index: {}]   ;;  %s2265_s10 = inlined_call_operand.hbm [shape: f32[512,128], index: 10, kind: input, shape index: {}]   ;;  %s2266_s11 = inlined_call_operand.vmem [shape: f32[1,128], index: 11, kind: input, shape index: {}]   ;;  %s2267_s12 = inlined_call_operand.vmem [shape: f32[1,128], index: 12, kind: input, shape index: {}]   ;;  %s2268_s13 = inlined_call_operand.vmem [shape: f32[1,128], index: 13, kind: input, shape index: {}]   ;;  %s2269_s14 = inlined_call_operand.vmem [shape: f32[16,128], index: 14, kind: output, shape index: {}]  }
   0x1   :  { %20 = vsyncpa [#allocation7], 0  ;;  %s52_s15 = sshll.u32 %s2263_s8, 4  ;;  %s1636_s16 = smov [#allocation6]   ;;  %s53_s15 = int_to_ptr.hbm [resolvable:$true] %s52_s15 }
   0x2   :  { %s54_s17 = sshll.u32 %s1636_s16, 4  ;;  %s29_s20 = sshll.u32 %s2257_s2, 4  ;;  %s55_s17 = int_to_ptr.vmem [resolvable:$true] %s54_s17  ;;  %s30_s20 = int_to_ptr.hbm [resolvable:$true] %s29_s20 }
   0x3   :  { %s1637_s21 = smov 512   ;;  %s1638_s22 = smov 32  }
   0x4   :  { %60 = dma.hbm_to_vmem [thread:$0]  %s53_s15, 8192, %s55_s17, [#allocation7], %s1637_s21, %s1637_s21, %s1638_s22  }
   0x5   :  { %s1639_s23 = smov [#allocation4]   ;;  %s1640_s25 = smov 768  }
   0x6   :  { %s31_s24 = sshll.u32 %s1639_s23, 4  ;;  %s1641_s26 = smov 48   ;;  %s32_s24 = int_to_ptr.vmem [resolvable:$true] %s31_s24 }
   0x7   :  { %37 = dma.hbm_to_vmem [thread:$0]  %s30_s20, 12288, %s32_s24, [#allocation5], %s1640_s25, %s1640_s25, %s1641_s26  }
   0x8   :  { %s67_s28 = sshll.u32 %s2265_s10, 4  ;;  %s1642_s29 = smov [#allocation8]   ;;  %s68_s28 = int_to_ptr.hbm [resolvable:$true] %s67_s28 }
   0x9   :  { %s69_s30 = sshll.u32 %s1642_s29, 4  ;;  %s1643_s16 = smov 128   ;;  %s70_s30 = int_to_ptr.vmem [resolvable:$true] %s69_s30 }
   0xa   :  { %s1644_s2 = smov 8  }
   0xb   :  { %75 = dma.hbm_to_vmem [thread:$0]  %s68_s28, 8192, %s70_s30, [#allocation7], %s1643_s16, %s1643_s16, %s1644_s2  }
   0xc   :  { %1632 = dma.done.wait [#allocation5], 12288  }
   0xd   :  { %1633 = vsyncadd [#allocation5], 4294955008 }
   0xe   :  { %1634 = dma.done.wait [#allocation7], 16384  }
   0xf   :  { %1635 = vsyncadd [#allocation7], 4294950912  ;;  %v186_v0 = vld [vmem:[#allocation4 + $0x2d0] sm:$0xff]  ;;  %v187_v1 = vld [vmem:[#allocation4 + $0x2d8] sm:$0xff]  ;;  %vm383_vm0 = vcmask 64512  }
  0x10   :  { %v180_v2 = vld [vmem:[#allocation4 + $0x2a0] sm:$0xff]  ;;  %206 = vmatpush.msra.mxu0 %v186_v0  ;;  %229 = vmatpush.msra.mxu1 %v187_v1  ;;  %v181_v3 = vld [vmem:[#allocation4 + $0x2a8] sm:$0xff]  ;;  %v174_v4 = vld [vmem:[#allocation4 + $0x270] sm:$0xff] }
  0x11   :  { %v175_v5 = vld [vmem:[#allocation4 + $0x278] sm:$0xff]  ;;  %v168_v6 = vld [vmem:[#allocation4 + $0x240] sm:$0xff]  ;;  %v169_v7 = vld [vmem:[#allocation4 + $0x248] sm:$0xff] }
  0x12   :  { %207 = vmatpush.msra.mxu0 %v180_v2  ;;  %230 = vmatpush.msra.mxu1 %v181_v3  ;;  %v162_v8 = vld [vmem:[#allocation4 + $0x210] sm:$0xff]  ;;  %v163_v9 = vld [vmem:[#allocation4 + $0x218] sm:$0xff]  ;;  %v156_v10 = vld [vmem:[#allocation4 + $0x1e0] sm:$0xff] }
  0x13   :  { %v157_v11 = vld [vmem:[#allocation4 + $0x1e8] sm:$0xff]  ;;  %v150_v12 = vld [vmem:[#allocation4 + $0x1b0] sm:$0xff]  ;;  %v151_v13 = vld [vmem:[#allocation4 + $0x1b8] sm:$0xff] }
  0x14   :  { %208 = vmatpush.msra.mxu0 %v174_v4  ;;  %231 = vmatpush.msra.mxu1 %v175_v5  ;;  %v189_v14 = vld [vmem:[#allocation4 + $0x2e8] sm:$0xff]  ;;  %v183_v15 = vld [vmem:[#allocation4 + $0x2b8] sm:$0xff]  ;;  %v144_v16 = vld [vmem:[#allocation4 + $0x180] sm:$0xff] }
  0x15   :  { %v145_v17 = vld [vmem:[#allocation4 + $0x188] sm:$0xff]  ;;  %275 = vmatpush.msra.mxu3 %v189_v14  ;;  %v138_v19 = vld [vmem:[#allocation4 + $0x150] sm:$0xff]  ;;  %v139_v20 = vld [vmem:[#allocation4 + $0x158] sm:$0xff] }
  0x16   :  { %209 = vmatpush.msra.mxu0 %v168_v6  ;;  %232 = vmatpush.msra.mxu1 %v169_v7  ;;  %v177_v18 = vld [vmem:[#allocation4 + $0x288] sm:$0xff]  ;;  %v171_v21 = vld [vmem:[#allocation4 + $0x258] sm:$0xff]  ;;  %v132_v22 = vld [vmem:[#allocation4 + $0x120] sm:$0xff] }
  0x17   :  { %276 = vmatpush.msra.mxu3 %v183_v15  ;;  %v133_v23 = vld [vmem:[#allocation4 + $0x128] sm:$0xff]  ;;  %v126_v24 = vld [vmem:[#allocation4 + $0xf0] sm:$0xff]  ;;  %v127_v25 = vld [vmem:[#allocation4 + $0xf8] sm:$0xff] }
  0x18   :  { %210 = vmatpush.msra.mxu0 %v162_v8  ;;  %233 = vmatpush.msra.mxu1 %v163_v9  ;;  %v165_v26 = vld [vmem:[#allocation4 + $0x228] sm:$0xff]  ;;  %v120_v27 = vld [vmem:[#allocation4 + $0xc0] sm:$0xff]  ;;  %v159_v28 = vld [vmem:[#allocation4 + $0x1f8] sm:$0xff] }
  0x19   :  { %277 = vmatpush.msra.mxu3 %v177_v18  ;;  %v121_v29 = vld [vmem:[#allocation4 + $0xc8] sm:$0xff]  ;;  %v114_v31 = vld [vmem:[#allocation4 + $0x90] sm:$0xff]  ;;  %v115_v32 = vld [vmem:[#allocation4 + $0x98] sm:$0xff] }
  0x1a   :  { %211 = vmatpush.msra.mxu0 %v156_v10  ;;  %234 = vmatpush.msra.mxu1 %v157_v11  ;;  %v153_v30 = vld [vmem:[#allocation4 + $0x1c8] sm:$0xff]  ;;  %v147_v33 = vld [vmem:[#allocation4 + $0x198] sm:$0xff]  ;;  %v108_v34 = vld [vmem:[#allocation4 + $0x60] sm:$0xff] }
  0x1b   :  { %278 = vmatpush.msra.mxu3 %v171_v21  ;;  %v109_v35 = vld [vmem:[#allocation4 + $0x68] sm:$0xff]  ;;  %v102_v37 = vld [vmem:[#allocation4 + $0x30] sm:$0xff]  ;;  %v103_v38 = vld [vmem:[#allocation4 + $0x38] sm:$0xff] }
  0x1c   :  { %212 = vmatpush.msra.mxu0 %v150_v12  ;;  %235 = vmatpush.msra.mxu1 %v151_v13  ;;  %v141_v36 = vld [vmem:[#allocation4 + $0x168] sm:$0xff]  ;;  %v135_v39 = vld [vmem:[#allocation4 + $0x138] sm:$0xff]  ;;  %v96_v40 = vld [vmem:[#allocation4] sm:$0xff] }
  0x1d   :  { %279 = vmatpush.msra.mxu3 %v165_v26  ;;  %v97_v41 = vld [vmem:[#allocation4 + $0x8] sm:$0xff]  ;;  %v1733_v42 = vld [vmem:[%s2255_s0] sm:$0xff]  ;;  %v190_v43 = vld [vmem:[#allocation4 + $0x2f0] sm:$0xff] }
  0x1e   :  { %213 = vmatpush.msra.mxu0 %v144_v16  ;;  %236 = vmatpush.msra.mxu1 %v145_v17  ;;  %v129_v44 = vld [vmem:[#allocation4 + $0x108] sm:$0xff]  ;;  %v184_v45 = vld [vmem:[#allocation4 + $0x2c0] sm:$0xff]  ;;  %v123_v46 = vld [vmem:[#allocation4 + $0xd8] sm:$0xff] }
  0x1f   :  { %280 = vmatpush.msra.mxu3 %v159_v28  ;;  %v178_v47 = vld [vmem:[#allocation4 + $0x290] sm:$0xff]  ;;  %v117_v48 = vld [vmem:[#allocation4 + $0xa8] sm:$0xff]  ;;  %v172_v49 = vld [vmem:[#allocation4 + $0x260] sm:$0xff] }
  0x20   :  { %214 = vmatpush.msra.mxu0 %v138_v19  ;;  %237 = vmatpush.msra.mxu1 %v139_v20  ;;  %v111_v50 = vld [vmem:[#allocation4 + $0x78] sm:$0xff]  ;;  %v166_v51 = vld [vmem:[#allocation4 + $0x230] sm:$0xff]  ;;  %v1740_v52 = vld [vmem:[%s2255_s0 + $0x8] sm:$0xff] }
  0x21   :  { %281 = vmatpush.msra.mxu3 %v153_v30  ;;  %v105_v53 = vld [vmem:[#allocation4 + $0x48] sm:$0xff]  ;;  %v160_v54 = vld [vmem:[#allocation4 + $0x200] sm:$0xff]  ;;  %v99_v56 = vld [vmem:[#allocation4 + $0x18] sm:$0xff] }
  0x22   :  { %215 = vmatpush.msra.mxu0 %v132_v22  ;;  %238 = vmatpush.msra.mxu1 %v133_v23  ;;  %v188_v55 = vld [vmem:[#allocation4 + $0x2e0] sm:$0xff]  ;;  %v154_v57 = vld [vmem:[#allocation4 + $0x1d0] sm:$0xff] }
  0x23   :  { %282 = vmatpush.msra.mxu3 %v147_v33  ;;  %252 = vmatpush.msra.mxu2 %v188_v55  ;;  %v182_v58 = vld [vmem:[#allocation4 + $0x2b0] sm:$0xff]  ;;  %v148_v59 = vld [vmem:[#allocation4 + $0x1a0] sm:$0xff]  ;;  %v161_v55 = vld [vmem:[#allocation4 + $0x208] sm:$0xff] }
  0x24   :  { %216 = vmatpush.msra.mxu0 %v126_v24  ;;  %239 = vmatpush.msra.mxu1 %v127_v25  ;;  %v176_v60 = vld [vmem:[#allocation4 + $0x280] sm:$0xff]  ;;  %v142_v61 = vld [vmem:[#allocation4 + $0x170] sm:$0xff] }
  0x25   :  { %283 = vmatpush.msra.mxu3 %v141_v36  ;;  %253 = vmatpush.msra.mxu2 %v182_v58  ;;  %v170_v62 = vld [vmem:[#allocation4 + $0x250] sm:$0xff]  ;;  %v136_v63 = vld [vmem:[#allocation4 + $0x140] sm:$0xff] }
  0x26   :  { %217 = vmatpush.msra.mxu0 %v120_v27  ;;  %240 = vmatpush.msra.mxu1 %v121_v29  ;;  %v164_v0 = vld [vmem:[#allocation4 + $0x220] sm:$0xff]  ;;  %v130_v1 = vld [vmem:[#allocation4 + $0x110] sm:$0xff] }
  0x27   :  { %284 = vmatpush.msra.mxu3 %v135_v39  ;;  %254 = vmatpush.msra.mxu2 %v176_v60  ;;  %v158_v2 = vld [vmem:[#allocation4 + $0x1f0] sm:$0xff]  ;;  %v124_v3 = vld [vmem:[#allocation4 + $0xe0] sm:$0xff] }
  0x28   :  { %218 = vmatpush.msra.mxu0 %v114_v31  ;;  %241 = vmatpush.msra.mxu1 %v115_v32  ;;  %v152_v4 = vld [vmem:[#allocation4 + $0x1c0] sm:$0xff]  ;;  %v118_v5 = vld [vmem:[#allocation4 + $0xb0] sm:$0xff] }
  0x29   :  { %285 = vmatpush.msra.mxu3 %v129_v44  ;;  %255 = vmatpush.msra.mxu2 %v170_v62  ;;  %v146_v6 = vld [vmem:[#allocation4 + $0x190] sm:$0xff]  ;;  %v112_v7 = vld [vmem:[#allocation4 + $0x80] sm:$0xff] }
  0x2a   :  { %219 = vmatpush.msra.mxu0 %v108_v34  ;;  %242 = vmatpush.msra.mxu1 %v109_v35  ;;  %v140_v8 = vld [vmem:[#allocation4 + $0x160] sm:$0xff]  ;;  %v106_v9 = vld [vmem:[#allocation4 + $0x50] sm:$0xff] }
  0x2b   :  { %286 = vmatpush.msra.mxu3 %v123_v46  ;;  %256 = vmatpush.msra.mxu2 %v164_v0  ;;  %v134_v10 = vld [vmem:[#allocation4 + $0x130] sm:$0xff]  ;;  %v100_v11 = vld [vmem:[#allocation4 + $0x20] sm:$0xff] }
  0x2c   :  { %220 = vmatpush.msra.mxu0 %v102_v37  ;;  %243 = vmatpush.msra.mxu1 %v103_v38  ;;  %v128_v12 = vld [vmem:[#allocation4 + $0x100] sm:$0xff]  ;;  %v122_v13 = vld [vmem:[#allocation4 + $0xd0] sm:$0xff] }
  0x2d   :  { %287 = vmatpush.msra.mxu3 %v117_v48  ;;  %257 = vmatpush.msra.mxu2 %v158_v2  ;;  %v116_v14 = vld [vmem:[#allocation4 + $0xa0] sm:$0xff]  ;;  %v110_v15 = vld [vmem:[#allocation4 + $0x70] sm:$0xff]  ;;  %v131_v2 = vld [vmem:[#allocation4 + $0x118] sm:$0xff] }
  0x2e   :  { %221 = vmatpush.msra.mxu0 %v96_v40  ;;  %244 = vmatpush.msra.mxu1 %v97_v41  ;;  %v104_v16 = vld [vmem:[#allocation4 + $0x40] sm:$0xff]  ;;  %v98_v17 = vld [vmem:[#allocation4 + $0x10] sm:$0xff] }
  0x2f   :  { %245 = vmatmul.f32.vlgmr.msra.gmra.mxu1 %v1733_v42  ;;  %222 = vmatmul.f32.vlgmr.msra.gmra.mxu0 %v1733_v42  ;;  %v1753_v18 = vld [vmem:[%s2258_s3] sm:$0x3f] }
  0x30   :  { %298 = vmatpush.msrb.mxu0 %v190_v43  ;;  %288 = vmatpush.msra.mxu3 %v111_v50  ;;  %v195_v19 = vperm.slane %v1753_v18, 1  ;;  %v194_v20 = vperm.slane %v1753_v18, 0  ;;  %v198_v26 = vperm.slane %v1753_v18, 4  ;;  %v197_v28 = vperm.slane %v1753_v18, 3  ;;  %v1510_v44 = vld [vmem:[%s2256_s1] ss:$0 sm:$0xff] }
  0x31   :  { %258 = vmatpush.msra.mxu2 %v152_v4  ;;  %v196_v37 = vperm.slane %v1753_v18, 2  ;;  %v185_v50 = vld [vmem:[#allocation4 + $0x2c8] sm:$0xff]  ;;  %v1511_v0 = vld [vmem:[%s2256_s1 + $0x1] ss:$0 sm:$0xff] }
  0x32   :  { %299 = vmatpush.msrb.mxu0 %v184_v45  ;;  %289 = vmatpush.msra.mxu3 %v105_v53  ;;  %v173_v53 = vld [vmem:[#allocation4 + $0x268] sm:$0xff] }
  0x33   :  { %259 = vmatpush.msra.mxu2 %v146_v6  ;;  %v125_v4 = vld [vmem:[#allocation4 + $0xe8] sm:$0xff] }
  0x34   :  { %300 = vmatpush.msrb.mxu0 %v178_v47  ;;  %290 = vmatpush.msra.mxu3 %v99_v56 }
  0x35   :  { %291 = vmatmul.f32.vlgmr.msra.gmra.mxu3 %v1733_v42  ;;  %260 = vmatpush.msra.mxu2 %v140_v8 }
  0x36   :  { %301 = vmatpush.msrb.mxu0 %v172_v49  ;;  %v191_v49 = vld [vmem:[#allocation4 + $0x2f8] sm:$0xff] }
  0x37   :  { %248 = vmatmul.f32.gmra.mxu1 %v1740_v52  ;;  %225 = vmatmul.f32.gmra.mxu0 %v1740_v52 }
  0x38   :  { %302 = vmatpush.msrb.mxu0 %v166_v51  ;;  %261 = vmatpush.msra.mxu2 %v134_v10  ;;  %v179_v51 = vld [vmem:[#allocation4 + $0x298] sm:$0xff] }
  0x39   :  { %321 = vmatpush.msrb.mxu1 %v191_v49  ;;  %v615_v49 = vld [vmem:[%s2259_s4 + $0x50] sm:$0xff] }
  0x3a   :  { %303 = vmatpush.msrb.mxu0 %v160_v54  ;;  %262 = vmatpush.msra.mxu2 %v128_v12  ;;  %v167_v54 = vld [vmem:[#allocation4 + $0x238] sm:$0xff]  ;;  %v113_v12 = vld [vmem:[#allocation4 + $0x88] sm:$0xff] }
  0x3b   :  { %322 = vmatpush.msrb.mxu1 %v185_v50 }
  0x3c   :  { %304 = vmatpush.msrb.mxu0 %v154_v57  ;;  %263 = vmatpush.msra.mxu2 %v122_v13  ;;  %v155_v57 = vld [vmem:[#allocation4 + $0x1d8] sm:$0xff] }
  0x3d   :  { %294 = vmatmul.f32.gmra.mxu3 %v1740_v52  ;;  %323 = vmatpush.msrb.mxu1 %v179_v51  ;;  %v107_v13 = vld [vmem:[#allocation4 + $0x58] sm:$0xff]  ;;  %v614_v51 = vld [vmem:[%s2259_s4 + $0x48] sm:$0xff] }
  0x3e   :  { %305 = vmatpush.msrb.mxu0 %v148_v59  ;;  %264 = vmatpush.msra.mxu2 %v116_v14  ;;  %v149_v59 = vld [vmem:[#allocation4 + $0x1a8] sm:$0xff] }
  0x3f   :  { %324 = vmatpush.msrb.mxu1 %v173_v53  ;;  %v101_v14 = vld [vmem:[#allocation4 + $0x28] sm:$0xff]  ;;  %v613_v53 = vld [vmem:[%s2259_s4 + $0x40] sm:$0xff] }
  0x40   :  { %306 = vmatpush.msrb.mxu0 %v142_v61  ;;  %265 = vmatpush.msra.mxu2 %v110_v15  ;;  %v143_v61 = vld [vmem:[#allocation4 + $0x178] sm:$0xff] }
  0x41   :  { %325 = vmatpush.msrb.mxu1 %v167_v54 }
  0x42   :  { %307 = vmatpush.msrb.mxu0 %v136_v63  ;;  %266 = vmatpush.msra.mxu2 %v104_v16  ;;  %v137_v63 = vld [vmem:[#allocation4 + $0x148] sm:$0xff] }
  0x43   :  { %326 = vmatpush.msrb.mxu1 %v161_v55 }
  0x44   :  { %308 = vmatpush.msrb.mxu0 %v130_v1  ;;  %267 = vmatpush.msra.mxu2 %v98_v17 }
  0x45   :  { %268 = vmatmul.f32.vlgmr.msra.gmra.mxu2 %v1733_v42  ;;  %327 = vmatpush.msrb.mxu1 %v155_v57 }
  0x46   :  { %309 = vmatpush.msrb.mxu0 %v124_v3 }
  0x47   :  { %328 = vmatpush.msrb.mxu1 %v149_v59  ;;  %v611_v59 = vld [vmem:[%s2259_s4 + $0x30] sm:$0xff] }
  0x48   :  { %310 = vmatpush.msrb.mxu0 %v118_v5 }
  0x49   :  { %329 = vmatpush.msrb.mxu1 %v143_v61  ;;  %v609_v61 = vld [vmem:[%s2259_s4 + $0x20] sm:$0xff] }
  0x4a   :  { %311 = vmatpush.msrb.mxu0 %v112_v7 }
  0x4b   :  { %330 = vmatpush.msrb.mxu1 %v137_v63 }
  0x4c   :  { %312 = vmatpush.msrb.mxu0 %v106_v9 }
  0x4d   :  { %271 = vmatmul.f32.gmra.mxu2 %v1740_v52  ;;  %331 = vmatpush.msrb.mxu1 %v131_v2  ;;  %v607_v2 = vld [vmem:[%s2259_s4 + $0x10] sm:$0xff] }
  0x4e   :  { %313 = vmatpush.msrb.mxu0 %v100_v11  ;;  %v119_v11 = vld [vmem:[#allocation4 + $0xb8] sm:$0xff] }
  0x4f   :  { %314 = vmatmul.f32.vlgmr.msrb.gmra.mxu0 %v1733_v42  ;;  %332 = vmatpush.msrb.mxu1 %v125_v4 }
  0x51   :  { %333 = vmatpush.msrb.mxu1 %v119_v11  ;;  %v632_v11 = vld [vmem:[%s2259_s4 + $0xd8] sm:$0xff] }
  0x53   :  { %334 = vmatpush.msrb.mxu1 %v113_v12  ;;  %v631_v12 = vld [vmem:[%s2259_s4 + $0xd0] sm:$0xff] }
  0x55   :  { %335 = vmatpush.msrb.mxu1 %v107_v13  ;;  %v630_v13 = vld [vmem:[%s2259_s4 + $0xc8] sm:$0xff] }
  0x57   :  { %317 = vmatmul.f32.gmra.mxu0 %v1740_v52  ;;  %336 = vmatpush.msrb.mxu1 %v101_v14  ;;  %v629_v14 = vld [vmem:[%s2259_s4 + $0xc0] sm:$0xff] }
  0x58   :  { %337 = vmatmul.f32.vlgmr.msrb.gmra.mxu1 %v1733_v42 }
  0x60   :  { %340 = vmatmul.f32.gmra.mxu1 %v1740_v52 }
  0xac   :  { %v246_v21 = vpop.f32.mrf.mxu1  ;;  %v223_v23 = vpop.f32.mrf.mxu0 }
  0xad   :  { %v247_v22 = vadd.f32 %v246_v21, %v195_v19  ;;  %v224_v24 = vadd.f32 %v223_v23, %v194_v20 }
  0xaf   :  { %375 = vmatpush.xpose.msrb.mxu2 %v247_v22 }
  0xb2   :  { %376 = vmatmul.f32.vlgmr.msrb.gmra.mxu2 %v224_v24 }
  0xb4   :  { %v226_v25 = vpop.f32.mrf.mxu0  ;;  %v249_v27 = vpop.f32.mrf.mxu1 }
  0xb5   :  { %v250_v31 = vadd.f32 %v249_v27, %v195_v19  ;;  %v227_v36 = vadd.f32 %v226_v25, %v194_v20 }
  0xb8   :  { %v292_v29 = vpop.f32.mrf.mxu3 }
  0xb9   :  { %v293_v33 = vadd.f32 %v292_v29, %v197_v28 }
  0xc0   :  { %v295_v38 = vpop.f32.mrf.mxu3 }
  0xc1   :  { %v296_v40 = vadd.f32 %v295_v38, %v197_v28 }
  0xc8   :  { %v269_v39 = vpop.f32.mrf.mxu2 }
  0xc9   :  { %v270_v41 = vadd.f32 %v269_v39, %v196_v37 }
  0xcb   :  { %413 = vmatpush.msrb.mxu3 %v270_v41 }
  0xcc   :  { %v315_v30 = vpop.f32.mrf.mxu0 }
  0xcd   :  { %v316_v32 = vadd.f32 %v315_v30, %v198_v26 }
  0xcf   :  { %437 = vmatpush.xpose.msra.mxu2 %v316_v32 }
  0xd0   :  { %v1762_v43 = vpop.f32.mrf.mxu2 }
  0xd2   :  { %438 = vmatmul.f32.vlgmr.msra.gmra.mxu2 %v293_v33 }
  0xd3   :  { %498 = vmatpush.xpose.msrb.mxu2 %v250_v31 }
  0xd4   :  { %v318_v34 = vpop.f32.mrf.mxu0 }
  0xd5   :  { %v319_v35 = vadd.f32 %v318_v34, %v198_v26  ;;  %v338_v38 = vpop.f32.mrf.mxu1 }
  0xd7   :  { %559 = vmatpush.xpose.msra.mxu2 %v319_v35 }
  0xda   :  { %499 = vmatmul.f32.vlgmr.msrb.gmra.mxu2 %v227_v36  ;;  %v199_v36 = vperm.slane %v1753_v18, 5  ;;  %v617_v18 = vld [vmem:[%s2259_s4 + $0x60] sm:$0xff] }
  0xdc   :  { %v339_v39 = vadd.f32 %v338_v38, %v199_v36 }
  0xdd   :  { %v341_v50 = vpop.f32.mrf.mxu1 }
  0xde   :  { %473 = vmatpush.msra.mxu3 %v339_v39  ;;  %v342_v55 = vadd.f32 %v341_v50, %v199_v36 }
  0xe2   :  { %560 = vmatmul.f32.vlgmr.msra.gmra.mxu2 %v296_v40 }
 0x135   :  { %v377_v45 = vpop.f32.mrf.mxu2 }
 0x136   :  { %v380_v46 = vmul.f32 0.125, %v377_v45  ;;  %v273_v45 = vadd.f32 %v1762_v43, %v196_v37  ;;  %v616_v43 = vld [vmem:[%s2259_s4 + $0x58] sm:$0xff] }
 0x138   :  { %v382_v47 = vadd.f32 %v1510_v44, %v380_v46  ;;  %v620_v46 = vld [vmem:[%s2259_s4 + $0x78] sm:$0xff] }
 0x139   :  { %641 = vmatpush.msra.mxu0 %v620_v46 }
 0x13a   :  { %v384_v48 = vsel %vm383_vm0, %v382_v47, -inf }
 0x13b   :  { %385 = vmax.xlane.f32.xlu0 %v384_v48  ;;  %v618_v48 = vld [vmem:[%s2259_s4 + $0x68] sm:$0xff] }
 0x155   :  { %v439_v56 = vpop.f32.mrf.mxu2 }
 0x156   :  { %v442_v58 = vmul.f32 0.125, %v439_v56 }
 0x158   :  { %v443_v60 = vadd.f32 %v1510_v44, %v442_v58  ;;  %v612_v58 = vld [vmem:[%s2259_s4 + $0x38] sm:$0xff] }
 0x15a   :  { %v444_v62 = vsel %vm383_vm0, %v443_v60, -inf }
 0x15b   :  { %445 = vmax.xlane.f32.xlu0 %v444_v62 }
 0x15d   :  { %v500_v1 = vpop.f32.mrf.mxu2 }
 0x15e   :  { %v503_v3 = vmul.f32 0.125, %v500_v1  ;;  %v608_v1 = vld [vmem:[%s2259_s4 + $0x18] sm:$0xff] }
 0x160   :  { %v505_v5 = vadd.f32 %v1511_v0, %v503_v3  ;;  %v606_v3 = vld [vmem:[%s2259_s4 + $0x8] sm:$0xff] }
 0x162   :  { %v506_v6 = vsel %vm383_vm0, %v505_v5, -inf }
 0x163   :  { %507 = vmax.xlane.f32.xlu1 %v506_v6  ;;  %v605_v6 = vld [vmem:[%s2259_s4] sm:$0xff] }
 0x165   :  { %v561_v7 = vpop.f32.mrf.mxu2 }
 0x166   :  { %v564_v8 = vmul.f32 0.125, %v561_v7  ;;  %v636_v7 = vld [vmem:[%s2259_s4 + $0xf8] sm:$0xff] }
 0x167   :  { %664 = vmatpush.msra.mxu1 %v636_v7  ;;  %v794_v7 = vld [vmem:[#allocation6 + $0x170] sm:$0xff] }
 0x168   :  { %v565_v9 = vadd.f32 %v1511_v0, %v564_v8  ;;  %v635_v8 = vld [vmem:[%s2259_s4 + $0xf0] sm:$0xff] }
 0x169   :  { %665 = vmatpush.msra.mxu1 %v635_v8  ;;  %v795_v8 = vld [vmem:[#allocation6 + $0x178] sm:$0xff] }
 0x16a   :  { %v566_v10 = vsel %vm383_vm0, %v565_v9, -inf }
 0x16b   :  { %567 = vmax.xlane.f32.xlu1 %v566_v10  ;;  %v633_v10 = vld [vmem:[%s2259_s4 + $0xe0] sm:$0xff] }
 0x1ae   :  { %v386_v15 = vpop.xlane.xlu0 %385 }
 0x1af   :  { %v387_v16 = vsub.f32 %v382_v47, %v386_v15  ;;  %v619_v47 = vld [vmem:[%s2259_s4 + $0x70] sm:$0xff]  ;;  %v628_v15 = vld [vmem:[%s2259_s4 + $0xb8] sm:$0xff] }
 0x1b0   :  { %642 = vmatpush.msra.mxu0 %v619_v47  ;;  %v808_v47 = vld [vmem:[#allocation6 + $0x1e0] sm:$0xff] }
 0x1b1   :  { %v388_v17 = vmul.f32 1.442695, %v387_v16  ;;  %v627_v16 = vld [vmem:[%s2259_s4 + $0xb0] sm:$0xff]  ;;  %822 = vmatpush.msrb.mxu2 %v808_v47 }
 0x1b2   :  { %643 = vmatpush.msra.mxu0 %v618_v48  ;;  %v809_v48 = vld [vmem:[#allocation6 + $0x1e8] sm:$0xff]  ;;  %v758_v47 = vld [vmem:[#allocation6 + $0x50] sm:$0xff] }
 0x1b3   :  { %1518 = vpow2.f32 %v388_v17  ;;  %v626_v17 = vld [vmem:[%s2259_s4 + $0xa8] sm:$0xff] }
 0x1b4   :  { %644 = vmatpush.msra.mxu0 %v617_v18  ;;  %v810_v18 = vld [vmem:[#allocation6 + $0x1f0] sm:$0xff] }
 0x1b6   :  { %645 = vmatpush.msra.mxu0 %v616_v43  ;;  %v806_v43 = vld [vmem:[#allocation6 + $0x1d0] sm:$0xff] }
 0x1b8   :  { %646 = vmatpush.msra.mxu0 %v615_v49  ;;  %v807_v49 = vld [vmem:[#allocation6 + $0x1d8] sm:$0xff] }
 0x1b9   :  { %v1519_v19 = vpop.eup %1518 }
 0x1ba   :  { %v390_v20 = vsel %vm383_vm0, %v1519_v19, 0.0  ;;  %647 = vmatpush.msra.mxu0 %v614_v51 }
 0x1bb   :  { %391 = vadd.xlane.f32.xlu2 %v390_v20  ;;  %v624_v20 = vld [vmem:[%s2259_s4 + $0x98] sm:$0xff] }
 0x1bc   :  { %648 = vmatpush.msra.mxu0 %v613_v53 }
 0x1be   :  { %649 = vmatpush.msra.mxu0 %v612_v58 }
 0x1c0   :  { %650 = vmatpush.msra.mxu0 %v611_v59 }
 0x1ce   :  { %v446_v21 = vpop.xlane.xlu0 %445 }
 0x1cf   :  { %v447_v22 = vsub.f32 %v443_v60, %v446_v21  ;;  %v610_v60 = vld [vmem:[%s2259_s4 + $0x28] sm:$0xff]  ;;  %v623_v21 = vld [vmem:[%s2259_s4 + $0x90] sm:$0xff] }
 0x1d0   :  { %651 = vmatpush.msra.mxu0 %v610_v60  ;;  %v805_v60 = vld [vmem:[#allocation6 + $0x1c8] sm:$0xff] }
 0x1d1   :  { %v448_v23 = vmul.f32 1.442695, %v447_v22  ;;  %v622_v22 = vld [vmem:[%s2259_s4 + $0x88] sm:$0xff] }
 0x1d2   :  { %652 = vmatpush.msra.mxu0 %v609_v61  ;;  %v800_v61 = vld [vmem:[#allocation6 + $0x1a0] sm:$0xff] }
 0x1d3   :  { %1520 = vpow2.f32 %v448_v23  ;;  %v621_v23 = vld [vmem:[%s2259_s4 + $0x80] sm:$0xff] }
 0x1d4   :  { %653 = vmatpush.msra.mxu0 %v608_v1  ;;  %v796_v1 = vld [vmem:[#allocation6 + $0x180] sm:$0xff] }
 0x1d6   :  { %v508_v24 = vpop.xlane.xlu1 %507  ;;  %654 = vmatpush.msra.mxu0 %v607_v2  ;;  %v797_v2 = vld [vmem:[#allocation6 + $0x188] sm:$0xff] }
 0x1d7   :  { %v509_v25 = vsub.f32 %v505_v5, %v508_v24 }
 0x1d8   :  { %655 = vmatpush.msra.mxu0 %v606_v3  ;;  %v798_v3 = vld [vmem:[#allocation6 + $0x190] sm:$0xff] }
 0x1d9   :  { %v1521_v26 = vpop.eup %1520  ;;  %v510_v27 = vmul.f32 1.442695, %v509_v25 }
 0x1da   :  { %v450_v28 = vsel %vm383_vm0, %v1521_v26, 0.0  ;;  %656 = vmatpush.msra.mxu0 %v605_v6  ;;  %v793_v6 = vld [vmem:[#allocation6 + $0x168] sm:$0xff] }
 0x1db   :  { %1522 = vpow2.f32 %v510_v27  ;;  %451 = vadd.xlane.f32.xlu2 %v450_v28  ;;  %v1512_v28 = vld [vmem:[%s2260_s5] ss:$0 sm:$0xff] }
 0x1dc   :  { %868 = vmatpush.msrb.mxu0 %v810_v18  ;;  %v752_v18 = vld [vmem:[#allocation6 + $0x20] sm:$0xff] }
 0x1de   :  { %v568_v29 = vpop.xlane.xlu1 %567  ;;  %869 = vmatpush.msrb.mxu0 %v806_v43  ;;  %v755_v43 = vld [vmem:[#allocation6 + $0x38] sm:$0xff] }
 0x1df   :  { %v569_v30 = vsub.f32 %v565_v9, %v568_v29  ;;  %v634_v9 = vld [vmem:[%s2259_s4 + $0xe8] sm:$0xff] }
 0x1e0   :  { %666 = vmatpush.msra.mxu1 %v634_v9  ;;  %v788_v9 = vld [vmem:[#allocation6 + $0x140] sm:$0xff] }
 0x1e1   :  { %v1523_v31 = vpop.eup %1522  ;;  %v570_v32 = vmul.f32 1.442695, %v569_v30 }
 0x1e2   :  { %v512_v33 = vsel %vm383_vm0, %v1523_v31, 0.0  ;;  %667 = vmatpush.msra.mxu1 %v633_v10  ;;  %v789_v10 = vld [vmem:[#allocation6 + $0x148] sm:$0xff] }
 0x1e3   :  { %1524 = vpow2.f32 %v570_v32  ;;  %513 = vadd.xlane.f32.xlu0 %v512_v33 }
 0x1e4   :  { %668 = vmatpush.msra.mxu1 %v632_v11  ;;  %v790_v11 = vld [vmem:[#allocation6 + $0x150] sm:$0xff] }
 0x1e6   :  { %669 = vmatpush.msra.mxu1 %v631_v12  ;;  %v791_v12 = vld [vmem:[#allocation6 + $0x158] sm:$0xff] }
 0x1e8   :  { %670 = vmatpush.msra.mxu1 %v630_v13  ;;  %v784_v13 = vld [vmem:[#allocation6 + $0x120] sm:$0xff] }
 0x1e9   :  { %v1525_v34 = vpop.eup %1524 }
 0x1ea   :  { %v572_v35 = vsel %vm383_vm0, %v1525_v34, 0.0  ;;  %671 = vmatpush.msra.mxu1 %v629_v14  ;;  %v785_v14 = vld [vmem:[#allocation6 + $0x128] sm:$0xff] }
 0x1eb   :  { %573 = vadd.xlane.f32.xlu1 %v572_v35 }
 0x1ec   :  { %672 = vmatpush.msra.mxu1 %v628_v15  ;;  %v786_v15 = vld [vmem:[#allocation6 + $0x130] sm:$0xff] }
 0x1ee   :  { %673 = vmatpush.msra.mxu1 %v627_v16  ;;  %v787_v16 = vld [vmem:[#allocation6 + $0x138] sm:$0xff] }
 0x1f0   :  { %674 = vmatpush.msra.mxu1 %v626_v17  ;;  %v780_v17 = vld [vmem:[#allocation6 + $0x100] sm:$0xff] }
 0x22e   :  { %v392_v40 = vpop.xlane.xlu2 %391 }
 0x22f   :  { %1526 = vrcp.f32 %v392_v40  ;;  %v1645_v40 = vmov 128.0  }
 0x235   :  { %v1527_v41 = vpop.eup %1526 }
 0x236   :  { %v394_v44 = vmul.f32 %v1527_v41, %v1519_v19  ;;  %v625_v19 = vld [vmem:[%s2259_s4 + $0xa0] sm:$0xff] }
 0x237   :  { %675 = vmatpush.msra.mxu1 %v625_v19  ;;  %v781_v19 = vld [vmem:[#allocation6 + $0x108] sm:$0xff] }
 0x238   :  { %1488 = vmatmul.msk.f32.vlgmr.msrb.gmra.mxu3 %vm383_vm0, %v394_v44 }
 0x239   :  { %535 = vmatpush.msrb.mxu3 %v273_v45  ;;  %676 = vmatpush.msra.mxu1 %v624_v20  ;;  %v782_v20 = vld [vmem:[#allocation6 + $0x110] sm:$0xff] }
 0x23b   :  { %677 = vmatpush.msra.mxu1 %v623_v21  ;;  %v783_v21 = vld [vmem:[#allocation6 + $0x118] sm:$0xff] }
 0x23d   :  { %678 = vmatpush.msra.mxu1 %v622_v22  ;;  %v776_v22 = vld [vmem:[#allocation6 + $0xe0] sm:$0xff] }
 0x23f   :  { %679 = vmatpush.msra.mxu1 %v621_v23  ;;  %v777_v23 = vld [vmem:[#allocation6 + $0xe8] sm:$0xff] }
 0x24e   :  { %v452_v37 = vpop.xlane.xlu2 %451 }
 0x24f   :  { %1528 = vrcp.f32 %v452_v37  ;;  %v804_v37 = vld [vmem:[#allocation6 + $0x1c0] sm:$0xff] }
 0x250   :  { %823 = vmatpush.msrb.mxu2 %v804_v37  ;;  %v754_v37 = vld [vmem:[#allocation6 + $0x30] sm:$0xff] }
 0x252   :  { %824 = vmatpush.msrb.mxu2 %v800_v61 }
 0x254   :  { %825 = vmatpush.msrb.mxu2 %v796_v1 }
 0x255   :  { %v1529_v54 = vpop.eup %1528 }
 0x256   :  { %v454_v56 = vmul.f32 %v1529_v54, %v1521_v26  ;;  %v514_v57 = vpop.xlane.xlu0 %513 }
 0x257   :  { %1530 = vrcp.f32 %v514_v57 }
 0x258   :  { %1489 = vmatmul.msk.f32.vlgmr.msra.gmra.mxu3 %vm383_vm0, %v454_v56 }
 0x259   :  { %595 = vmatpush.msra.mxu3 %v342_v55 }
 0x25d   :  { %v1531_v62 = vpop.eup %1530 }
 0x25e   :  { %v516_v63 = vmul.f32 %v1531_v62, %v1523_v31  ;;  %v574_v0 = vpop.xlane.xlu1 %573  ;;  %v801_v62 = vld [vmem:[#allocation6 + $0x1a8] sm:$0xff] }
 0x25f   :  { %1532 = vrcp.f32 %v574_v0  ;;  %v803_v0 = vld [vmem:[#allocation6 + $0x1b8] sm:$0xff] }
 0x260   :  { %1490 = vmatmul.msk.f32.vlgmr.msrb.gmra.mxu3 %vm383_vm0, %v516_v63  ;;  %1534 = vrcp.f32 %v1645_v40  ;;  %v802_v63 = vld [vmem:[#allocation6 + $0x1b0] sm:$0xff]  ;;  %v761_v40 = vld [vmem:[#allocation6 + $0x68] sm:$0xff] }
 0x261   :  { %845 = vmatpush.msrb.mxu3 %v809_v48  ;;  %870 = vmatpush.msrb.mxu0 %v802_v63  ;;  %v759_v48 = vld [vmem:[#allocation6 + $0x58] sm:$0xff] }
 0x263   :  { %846 = vmatpush.msrb.mxu3 %v805_v60  ;;  %871 = vmatpush.msrb.mxu0 %v798_v3 }
 0x265   :  { %v1533_v4 = vpop.eup %1532  ;;  %847 = vmatpush.msrb.mxu3 %v801_v62  ;;  %872 = vmatpush.msrb.mxu0 %v794_v7  ;;  %v1514_v7 = vld [vmem:[%s2262_s7] ss:$0 sm:$0xff] }
 0x266   :  { %v576_v5 = vmul.f32 %v1533_v4, %v1525_v34  ;;  %v1535_v41 = vpop.eup %1534  ;;  %v799_v4 = vld [vmem:[#allocation6 + $0x198] sm:$0xff] }
 0x267   :  { %v696_v44 = vmul.f32 128.0, %v1535_v41  ;;  %vm700_vm1 = vweird.f32 %v1535_v41  ;;  %848 = vmatpush.msrb.mxu3 %v797_v2  ;;  %873 = vmatpush.msrb.mxu0 %v790_v11 }
 0x268   :  { %1491 = vmatmul.msk.f32.vlgmr.msra.gmra.mxu3 %vm383_vm0, %v576_v5  ;;  %v792_v5 = vld [vmem:[#allocation6 + $0x160] sm:$0xff] }
 0x269   :  { %v697_v45 = vsub.f32 1.0, %v696_v44  ;;  %826 = vmatpush.msrb.mxu2 %v792_v5  ;;  %849 = vmatpush.msrb.mxu3 %v793_v6  ;;  %v763_v44 = vld [vmem:[#allocation6 + $0x78] sm:$0xff] }
 0x26a   :  { %874 = vmatpush.msrb.mxu0 %v786_v15 }
 0x26b   :  { %v698_v46 = vmul.f32 %v1535_v41, %v697_v45  ;;  %827 = vmatpush.msrb.mxu2 %v788_v9  ;;  %850 = vmatpush.msrb.mxu3 %v789_v10  ;;  %v756_v45 = vld [vmem:[#allocation6 + $0x40] sm:$0xff] }
 0x26c   :  { %875 = vmatpush.msrb.mxu0 %v782_v20  ;;  %v1926_v20 = vld [vmem:[%s2264_s9] sm:$0xf] }
 0x26d   :  { %v699_v50 = vadd.f32 %v1535_v41, %v698_v46  ;;  %828 = vmatpush.msrb.mxu2 %v784_v13  ;;  %851 = vmatpush.msrb.mxu3 %v785_v14  ;;  %v757_v46 = vld [vmem:[#allocation6 + $0x48] sm:$0xff] }
 0x26f   :  { %829 = vmatpush.msrb.mxu2 %v780_v17  ;;  %852 = vmatpush.msrb.mxu3 %v781_v19 }
 0x271   :  { %830 = vmatpush.msrb.mxu2 %v776_v22  ;;  %853 = vmatpush.msrb.mxu3 %v777_v23 }
 0x2bb   :  { %v415_v24 = vpop.f32.mrf.mxu3 }
 0x2bc   :  { %657 = vmatmul.f32.vlgmr.msra.gmra.mxu0 %v415_v24  ;;  %v778_v24 = vld [vmem:[#allocation6 + $0xf0] sm:$0xff] }
 0x2bd   :  { %876 = vmatpush.msrb.mxu0 %v778_v24 }
 0x2db   :  { %v475_v25 = vpop.f32.mrf.mxu3 }
 0x2dc   :  { %680 = vmatmul.f32.vlgmr.msra.gmra.mxu1 %v475_v25  ;;  %v779_v25 = vld [vmem:[#allocation6 + $0xf8] sm:$0xff] }
 0x2e3   :  { %v537_v26 = vpop.f32.mrf.mxu3 }
 0x2e4   :  { %660 = vmatmul.f32.gmra.mxu0 %v537_v26  ;;  %v772_v26 = vld [vmem:[#allocation6 + $0xc0] sm:$0xff] }
 0x2e5   :  { %831 = vmatpush.msrb.mxu2 %v772_v26  ;;  %v814_v26 = vperm.slane %v1926_v20, 0 }
 0x2eb   :  { %v597_v27 = vpop.f32.mrf.mxu3 }
 0x2ec   :  { %683 = vmatmul.f32.gmra.mxu1 %v597_v27  ;;  %v773_v27 = vld [vmem:[#allocation6 + $0xc8] sm:$0xff] }
 0x2ed   :  { %854 = vmatpush.msrb.mxu3 %v773_v27  ;;  %v815_v27 = vperm.slane %v1926_v20, 1 }
 0x339   :  { %v658_v29 = vpop.f32.mrf.mxu0 }
 0x33a   :  { %v659_v30 = vadd.f32 %v1512_v28, %v658_v29  ;;  %v775_v29 = vld [vmem:[#allocation6 + $0xd8] sm:$0xff] }
 0x359   :  { %v681_v31 = vpop.f32.mrf.mxu1 }
 0x35a   :  { %v682_v32 = vadd.f32 %v681_v31, %v659_v30  ;;  %v768_v30 = vld [vmem:[#allocation6 + $0xa0] sm:$0xff]  ;;  %v769_v31 = vld [vmem:[#allocation6 + $0xa8] sm:$0xff] }
 0x35b   :  { %832 = vmatpush.msrb.mxu2 %v768_v30  ;;  %855 = vmatpush.msrb.mxu3 %v769_v31 }
 0x35c   :  { %v687_v33 = vadd.f32 %v682_v32, %v1733_v42  ;;  %v811_v42 = vld [vmem:[#allocation6 + $0x1f8] sm:$0xff]  ;;  %v770_v32 = vld [vmem:[#allocation6 + $0xb0] sm:$0xff] }
 0x35d   :  { %891 = vmatpush.msrb.mxu1 %v811_v42  ;;  %v753_v42 = vld [vmem:[#allocation6 + $0x28] sm:$0xff] }
 0x35e   :  { %691 = vadd.xlane.f32.xlu2 %v687_v33 }
 0x35f   :  { %892 = vmatpush.msrb.mxu1 %v807_v49  ;;  %v748_v49 = vld [vmem:[#allocation6] sm:$0xff] }
 0x361   :  { %v661_v34 = vpop.f32.mrf.mxu0  ;;  %893 = vmatpush.msrb.mxu1 %v803_v0 }
 0x362   :  { %v662_v35 = vadd.f32 %v1512_v28, %v661_v34  ;;  %v774_v28 = vld [vmem:[#allocation6 + $0xd0] sm:$0xff]  ;;  %v764_v34 = vld [vmem:[#allocation6 + $0x80] sm:$0xff] }
 0x363   :  { %894 = vmatpush.msrb.mxu1 %v799_v4  ;;  %877 = vmatpush.msrb.mxu0 %v774_v28  ;;  %v1513_v4 = vld [vmem:[%s2261_s6] ss:$0 sm:$0xff] }
 0x364   :  { %833 = vmatpush.msrb.mxu2 %v764_v34 }
 0x365   :  { %895 = vmatpush.msrb.mxu1 %v795_v8  ;;  %878 = vmatpush.msrb.mxu0 %v770_v32 }
 0x367   :  { %896 = vmatpush.msrb.mxu1 %v791_v12 }
 0x369   :  { %v684_v36 = vpop.f32.mrf.mxu1  ;;  %897 = vmatpush.msrb.mxu1 %v787_v16 }
 0x36a   :  { %v685_v38 = vadd.f32 %v684_v36, %v662_v35  ;;  %v765_v35 = vld [vmem:[#allocation6 + $0x88] sm:$0xff]  ;;  %v766_v36 = vld [vmem:[#allocation6 + $0x90] sm:$0xff] }
 0x36b   :  { %898 = vmatpush.msrb.mxu1 %v783_v21  ;;  %856 = vmatpush.msrb.mxu3 %v765_v35  ;;  %v816_v21 = vperm.slane %v1926_v20, 2 }
 0x36c   :  { %v688_v39 = vadd.f32 %v685_v38, %v1740_v52  ;;  %v1889_v52 = vsel %vm700_vm1, %v1535_v41, %v699_v50  ;;  %v767_v38 = vld [vmem:[#allocation6 + $0x98] sm:$0xff]  ;;  %879 = vmatpush.msrb.mxu0 %v766_v36  ;;  %v762_v41 = vld [vmem:[#allocation6 + $0x70] sm:$0xff]  ;;  %v749_v50 = vld [vmem:[#allocation6 + $0x8] sm:$0xff] }
 0x36d   :  { %899 = vmatpush.msrb.mxu1 %v779_v25  ;;  %857 = vmatpush.msrb.mxu3 %v761_v40 }
 0x36e   :  { %693 = vadd.xlane.f32.xlu0 %v688_v39  ;;  %880 = vmatpush.msrb.mxu0 %v762_v41 }
 0x36f   :  { %900 = vmatpush.msrb.mxu1 %v775_v29  ;;  %858 = vmatpush.msrb.mxu3 %v757_v46 }
 0x370   :  { %881 = vmatpush.msrb.mxu0 %v758_v47 }
 0x371   :  { %859 = vmatpush.msrb.mxu3 %v753_v42 }
 0x372   :  { %882 = vmatpush.msrb.mxu0 %v754_v37 }
 0x373   :  { %860 = vmatpush.msrb.mxu3 %v749_v50 }
 0x3d1   :  { %v692_v51 = vpop.xlane.xlu2 %691 }
 0x3d2   :  { %v702_v53 = vmul.f32 %v1889_v52, %v692_v51  ;;  %v750_v51 = vld [vmem:[#allocation6 + $0x10] sm:$0xff] }
 0x3d3   :  { %883 = vmatpush.msrb.mxu0 %v750_v51 }
 0x3d4   :  { %v1892_v54 = vsub.f32 %v687_v33, %v702_v53  ;;  %v771_v33 = vld [vmem:[#allocation6 + $0xb8] sm:$0xff] }
 0x3d5   :  { %901 = vmatpush.msrb.mxu1 %v771_v33  ;;  %v751_v53 = vld [vmem:[#allocation6 + $0x18] sm:$0xff] }
 0x3d6   :  { %v706_v55 = vmul.f32 %v1892_v54, %v1892_v54 }
 0x3d7   :  { %902 = vmatpush.msrb.mxu1 %v767_v38 }
 0x3d8   :  { %708 = vadd.xlane.f32.xlu1 %v706_v55 }
 0x3d9   :  { %903 = vmatpush.msrb.mxu1 %v763_v44 }
 0x3db   :  { %904 = vmatpush.msrb.mxu1 %v759_v48 }
 0x3dd   :  { %905 = vmatpush.msrb.mxu1 %v755_v43 }
 0x3df   :  { %906 = vmatpush.msrb.mxu1 %v751_v53 }
 0x3e1   :  { %v694_v56 = vpop.xlane.xlu0 %693 }
 0x3e2   :  { %v703_v57 = vmul.f32 %v1889_v52, %v694_v56 }
 0x3e4   :  { %v1897_v58 = vsub.f32 %v688_v39, %v703_v57  ;;  %v760_v39 = vld [vmem:[#allocation6 + $0x60] sm:$0xff] }
 0x3e5   :  { %834 = vmatpush.msrb.mxu2 %v760_v39 }
 0x3e6   :  { %v707_v59 = vmul.f32 %v1897_v58, %v1897_v58 }
 0x3e7   :  { %835 = vmatpush.msrb.mxu2 %v756_v45 }
 0x3e8   :  { %710 = vadd.xlane.f32.xlu2 %v707_v59 }
 0x3e9   :  { %836 = vmatpush.msrb.mxu2 %v752_v18 }
 0x3eb   :  { %837 = vmatpush.msrb.mxu2 %v748_v49 }
 0x44b   :  { %v709_v55 = vpop.xlane.xlu1 %708 }
 0x44c   :  { %v712_v56 = vmul.f32 %v709_v55, %v1889_v52 }
 0x44e   :  { %v714_v57 = vadd.f32 1e-12, %v712_v56 }
 0x450   :  { %1536 = vrsqrt.f32 %v714_v57  ;;  %vm722_vm3 = vweird.f32 %v714_v57 }
 0x456   :  { %v1537_v59 = vpop.eup %1536 }
 0x457   :  { %v717_v60 = vmul.f32 %v1537_v59, %v714_v57  ;;  %vm723_vm2 = vweird.f32 %v1537_v59 }
 0x458   :  { %vm724_vm4 = vmor %vm722_vm3, %vm723_vm2 }
 0x459   :  { %v718_v61 = vmul.f32 %v1537_v59, %v717_v60 }
 0x45b   :  { %v719_v62 = vmul.f32 0.5, %v718_v61  ;;  %v711_v63 = vpop.xlane.xlu2 %710 }
 0x45c   :  { %v713_v0 = vmul.f32 %v711_v63, %v1889_v52 }
 0x45d   :  { %v720_v1 = vsub.f32 1.5, %v719_v62 }
 0x45e   :  { %v715_v2 = vadd.f32 1e-12, %v713_v0 }
 0x45f   :  { %v721_v3 = vmul.f32 %v1537_v59, %v720_v1 }
 0x460   :  { %1538 = vrsqrt.f32 %v715_v2  ;;  %vm732_vm6 = vweird.f32 %v715_v2 }
 0x461   :  { %v725_v5 = vsel %vm724_vm4, %v1537_v59, %v721_v3 }
 0x462   :  { %v736_v6 = vmul.f32 %v725_v5, %v1892_v54 }
 0x464   :  { %v741_v8 = vmul.f32 %v1513_v4, %v736_v6 }
 0x466   :  { %v1539_v9 = vpop.eup %1538  ;;  %v1910_v10 = vadd.f32 %v1514_v7, %v741_v8  ;;  %v1329_v8 = vld [vmem:[#allocation8 + $0x1f8] sm:$0xff] }
 0x467   :  { %v727_v11 = vmul.f32 %v1539_v9, %v715_v2  ;;  %vm733_vm5 = vweird.f32 %v1539_v9  ;;  %1403 = vmatpush.msra.mxu1 %v1329_v8 }
 0x468   :  { %838 = vmatmul.f32.vlgmr.msrb.gmra.mxu2 %v1910_v10  ;;  %861 = vmatmul.f32.vlgmr.msrb.gmra.mxu3 %v1910_v10  ;;  %vm734_vm7 = vmor %vm732_vm6, %vm733_vm5 }
 0x469   :  { %v728_v12 = vmul.f32 %v1539_v9, %v727_v11  ;;  %884 = vmatmul.f32.vlgmr.msrb.gmra.mxu0 %v1910_v10  ;;  %907 = vmatmul.f32.vlgmr.msrb.gmra.mxu1 %v1910_v10 }
 0x46b   :  { %v729_v13 = vmul.f32 0.5, %v728_v12 }
 0x46d   :  { %v730_v54 = vsub.f32 1.5, %v729_v13 }
 0x46f   :  { %v731_v14 = vmul.f32 %v1539_v9, %v730_v54 }
 0x471   :  { %v735_v15 = vsel %vm734_vm7, %v1539_v9, %v731_v14  ;;  %v1312_v9 = vld [vmem:[#allocation8 + $0x170] sm:$0xff] }
 0x472   :  { %v737_v16 = vmul.f32 %v735_v15, %v1897_v58  ;;  %v817_v58 = vperm.slane %v1926_v20, 3  ;;  %v1328_v14 = vld [vmem:[#allocation8 + $0x1f0] sm:$0xff]  ;;  %v1270_v20 = vld [vmem:[#allocation8 + $0x20] sm:$0xff] }
 0x473   :  { %1404 = vmatpush.msra.mxu1 %v1328_v14  ;;  %v1308_v14 = vld [vmem:[#allocation8 + $0x150] sm:$0xff] }
 0x474   :  { %v742_v17 = vmul.f32 %v1513_v4, %v737_v16 }
 0x476   :  { %v1917_v19 = vadd.f32 %v1514_v7, %v742_v17  ;;  %v1313_v7 = vld [vmem:[#allocation8 + $0x178] sm:$0xff] }
 0x477   :  { %1380 = vmatpush.msra.mxu0 %v1313_v7 }
 0x478   :  { %841 = vmatmul.f32.gmra.mxu2 %v1917_v19  ;;  %864 = vmatmul.f32.gmra.mxu3 %v1917_v19 }
 0x479   :  { %887 = vmatmul.f32.gmra.mxu0 %v1917_v19  ;;  %910 = vmatmul.f32.gmra.mxu1 %v1917_v19 }
 0x47a   :  { %1381 = vmatpush.msra.mxu0 %v1312_v9  ;;  %v1325_v9 = vld [vmem:[#allocation8 + $0x1d8] sm:$0xff] }
 0x4e6   :  { %v885_v22 = vpop.f32.mrf.mxu0  ;;  %v908_v23 = vpop.f32.mrf.mxu1 }
 0x4e7   :  { %v1932_v24 = vadd.f32 %v885_v22, %v816_v21  ;;  %v1936_v25 = vadd.f32 %v908_v23, %v817_v58 }
 0x4e9   :  { %v1941_v28 = vmul.f32 0.70710677, %v1932_v24  ;;  %v1944_v29 = vmul.f32 0.70710677, %v1936_v25 }
 0x4eb   :  { %v1010_v30 = vmul.f32 %v1941_v28, %v1941_v28  ;;  %v1050_v31 = vmul.f32 %v1944_v29, %v1944_v29  ;;  %v839_v32 = vpop.f32.mrf.mxu2  ;;  %v862_v33 = vpop.f32.mrf.mxu3 }
 0x4ec   :  { %v1952_v34 = vadd.f32 %v839_v32, %v814_v26  ;;  %v1956_v35 = vadd.f32 %v862_v33, %v815_v27 }
 0x4ed   :  { %v1958_v36 = vmin.f32 %v1010_v30, 16.0  ;;  %v1960_v38 = vmin.f32 %v1050_v31, 16.0 }
 0x4ee   :  { %v1963_v39 = vmul.f32 0.70710677, %v1952_v34  ;;  %v1966_v40 = vmul.f32 0.70710677, %v1956_v35 }
 0x4ef   :  { %v1012_v41 = vmul.f32 2.1237322e-06, %v1958_v36  ;;  %v1023_v44 = vmul.f32 3.8918573e-05, %v1958_v36  ;;  %v1052_v45 = vmul.f32 2.1237322e-06, %v1960_v38 }
 0x4f0   :  { %v1063_v46 = vmul.f32 3.8918573e-05, %v1960_v38  ;;  %v930_v47 = vmul.f32 %v1963_v39, %v1963_v39  ;;  %v970_v48 = vmul.f32 %v1966_v40, %v1966_v40 }
 0x4f1   :  { %v1013_v18 = vadd.f32 0.00028619796, %v1012_v41  ;;  %v1024_v42 = vadd.f32 0.001143296, %v1023_v44  ;;  %v1053_v37 = vadd.f32 0.00028619796, %v1052_v45 }
 0x4f2   :  { %v1064_v43 = vadd.f32 0.001143296, %v1063_v46  ;;  %v1976_v49 = vmin.f32 %v930_v47, 16.0  ;;  %v1978_v50 = vmin.f32 %v970_v48, 16.0  ;;  %v1311_v45 = vld [vmem:[#allocation8 + $0x168] sm:$0xff]  ;;  %v1281_v47 = vld [vmem:[#allocation8 + $0x78] sm:$0xff] }
 0x4f3   :  { %v1014_v51 = vmul.f32 %v1013_v18, %v1958_v36  ;;  %v1025_v53 = vmul.f32 %v1024_v42, %v1958_v36  ;;  %v1054_v55 = vmul.f32 %v1053_v37, %v1960_v38  ;;  %v1327_v46 = vld [vmem:[#allocation8 + $0x1e8] sm:$0xff]  ;;  %1382 = vmatpush.msra.mxu0 %v1311_v45  ;;  %1334 = vmatpush.msra.mxu2 %v1281_v47  ;;  %v1277_v45 = vld [vmem:[#allocation8 + $0x58] sm:$0xff] }
 0x4f4   :  { %v1065_v56 = vmul.f32 %v1064_v43, %v1960_v38  ;;  %v932_v57 = vmul.f32 2.1237322e-06, %v1976_v49  ;;  %v943_v59 = vmul.f32 3.8918573e-05, %v1976_v49  ;;  %v972_v60 = vmul.f32 2.1237322e-06, %v1978_v50  ;;  %1405 = vmatpush.msra.mxu1 %v1327_v46 }
 0x4f5   :  { %v1015_v61 = vadd.f32 0.0036580483, %v1014_v51  ;;  %v1026_v62 = vadd.f32 0.014752088, %v1025_v53  ;;  %v1055_v63 = vadd.f32 0.0036580483, %v1054_v55 }
 0x4f6   :  { %v1066_v0 = vadd.f32 0.014752088, %v1065_v56  ;;  %v933_v1 = vadd.f32 0.00028619796, %v932_v57  ;;  %v944_v2 = vadd.f32 0.001143296, %v943_v59 }
 0x4f7   :  { %v1016_v3 = vmul.f32 %v1015_v61, %v1958_v36  ;;  %v1027_v4 = vmul.f32 %v1026_v62, %v1958_v36  ;;  %v1056_v5 = vmul.f32 %v1055_v63, %v1960_v38  ;;  %v973_v6 = vadd.f32 0.00028619796, %v972_v60  ;;  %v1297_v43 = vld [vmem:[#allocation8 + $0xf8] sm:$0xff]  ;;  %v1310_v51 = vld [vmem:[#allocation8 + $0x160] sm:$0xff] }
 0x4f8   :  { %v1067_v11 = vmul.f32 %v1066_v0, %v1960_v38  ;;  %v934_v12 = vmul.f32 %v933_v1, %v1976_v49  ;;  %v945_v13 = vmul.f32 %v944_v2, %v1976_v49  ;;  %v983_v54 = vmul.f32 3.8918573e-05, %v1978_v50  ;;  %v1326_v53 = vld [vmem:[#allocation8 + $0x1e0] sm:$0xff]  ;;  %1357 = vmatpush.msra.mxu3 %v1297_v43  ;;  %1383 = vmatpush.msra.mxu0 %v1310_v51  ;;  %v1280_v2 = vld [vmem:[#allocation8 + $0x70] sm:$0xff]  ;;  %v1293_v46 = vld [vmem:[#allocation8 + $0xd8] sm:$0xff] }
 0x4f9   :  { %v1017_v15 = vadd.f32 0.05243302, %v1016_v3  ;;  %v1028_v16 = vadd.f32 0.112945676, %v1027_v4  ;;  %v1057_v17 = vadd.f32 0.05243302, %v1056_v5  ;;  %v974_v22 = vmul.f32 %v973_v6, %v1978_v50  ;;  %1406 = vmatpush.msra.mxu1 %v1326_v53  ;;  %1335 = vmatpush.msra.mxu2 %v1280_v2 }
 0x4fa   :  { %v1068_v23 = vadd.f32 0.112945676, %v1067_v11  ;;  %v935_v30 = vadd.f32 0.0036580483, %v934_v12  ;;  %v946_v31 = vadd.f32 0.014752088, %v945_v13 }
 0x4fb   :  { %v1018_v32 = vmul.f32 %v1017_v15, %v1958_v36  ;;  %v1029_v33 = vmul.f32 %v1028_v16, %v1958_v36  ;;  %v1058_v41 = vmul.f32 %v1057_v17, %v1960_v38  ;;  %v975_v44 = vadd.f32 0.0036580483, %v974_v22  ;;  %v1296_v3 = vld [vmem:[#allocation8 + $0xf0] sm:$0xff]  ;;  %v1309_v4 = vld [vmem:[#allocation8 + $0x158] sm:$0xff]  ;;  %v1279_v11 = vld [vmem:[#allocation8 + $0x68] sm:$0xff]  ;;  %1407 = vmatpush.msra.mxu1 %v1325_v9 }
 0x4fc   :  { %v1069_v48 = vmul.f32 %v1068_v23, %v1960_v38  ;;  %v936_v18 = vmul.f32 %v935_v30, %v1976_v49  ;;  %v947_v42 = vmul.f32 %v946_v31, %v1976_v49  ;;  %v984_v37 = vadd.f32 0.001143296, %v983_v54  ;;  %1358 = vmatpush.msra.mxu3 %v1296_v3  ;;  %v1295_v12 = vld [vmem:[#allocation8 + $0xe8] sm:$0xff]  ;;  %1384 = vmatpush.msra.mxu0 %v1309_v4  ;;  %v1324_v23 = vld [vmem:[#allocation8 + $0x1d0] sm:$0xff]  ;;  %v1278_v31 = vld [vmem:[#allocation8 + $0x60] sm:$0xff] }
 0x4fd   :  { %v1019_v55 = vadd.f32 0.18741608, %v1018_v32  ;;  %v1030_v56 = vadd.f32 0.4994258, %v1029_v33  ;;  %v1059_v57 = vadd.f32 0.18741608, %v1058_v41  ;;  %v976_v59 = vmul.f32 %v975_v44, %v1978_v50  ;;  %1336 = vmatpush.msra.mxu2 %v1279_v11  ;;  %1408 = vmatpush.msra.mxu1 %v1324_v23 }
 0x4fe   :  { %v1070_v60 = vadd.f32 0.4994258, %v1069_v48  ;;  %v937_v61 = vadd.f32 0.05243302, %v936_v18  ;;  %v948_v62 = vadd.f32 0.112945676, %v947_v42  ;;  %v985_v63 = vmul.f32 %v984_v37, %v1978_v50  ;;  %1359 = vmatpush.msra.mxu3 %v1295_v12  ;;  %1385 = vmatpush.msra.mxu0 %v1308_v14 }
 0x4ff   :  { %v1020_v0 = vmul.f32 %v1019_v55, %v1958_v36  ;;  %v1031_v1 = vmul.f32 %v1030_v56, %v1958_v36  ;;  %v1060_v54 = vmul.f32 %v1059_v57, %v1960_v38  ;;  %v888_v36 = vpop.f32.mrf.mxu0  ;;  %v977_v17 = vadd.f32 0.05243302, %v976_v59  ;;  %v1307_v32 = vld [vmem:[#allocation8 + $0x148] sm:$0xff]  ;;  %1337 = vmatpush.msra.mxu2 %v1278_v31  ;;  %v1306_v48 = vld [vmem:[#allocation8 + $0x140] sm:$0xff]  ;;  %v1292_v57 = vld [vmem:[#allocation8 + $0xd0] sm:$0xff] }
 0x500   :  { %v1071_v5 = vmul.f32 %v1070_v60, %v1960_v38  ;;  %v938_v6 = vmul.f32 %v937_v61, %v1976_v49  ;;  %v949_v7 = vmul.f32 %v948_v62, %v1976_v49  ;;  %v986_v8 = vadd.f32 0.014752088, %v985_v63  ;;  %v1294_v38 = vld [vmem:[#allocation8 + $0xe0] sm:$0xff]  ;;  %v1323_v44 = vld [vmem:[#allocation8 + $0x1c8] sm:$0xff]  ;;  %1386 = vmatpush.msra.mxu0 %v1307_v32  ;;  %v911_v62 = vpop.f32.mrf.mxu1  ;;  %v1304_v4 = vld [vmem:[#allocation8 + $0x130] sm:$0xff] }
 0x501   :  { %v2008_v13 = vadd.f32 1.0, %v1031_v1  ;;  %v1021_v30 = vadd.f32 1.1283791, %v1020_v0  ;;  %v2018_v41 = vadd.f32 %v888_v36, %v816_v21  ;;  %1360 = vmatpush.msra.mxu3 %v1294_v38  ;;  %v1061_v47 = vadd.f32 1.1283791, %v1060_v54  ;;  %1409 = vmatpush.msra.mxu1 %v1323_v44  ;;  %v1322_v18 = vld [vmem:[#allocation8 + $0x1c0] sm:$0xff] }
 0x502   :  { %v2011_v15 = vadd.f32 1.0, %v1071_v5  ;;  %v950_v16 = vadd.f32 0.4994258, %v949_v7  ;;  %v987_v22 = vmul.f32 %v986_v8, %v1978_v50  ;;  %v939_v33 = vadd.f32 0.18741608, %v938_v6  ;;  %1338 = vmatpush.msra.mxu2 %v1277_v45  ;;  %v1276_v21 = vld [vmem:[#allocation8 + $0x50] sm:$0xff]  ;;  %1387 = vmatpush.msra.mxu0 %v1306_v48  ;;  %v865_v45 = vpop.f32.mrf.mxu3 }
 0x503   :  { %1540 = vrcp.f32 %v2008_v13  ;;  %v2021_v42 = vmul.f32 0.5, %v1932_v24  ;;  %v1042_v37 = vand.u32 2147483647, %v2008_v13  ;;  %1361 = vmatpush.msra.mxu3 %v1293_v46  ;;  %v2026_v53 = vmul.f32 %v1021_v30, %v1941_v28  ;;  %1410 = vmatpush.msra.mxu1 %v1322_v18  ;;  %v1275_v63 = vld [vmem:[#allocation8 + $0x48] sm:$0xff]  ;;  %v1320_v5 = vld [vmem:[#allocation8 + $0x1b0] sm:$0xff]  ;;  %v1290_v9 = vld [vmem:[#allocation8 + $0xc0] sm:$0xff] }
 0x504   :  { %1542 = vrcp.f32 %v2011_v15  ;;  %v951_v43 = vmul.f32 %v950_v16, %v1976_v49  ;;  %v988_v51 = vadd.f32 0.112945676, %v987_v22  ;;  %v2029_v55 = vmul.f32 0.5, %v1936_v25  ;;  %1339 = vmatpush.msra.mxu2 %v1276_v21  ;;  %v1305_v25 = vld [vmem:[#allocation8 + $0x138] sm:$0xff]  ;;  %v1291_v3 = vld [vmem:[#allocation8 + $0xc8] sm:$0xff]  ;;  %v842_v16 = vpop.f32.mrf.mxu2  ;;  %v1302_v46 = vld [vmem:[#allocation8 + $0x120] sm:$0xff] }
 0x505   :  { %v2032_v56 = vmul.f32 0.5, %v1952_v34  ;;  %v978_v24 = vmul.f32 %v977_v17, %v1978_v50  ;;  %v940_v59 = vmul.f32 %v939_v33, %v1976_v49  ;;  %v2040_v28 = vmul.f32 0.70710677, %v2018_v41  ;;  %1362 = vmatpush.msra.mxu3 %v1292_v57  ;;  %v1321_v34 = vld [vmem:[#allocation8 + $0x1b8] sm:$0xff]  ;;  %1388 = vmatpush.msra.mxu0 %v1305_v25  ;;  %v1303_v11 = vld [vmem:[#allocation8 + $0x128] sm:$0xff]  ;;  %v1288_v21 = vld [vmem:[#allocation8 + $0xb0] sm:$0xff] }
 0x506   :  { %v2036_v60 = vadd.f32 1.0, %v951_v43  ;;  %v989_v61 = vmul.f32 %v988_v51, %v1978_v50  ;;  %vm1038_vm8 = vweird.f32 %v2008_v13  ;;  %v1044_v1 = vand.u32 2147483648, %v2008_v13  ;;  %1411 = vmatpush.msra.mxu1 %v1321_v34  ;;  %1340 = vmatpush.msra.mxu2 %v1275_v63  ;;  %v1319_v17 = vld [vmem:[#allocation8 + $0x1a8] sm:$0xff]  ;;  %v1273_v22 = vld [vmem:[#allocation8 + $0x38] sm:$0xff]  ;;  %v1272_v51 = vld [vmem:[#allocation8 + $0x30] sm:$0xff] }
 0x507   :  { %v2047_v49 = vmul.f32 %v1061_v47, %v1944_v29  ;;  %v1082_v2 = vand.u32 2147483647, %v2011_v15  ;;  %vm2054_vm9 = vcmp.eq.f32.partialorder %v1042_v37, 8.507059e+37  ;;  %vm1078_vm10 = vweird.f32 %v2011_v15  ;;  %v1274_v29 = vld [vmem:[#allocation8 + $0x40] sm:$0xff]  ;;  %1363 = vmatpush.msra.mxu3 %v1291_v3  ;;  %1389 = vmatpush.msra.mxu0 %v1304_v4  ;;  %v1289_v32 = vld [vmem:[#allocation8 + $0xb8] sm:$0xff]  ;;  %v1287_v3 = vld [vmem:[#allocation8 + $0xa8] sm:$0xff] }
 0x508   :  { %1544 = vrcp.f32 %v2036_v60  ;;  %v1084_v54 = vand.u32 2147483648, %v2011_v15  ;;  %v979_v36 = vadd.f32 0.18741608, %v978_v24  ;;  %v2065_v14 = vadd.f32 %v911_v62, %v817_v58  ;;  %1412 = vmatpush.msra.mxu1 %v1320_v5  ;;  %1341 = vmatpush.msra.mxu2 %v1274_v29  ;;  %v1318_v47 = vld [vmem:[#allocation8 + $0x1a0] sm:$0xff]  ;;  %v1301_v24 = vld [vmem:[#allocation8 + $0x118] sm:$0xff]  ;;  %v1316_v29 = vld [vmem:[#allocation8 + $0x190] sm:$0xff] }
 0x509   :  { %v2042_v0 = vpop.eup %1540  ;;  %v941_v30 = vadd.f32 1.1283791, %v940_v59  ;;  %v990_v31 = vadd.f32 0.4994258, %v989_v61  ;;  %v1170_v38 = vmul.f32 %v2040_v28, %v2040_v28  ;;  %v1045_v33 = vor.u32 1.1754944e-38, %v1044_v1  ;;  %1364 = vmatpush.msra.mxu3 %v1290_v9  ;;  %1390 = vmatpush.msra.mxu0 %v1303_v11  ;;  %v1317_v62 = vld [vmem:[#allocation8 + $0x198] sm:$0xff] }
 0x50a   :  { %v2050_v6 = vpop.eup %1542  ;;  %v1034_v7 = vmul.f32 %v2042_v0, %v2008_v13  ;;  %vm1039_vm11 = vweird.f32 %v2042_v0  ;;  %vm2070_vm12 = vcmp.eq.f32.partialorder %v1082_v2, 8.507059e+37  ;;  %v2080_v43 = vadd.f32 %v842_v16, %v814_v26  ;;  %1413 = vmatpush.msra.mxu1 %v1319_v17  ;;  %1342 = vmatpush.msra.mxu2 %v1273_v22  ;;  %v1271_v2 = vld [vmem:[#allocation8 + $0x28] sm:$0xff]  ;;  %v1269_v22 = vld [vmem:[#allocation8 + $0x18] sm:$0xff]  ;;  %v1268_v58 = vld [vmem:[#allocation8 + $0x10] sm:$0xff] }
 0x50b   :  { %v1074_v12 = vmul.f32 %v2050_v6, %v2011_v15  ;;  %v991_v18 = vmul.f32 %v990_v31, %v1978_v50  ;;  %v2076_v37 = vmin.f32 %v1170_v38, 16.0  ;;  %vm1079_vm13 = vweird.f32 %v2050_v6  ;;  %1365 = vmatpush.msra.mxu3 %v1289_v32  ;;  %1391 = vmatpush.msra.mxu0 %v1302_v46  ;;  %vm2095_vm14 = vmor %vm1038_vm8, %vm1039_vm11  ;;  %v1315_v17 = vld [vmem:[#allocation8 + $0x188] sm:$0xff]  ;;  %v1285_v38 = vld [vmem:[#allocation8 + $0x98] sm:$0xff] }
 0x50c   :  { %v1035_v23 = vsub.f32 1.0, %v1034_v7  ;;  %v980_v59 = vmul.f32 %v979_v36, %v1978_v50  ;;  %v2086_v61 = vmul.f32 0.70710677, %v2065_v14  ;;  %v2100_v50 = vmul.f32 %v941_v30, %v1963_v39  ;;  %1414 = vmatpush.msra.mxu1 %v1318_v47  ;;  %1343 = vmatpush.msra.mxu2 %v1272_v51  ;;  %v1300_v7 = vld [vmem:[#allocation8 + $0x110] sm:$0xff]  ;;  %vm2120_vm15 = vmor %vm1078_vm10, %vm1079_vm13  ;;  %v1299_v36 = vld [vmem:[#allocation8 + $0x108] sm:$0xff] }
 0x50d   :  { %v1075_v44 = vsub.f32 1.0, %v1074_v12  ;;  %v2102_v63 = vadd.f32 1.0, %v991_v18  ;;  %v2106_v1 = vadd.f32 %v865_v45, %v815_v27  ;;  %v1085_v13 = vor.u32 1.1754944e-38, %v1084_v54  ;;  %1366 = vmatpush.msra.mxu3 %v1288_v21  ;;  %1392 = vmatpush.msra.mxu0 %v1301_v24  ;;  %v1286_v54 = vld [vmem:[#allocation8 + $0xa0] sm:$0xff]  ;;  %v1284_v18 = vld [vmem:[#allocation8 + $0x90] sm:$0xff]  ;;  %v1283_v34 = vld [vmem:[#allocation8 + $0x88] sm:$0xff] }
 0x50e   :  { %v1036_v48 = vmul.f32 %v2042_v0, %v1035_v23  ;;  %v2088_v25 = vpop.eup %1544  ;;  %v1210_v39 = vmul.f32 %v2086_v61, %v2086_v61  ;;  %v1172_v11 = vmul.f32 2.1237322e-06, %v2076_v37  ;;  %v2127_v12 = vmul.f32 0.70710677, %v2080_v43  ;;  %1415 = vmatpush.msra.mxu1 %v1317_v62  ;;  %1344 = vmatpush.msra.mxu2 %v1271_v2 }
 0x50f   :  { %v1076_v57 = vmul.f32 %v2050_v6, %v1075_v44  ;;  %v954_v5 = vmul.f32 %v2088_v25, %v2036_v60  ;;  %1546 = vrcp.f32 %v2102_v63  ;;  %vm958_vm0 = vweird.f32 %v2036_v60  ;;  %1367 = vmatpush.msra.mxu3 %v1287_v3  ;;  %1393 = vmatpush.msra.mxu0 %v1300_v7 }
 0x510   :  { %v1037_v26 = vadd.f32 %v2042_v0, %v1036_v48  ;;  %v962_v31 = vand.u32 2147483647, %v2036_v60  ;;  %v964_v8 = vand.u32 2147483648, %v2036_v60  ;;  %1416 = vmatpush.msra.mxu1 %v1316_v29  ;;  %1345 = vmatpush.msra.mxu2 %v1270_v20  ;;  %vm959_vm1 = vweird.f32 %v2088_v25 }
 0x511   :  { %v1077_v4 = vadd.f32 %v2050_v6, %v1076_v57  ;;  %v955_v16 = vsub.f32 1.0, %v954_v5  ;;  %v2143_v44 = vmin.f32 %v1210_v39, 16.0  ;;  %1368 = vmatpush.msra.mxu3 %v1286_v54  ;;  %1394 = vmatpush.msra.mxu0 %v1299_v36  ;;  %v981_v46 = vadd.f32 1.1283791, %v980_v59  ;;  %v1267_v57 = vld [vmem:[#allocation8 + $0x8] sm:$0xff]  ;;  %vm960_vm2 = vmor %vm958_vm0, %vm959_vm1  ;;  %v1266_v39 = vld [vmem:[#allocation8] sm:$0xff] }
 0x512   :  { %v1041_v27 = vsel %vm2095_vm14, %v2042_v0, %v1037_v26  ;;  %v1173_v47 = vadd.f32 0.00028619796, %v1172_v11  ;;  %v1090_v48 = vmul.f32 %v2127_v12, %v2127_v12  ;;  %1417 = vmatpush.msra.mxu1 %v1315_v17  ;;  %1346 = vmatpush.msra.mxu2 %v1269_v22  ;;  %v2150_v24 = vmul.f32 0.70710677, %v2106_v1 }
 0x513   :  { %v1046_v0 = vsel %vm2054_vm9, %v1045_v33, %v1041_v27  ;;  %v1081_v15 = vsel %vm2120_vm15, %v2050_v6, %v1077_v4  ;;  %v1298_v6 = vld [vmem:[#allocation8 + $0x100] sm:$0xff]  ;;  %v956_v33 = vmul.f32 %v2088_v25, %v955_v16  ;;  %v1212_v21 = vmul.f32 2.1237322e-06, %v2143_v44  ;;  %1369 = vmatpush.msra.mxu3 %v1285_v38 }
 0x514   :  { %v1047_v23 = vmul.f32 %v1046_v0, %v2026_v53  ;;  %v1086_v30 = vsel %vm2070_vm12, %v1085_v13, %v1081_v15  ;;  %v1314_v53 = vld [vmem:[#allocation8 + $0x180] sm:$0xff]  ;;  %1395 = vmatpush.msra.mxu0 %v1298_v6  ;;  %vm963_vm3 = vcmp.eq.f32.partialorder %v962_v31, 8.507059e+37  ;;  %v965_v26 = vor.u32 1.1754944e-38, %v964_v8  ;;  %1347 = vmatpush.msra.mxu2 %v1268_v58 }
 0x515   :  { %v1087_v32 = vmul.f32 %v1086_v30, %v2047_v49  ;;  %v957_v51 = vadd.f32 %v2088_v25, %v956_v33  ;;  %v1547_v62 = vpop.eup %1546  ;;  %1418 = vmatpush.msra.mxu1 %v1314_v53  ;;  %v1183_v2 = vmul.f32 3.8918573e-05, %v2076_v37  ;;  %v2159_v5 = vmin.f32 %v1090_v48, 16.0  ;;  %1370 = vmatpush.msra.mxu3 %v1284_v18  ;;  %v1282_v27 = vld [vmem:[#allocation8 + $0x80] sm:$0xff] }
 0x516   :  { %v1494_v45 = vclamps-f32 %v1047_v23, 1.0  ;;  %v994_v13 = vmul.f32 %v1547_v62, %v2102_v63  ;;  %v1174_v29 = vmul.f32 %v1173_v47, %v2076_v37  ;;  %v1213_v20 = vadd.f32 0.00028619796, %v1212_v21  ;;  %1348 = vmatpush.msra.mxu2 %v1267_v57 }
 0x517   :  { %v1495_v49 = vclamps-f32 %v1087_v32, 1.0  ;;  %v961_v4 = vsel %vm960_vm2, %v2088_v25, %v957_v51  ;;  %v1130_v25 = vmul.f32 %v2150_v24, %v2150_v24  ;;  %1371 = vmatpush.msra.mxu3 %v1283_v34  ;;  %vm999_vm4 = vweird.f32 %v1547_v62 }
 0x518   :  { %v1252_v59 = vadd.f32 1.0, %v1494_v45  ;;  %v966_v60 = vsel %vm963_vm3, %v965_v26, %v961_v4  ;;  %v995_v54 = vsub.f32 1.0, %v994_v13  ;;  %v1002_v36 = vand.u32 2147483647, %v2102_v63  ;;  %1349 = vmatpush.msra.mxu2 %v1266_v39 }
 0x519   :  { %v1253_v3 = vadd.f32 1.0, %v1495_v49  ;;  %v967_v11 = vmul.f32 %v966_v60, %v2100_v50  ;;  %v1184_v0 = vadd.f32 0.001143296, %v1183_v2  ;;  %v1092_v17 = vmul.f32 2.1237322e-06, %v2159_v5  ;;  %1372 = vmatpush.msra.mxu3 %v1282_v27 }
 0x51a   :  { %v1260_v7 = vmul.f32 %v1252_v59, %v2021_v42  ;;  %v1004_v42 = vand.u32 2147483648, %v2102_v63  ;;  %v996_v16 = vmul.f32 %v1547_v62, %v995_v54  ;;  %vm998_vm5 = vweird.f32 %v2102_v63 }
 0x51b   :  { %v1261_v9 = vmul.f32 %v1253_v3, %v2029_v55  ;;  %v1492_v15 = vclamps-f32 %v967_v11, 1.0  ;;  %v1223_v55 = vmul.f32 3.8918573e-05, %v2143_v44  ;;  %v1175_v50 = vadd.f32 0.0036580483, %v1174_v29  ;;  %vm1000_vm6 = vmor %vm998_vm5, %vm999_vm4 }
 0x51c   :  { %1396 = vmatmul.f32.vlgmr.msra.gmra.mxu0 %v1260_v7  ;;  %v1214_v22 = vmul.f32 %v1213_v20, %v2143_v44  ;;  %v1185_v23 = vmul.f32 %v1184_v0, %v2076_v37  ;;  %v997_v31 = vadd.f32 %v1547_v62, %v996_v16  ;;  %v2174_v8 = vmin.f32 %v1130_v25, 16.0 }
 0x51d   :  { %1419 = vmatmul.f32.vlgmr.msra.gmra.mxu1 %v1261_v9  ;;  %v1250_v30 = vadd.f32 1.0, %v1492_v15  ;;  %v1224_v38 = vadd.f32 0.001143296, %v1223_v55  ;;  %v982_v6 = vmul.f32 %v981_v46, %v1966_v40  ;;  %vm1003_vm7 = vcmp.eq.f32.partialorder %v1002_v36, 8.507059e+37 }
 0x51e   :  { %v1005_v32 = vor.u32 1.1754944e-38, %v1004_v42  ;;  %v1186_v33 = vadd.f32 0.014752088, %v1185_v23  ;;  %v1001_v63 = vsel %vm1000_vm6, %v1547_v62, %v997_v31  ;;  %v1093_v58 = vadd.f32 0.00028619796, %v1092_v17 }
 0x51f   :  { %v1258_v53 = vmul.f32 %v1250_v30, %v2032_v56  ;;  %v1225_v45 = vmul.f32 %v1224_v38, %v2143_v44  ;;  %v1176_v48 = vmul.f32 %v1175_v50, %v2076_v37  ;;  %v1215_v18 = vadd.f32 0.0036580483, %v1214_v22 }
 0x520   :  { %v1006_v47 = vsel %vm1003_vm7, %v1005_v32, %v1001_v63  ;;  %v1132_v51 = vmul.f32 2.1237322e-06, %v2174_v8  ;;  %v1187_v40 = vmul.f32 %v1186_v33, %v2076_v37  ;;  %v1103_v21 = vmul.f32 3.8918573e-05, %v2159_v5 }
 0x521   :  { %v1007_v49 = vmul.f32 %v1006_v47, %v982_v6  ;;  %1350 = vmatmul.f32.vlgmr.msra.gmra.mxu2 %v1258_v53  ;;  %v1226_v46 = vadd.f32 0.014752088, %v1225_v45  ;;  %v1094_v56 = vmul.f32 %v1093_v58, %v2159_v5  ;;  %v915_v26 = vmul.f32 0.5, %v1956_v35 }
 0x522   :  { %v1188_v62 = vadd.f32 0.112945676, %v1187_v40  ;;  %v1177_v34 = vadd.f32 0.05243302, %v1176_v48  ;;  %v1216_v2 = vmul.f32 %v1215_v18, %v2143_v44  ;;  %v1104_v3 = vadd.f32 0.001143296, %v1103_v21 }
 0x523   :  { %v1493_v57 = vclamps-f32 %v1007_v49, 1.0  ;;  %v1227_v59 = vmul.f32 %v1226_v46, %v2143_v44  ;;  %v1133_v13 = vadd.f32 0.00028619796, %v1132_v51  ;;  %v1143_v29 = vmul.f32 3.8918573e-05, %v2174_v8 }
 0x524   :  { %v1189_v39 = vmul.f32 %v1188_v62, %v2076_v37  ;;  %v1105_v60 = vmul.f32 %v1104_v3, %v2159_v5  ;;  %v1095_v27 = vadd.f32 0.0036580483, %v1094_v56  ;;  %v1178_v35 = vmul.f32 %v1177_v34, %v2076_v37 }
 0x525   :  { %v1251_v4 = vadd.f32 1.0, %v1493_v57  ;;  %v1228_v7 = vadd.f32 0.112945676, %v1227_v59  ;;  %v1144_v25 = vadd.f32 0.001143296, %v1143_v29  ;;  %v1134_v42 = vmul.f32 %v1133_v13, %v2174_v8 }
 0x526   :  { %v1190_v9 = vadd.f32 0.4994258, %v1189_v39  ;;  %v1106_v54 = vadd.f32 0.014752088, %v1105_v60  ;;  %v1217_v36 = vadd.f32 0.05243302, %v1216_v2  ;;  %v1096_v55 = vmul.f32 %v1095_v27, %v2159_v5 }
 0x527   :  { %v1259_v20 = vmul.f32 %v1251_v4, %v915_v26  ;;  %v1229_v11 = vmul.f32 %v1228_v7, %v2143_v44  ;;  %v1145_v17 = vmul.f32 %v1144_v25, %v2174_v8  ;;  %v1179_v31 = vadd.f32 0.18741608, %v1178_v35 }
 0x528   :  { %v1191_v0 = vmul.f32 %v1190_v9, %v2076_v37  ;;  %v1107_v16 = vmul.f32 %v1106_v54, %v2159_v5  ;;  %v1218_v38 = vmul.f32 %v1217_v36, %v2143_v44  ;;  %v1135_v6 = vadd.f32 0.0036580483, %v1134_v42 }
 0x529   :  { %1373 = vmatmul.f32.vlgmr.msra.gmra.mxu3 %v1259_v20  ;;  %v1230_v15 = vadd.f32 0.4994258, %v1229_v11  ;;  %v1146_v30 = vadd.f32 0.014752088, %v1145_v17  ;;  %v1097_v53 = vadd.f32 0.05243302, %v1096_v55  ;;  %v1180_v58 = vmul.f32 %v1179_v31, %v2076_v37 }
 0x52a   :  { %v1192_v50 = vadd.f32 1.0, %v1191_v0  ;;  %v1108_v23 = vadd.f32 0.112945676, %v1107_v16  ;;  %v1219_v45 = vadd.f32 0.18741608, %v1218_v38  ;;  %v1136_v47 = vmul.f32 %v1135_v6, %v2174_v8 }
 0x52b   :  { %v1231_v22 = vmul.f32 %v1230_v15, %v2143_v44  ;;  %v1147_v63 = vmul.f32 %v1146_v30, %v2174_v8  ;;  %v1098_v51 = vmul.f32 %v1097_v53, %v2159_v5  ;;  %v1181_v57 = vadd.f32 1.1283791, %v1180_v58 }
 0x52c   :  { %1548 = vrcp.f32 %v1192_v50  ;;  %v1109_v33 = vmul.f32 %v1108_v23, %v2159_v5  ;;  %v1220_v56 = vmul.f32 %v1219_v45, %v2143_v44  ;;  %v1137_v62 = vadd.f32 0.05243302, %v1136_v47 }
 0x52d   :  { %v1232_v32 = vadd.f32 1.0, %v1231_v22  ;;  %v1148_v18 = vadd.f32 0.112945676, %v1147_v63  ;;  %v1099_v2 = vadd.f32 0.18741608, %v1098_v51  ;;  %v1204_v3 = vand.u32 2147483648, %v1192_v50 }
 0x52e   :  { %v1110_v48 = vadd.f32 0.4994258, %v1109_v33  ;;  %v1202_v39 = vand.u32 2147483647, %v1192_v50  ;;  %v1182_v60 = vmul.f32 %v1181_v57, %v2040_v28  ;;  %v1221_v29 = vadd.f32 1.1283791, %v1220_v56 }
 0x52f   :  { %1550 = vrcp.f32 %v1232_v32  ;;  %v1149_v21 = vmul.f32 %v1148_v18, %v2174_v8  ;;  %v1138_v44 = vmul.f32 %v1137_v62, %v2174_v8  ;;  %vm1198_vm9 = vweird.f32 %v1192_v50 }
 0x530   :  { %v1111_v40 = vmul.f32 %v1110_v48, %v2159_v5  ;;  %v1244_v9 = vand.u32 2147483648, %v1232_v32  ;;  %v1205_v35 = vor.u32 1.1754944e-38, %v1204_v3  ;;  %v1242_v25 = vand.u32 2147483647, %v1232_v32 }
 0x531   :  { %v1150_v34 = vadd.f32 0.4994258, %v1149_v21  ;;  %v1100_v36 = vmul.f32 %v1099_v2, %v2159_v5  ;;  %vm1203_vm12 = vcmp.eq.f32.partialorder %v1202_v39, 8.507059e+37  ;;  %v1139_v0 = vadd.f32 0.18741608, %v1138_v44 }
 0x532   :  { %v1549_v49 = vpop.eup %1548  ;;  %v2208_v59 = vadd.f32 1.0, %v1111_v40  ;;  %vm1238_vm13 = vweird.f32 %v1232_v32  ;;  %v1245_v55 = vor.u32 1.1754944e-38, %v1244_v9  ;;  %v1222_v22 = vmul.f32 %v1221_v29, %v2086_v61 }
 0x533   :  { %v1194_v46 = vmul.f32 %v1549_v49, %v1192_v50  ;;  %vm1199_vm8 = vweird.f32 %v1549_v49  ;;  %v1151_v7 = vmul.f32 %v1150_v34, %v2174_v8  ;;  %vm1243_vm15 = vcmp.eq.f32.partialorder %v1242_v25, 8.507059e+37 }
 0x534   :  { %1552 = vrcp.f32 %v2208_v59  ;;  %vm1200_vm10 = vmor %vm1198_vm9, %vm1199_vm8  ;;  %v1101_v30 = vadd.f32 1.1283791, %v1100_v36  ;;  %v920_v6 = vmul.f32 0.5, %v2018_v41  ;;  %v1140_v33 = vmul.f32 %v1139_v0, %v2174_v8 }
 0x535   :  { %v1551_v37 = vpop.eup %1550  ;;  %v1195_v26 = vsub.f32 1.0, %v1194_v46  ;;  %v2214_v11 = vadd.f32 1.0, %v1151_v7  ;;  %v1122_v47 = vand.u32 2147483647, %v2208_v59  ;;  %v921_v61 = vmul.f32 0.5, %v2065_v14 }
 0x536   :  { %v1234_v4 = vmul.f32 %v1551_v37, %v1232_v32  ;;  %vm1239_vm11 = vweird.f32 %v1551_v37  ;;  %v1124_v32 = vand.u32 2147483648, %v2208_v59  ;;  %vm1118_vm1 = vweird.f32 %v2208_v59 }
 0x537   :  { %v1196_v13 = vmul.f32 %v1549_v49, %v1195_v26  ;;  %1554 = vrcp.f32 %v2214_v11  ;;  %vm1240_vm14 = vmor %vm1238_vm13, %vm1239_vm11  ;;  %v1141_v8 = vadd.f32 1.1283791, %v1140_v33  ;;  %vm1123_vm3 = vcmp.eq.f32.partialorder %v1122_v47, 8.507059e+37 }
 0x538   :  { %v1235_v20 = vsub.f32 1.0, %v1234_v4  ;;  %v1125_v46 = vor.u32 1.1754944e-38, %v1124_v32  ;;  %v1162_v56 = vand.u32 2147483647, %v2214_v11  ;;  %v1164_v14 = vand.u32 2147483648, %v2214_v11 }
 0x539   :  { %v1197_v27 = vadd.f32 %v1549_v49, %v1196_v13  ;;  %vm1158_vm5 = vweird.f32 %v2214_v11  ;;  %v1142_v3 = vmul.f32 %v1141_v8, %v2150_v24  ;;  %v918_v13 = vmul.f32 0.5, %v2080_v43  ;;  %v1517_v8 = vld [vmem:[%s2268_s13] ss:$0 sm:$0xff] }
 0x53a   :  { %v1236_v54 = vmul.f32 %v1551_v37, %v1235_v20  ;;  %v1553_v28 = vpop.eup %1552  ;;  %v1165_v2 = vor.u32 1.1754944e-38, %v1164_v14  ;;  %vm1163_vm7 = vcmp.eq.f32.partialorder %v1162_v56, 8.507059e+37  ;;  %v919_v20 = vmul.f32 0.5, %v2106_v1 }
 0x53b   :  { %v1201_v42 = vsel %vm1200_vm10, %v1549_v49, %v1197_v27  ;;  %v1114_v50 = vmul.f32 %v1553_v28, %v2208_v59  ;;  %vm1119_vm0 = vweird.f32 %v1553_v28  ;;  %v1102_v49 = vmul.f32 %v1101_v30, %v2127_v12 }
 0x53c   :  { %v1206_v15 = vsel %vm1203_vm12, %v1205_v35, %v1201_v42  ;;  %v1237_v16 = vadd.f32 %v1551_v37, %v1236_v54  ;;  %vm1120_vm2 = vmor %vm1118_vm1, %vm1119_vm0 }
 0x53d   :  { %v1207_v17 = vmul.f32 %v1206_v15, %v1182_v60  ;;  %v1115_v38 = vsub.f32 1.0, %v1114_v50  ;;  %v1555_v63 = vpop.eup %1554 }
 0x53e   :  { %v1241_v23 = vsel %vm1240_vm14, %v1551_v37, %v1237_v16  ;;  %v1154_v18 = vmul.f32 %v1555_v63, %v2214_v11  ;;  %vm1159_vm4 = vweird.f32 %v1555_v63  ;;  %v1515_v11 = vld [vmem:[%s2266_s11] ss:$0 sm:$0xff] }
 0x53f   :  { %v1498_v5 = vclamps-f32 %v1207_v17, 1.0  ;;  %v1246_v31 = vsel %vm1243_vm15, %v1245_v55, %v1241_v23  ;;  %v1116_v45 = vmul.f32 %v1553_v28, %v1115_v38  ;;  %vm1160_vm6 = vmor %vm1158_vm5, %vm1159_vm4 }
 0x540   :  { %v1247_v53 = vmul.f32 %v1246_v31, %v1222_v22  ;;  %v1155_v21 = vsub.f32 1.0, %v1154_v18 }
 0x541   :  { %v1256_v58 = vadd.f32 1.0, %v1498_v5  ;;  %v1117_v41 = vadd.f32 %v1553_v28, %v1116_v45 }
 0x542   :  { %v1499_v48 = vclamps-f32 %v1247_v53, 1.0  ;;  %v1156_v26 = vmul.f32 %v1555_v63, %v1155_v21 }
 0x543   :  { %v1264_v51 = vmul.f32 %v1256_v58, %v920_v6  ;;  %v1121_v57 = vsel %vm1120_vm2, %v1553_v28, %v1117_v41 }
 0x544   :  { %v1257_v40 = vadd.f32 1.0, %v1499_v48  ;;  %v1126_v37 = vsel %vm1123_vm3, %v1125_v46, %v1121_v57  ;;  %v1157_v34 = vadd.f32 %v1555_v63, %v1156_v26 }
 0x545   :  { %1399 = vmatmul.f32.gmra.mxu0 %v1264_v51  ;;  %v1127_v12 = vmul.f32 %v1126_v37, %v1102_v49  ;;  %v1516_v51 = vld [vmem:[%s2267_s12] ss:$0 sm:$0xff] }
 0x546   :  { %v1265_v62 = vmul.f32 %v1257_v40, %v921_v61  ;;  %v1161_v4 = vsel %vm1160_vm6, %v1555_v63, %v1157_v34 }
 0x547   :  { %v1496_v59 = vclamps-f32 %v1127_v12, 1.0  ;;  %v1166_v7 = vsel %vm1163_vm7, %v1165_v2, %v1161_v4 }
 0x548   :  { %1422 = vmatmul.f32.gmra.mxu1 %v1265_v62  ;;  %v1167_v60 = vmul.f32 %v1166_v7, %v1142_v3 }
 0x549   :  { %v1254_v39 = vadd.f32 1.0, %v1496_v59 }
 0x54a   :  { %v1497_v44 = vclamps-f32 %v1167_v60, 1.0 }
 0x54b   :  { %v1262_v29 = vmul.f32 %v1254_v39, %v918_v13 }
 0x54c   :  { %v1255_v27 = vadd.f32 1.0, %v1497_v44 }
 0x54d   :  { %1353 = vmatmul.f32.gmra.mxu2 %v1262_v29 }
 0x54e   :  { %v1263_v9 = vmul.f32 %v1255_v27, %v919_v20 }
 0x550   :  { %1376 = vmatmul.f32.gmra.mxu3 %v1263_v9 }
 0x599   :  { %v1397_v43 = vpop.f32.mrf.mxu0 }
 0x59a   :  { %v1420_v42 = vpop.f32.mrf.mxu1 }
 0x5a4   :  { %v1351_v24 = vpop.f32.mrf.mxu2 }
 0x5a5   :  { %v1352_v35 = vadd.f32 %v1515_v11, %v1351_v24 }
 0x5ac   :  { %v1374_v54 = vpop.f32.mrf.mxu3 }
 0x5ad   :  { %v1375_v25 = vadd.f32 %v1374_v54, %v1352_v35 }
 0x5af   :  { %v1398_v36 = vadd.f32 %v1397_v43, %v1375_v25 }
 0x5b1   :  { %v1421_v28 = vadd.f32 %v1420_v42, %v1398_v36 }
 0x5b3   :  { %v1426_v0 = vadd.f32 %v1421_v28, %v1910_v10 }
 0x5b5   :  { %1430 = vadd.xlane.f32.xlu0 %v1426_v0 }
 0x5c2   :  { %v1400_v55 = vpop.f32.mrf.mxu0 }
 0x5c5   :  { %v1423_v22 = vpop.f32.mrf.mxu1 }
 0x5d0   :  { %v1354_v15 = vpop.f32.mrf.mxu2 }
 0x5d1   :  { %v1355_v1 = vadd.f32 %v1515_v11, %v1354_v15 }
 0x5d3   :  { %v1377_v16 = vpop.f32.mrf.mxu3 }
 0x5d4   :  { %v1378_v17 = vadd.f32 %v1377_v16, %v1355_v1 }
 0x5d6   :  { %v1401_v50 = vadd.f32 %v1400_v55, %v1378_v17 }
 0x5d8   :  { %v1424_v23 = vadd.f32 %v1423_v22, %v1401_v50 }
 0x5da   :  { %v1427_v30 = vadd.f32 %v1424_v23, %v1917_v19 }
 0x5dc   :  { %1432 = vadd.xlane.f32.xlu1 %v1427_v30 }
 0x628   :  { %v1431_v5 = vpop.xlane.xlu0 %1430 }
 0x629   :  { %v1434_v31 = vmul.f32 %v1431_v5, %v1889_v52 }
 0x62b   :  { %v1436_v38 = vsub.f32 %v1426_v0, %v1434_v31 }
 0x62d   :  { %v1438_v6 = vmul.f32 %v1436_v38, %v1436_v38 }
 0x62f   :  { %1440 = vadd.xlane.f32.xlu2 %v1438_v6 }
 0x64f   :  { %v1433_v33 = vpop.xlane.xlu1 %1432 }
 0x650   :  { %v1435_v10 = vmul.f32 %v1433_v33, %v1889_v52 }
 0x652   :  { %v1437_v53 = vsub.f32 %v1427_v30, %v1435_v10 }
 0x654   :  { %v1439_v32 = vmul.f32 %v1437_v53, %v1437_v53 }
 0x656   :  { %1442 = vadd.xlane.f32.xlu0 %v1439_v32 }
 0x6a2   :  { %v1441_v63 = vpop.xlane.xlu2 %1440 }
 0x6a3   :  { %v1444_v58 = vmul.f32 %v1441_v63, %v1889_v52 }
 0x6a5   :  { %v1446_v45 = vadd.f32 1e-12, %v1444_v58 }
 0x6a7   :  { %1556 = vrsqrt.f32 %v1446_v45  ;;  %vm1454_vm9 = vweird.f32 %v1446_v45 }
 0x6ad   :  { %v1557_v47 = vpop.eup %1556 }
 0x6ae   :  { %v1449_v19 = vmul.f32 %v1557_v47, %v1446_v45  ;;  %vm1455_vm8 = vweird.f32 %v1557_v47 }
 0x6af   :  { %vm1456_vm10 = vmor %vm1454_vm9, %vm1455_vm8 }
 0x6b0   :  { %v1450_v61 = vmul.f32 %v1557_v47, %v1449_v19 }
 0x6b2   :  { %v1451_v48 = vmul.f32 0.5, %v1450_v61 }
 0x6b4   :  { %v1452_v18 = vsub.f32 1.5, %v1451_v48 }
 0x6b6   :  { %v1453_v49 = vmul.f32 %v1557_v47, %v1452_v18 }
 0x6b8   :  { %v1457_v41 = vsel %vm1456_vm10, %v1557_v47, %v1453_v49 }
 0x6b9   :  { %v1468_v40 = vmul.f32 %v1457_v41, %v1436_v38 }
 0x6bb   :  { %v1473_v46 = vmul.f32 %v1516_v51, %v1468_v40 }
 0x6bd   :  { %v1478_v21 = vadd.f32 %v1517_v8, %v1473_v46 }
 0x6bf   :  { %1480 = vst [vmem:[%s2269_s14] sm:$0xff] %v1478_v21 }
 0x6c9   :  { %v1443_v57 = vpop.xlane.xlu0 %1442 }
 0x6ca   :  { %v1445_v56 = vmul.f32 %v1443_v57, %v1889_v52 }
 0x6cc   :  { %v1447_v14 = vadd.f32 1e-12, %v1445_v56 }
 0x6ce   :  { %1558 = vrsqrt.f32 %v1447_v14  ;;  %vm1464_vm12 = vweird.f32 %v1447_v14 }
 0x6d4   :  { %v1559_v62 = vpop.eup %1558 }
 0x6d5   :  { %v1459_v37 = vmul.f32 %v1559_v62, %v1447_v14  ;;  %vm1465_vm11 = vweird.f32 %v1559_v62 }
 0x6d6   :  { %vm1466_vm13 = vmor %vm1464_vm12, %vm1465_vm11 }
 0x6d7   :  { %v1460_v26 = vmul.f32 %v1559_v62, %v1459_v37 }
 0x6d9   :  { %v1461_v12 = vmul.f32 0.5, %v1460_v26 }
 0x6db   :  { %v1462_v34 = vsub.f32 1.5, %v1461_v12 }
 0x6dd   :  { %v1463_v59 = vmul.f32 %v1559_v62, %v1462_v34 }
 0x6df   :  { %v1467_v2 = vsel %vm1466_vm13, %v1559_v62, %v1463_v59 }
 0x6e0   :  { %v1469_v3 = vmul.f32 %v1467_v2, %v1437_v53 }
 0x6e2   :  { %v1474_v4 = vmul.f32 %v1516_v51, %v1469_v3 }
 0x6e4   :  { %v1479_v13 = vadd.f32 %v1517_v8, %v1474_v4 }
 0x6e6   :  { %1481 = vst [vmem:[%s2269_s14 + $0x8] sm:$0xff] %v1479_v13 }
 0x6e7   :  { %1486 = vsyncpa [#allocation5], 1 }
 0x6e8   :  { %1487 = vsyncpa [#allocation7], 1 }

// kernel: frustration_bert_forward.6
= control target key start
LH: loop header
LB: loop body
LE: loop exit
PB: predicated region body
PF: predicated region fallthrough
CT: control target
= control target key end

     0   :  { %19 = vsyncpa [#allocation5], 0  ;;  %s2207_s0 = inlined_call_operand.vmem [shape: f32[16,128], index: 0, kind: input, shape index: {}]   ;;  %s2208_s1 = inlined_call_operand.vmem [shape: f32[2,8], index: 1, kind: input, shape index: {}]   ;;  %s2209_s2 = inlined_call_operand.hbm [shape: f32[128,768], index: 2, kind: input, shape index: {}]   ;;  %s2210_s3 = inlined_call_operand.vmem [shape: f32[1,768], index: 3, kind: input, shape index: {}]   ;;  %s2211_s4 = inlined_call_operand.hbm [shape: f32[256,128], index: 4, kind: input, shape index: {}]   ;;  %s2212_s5 = inlined_call_operand.vmem [shape: f32[1,128], index: 5, kind: input, shape index: {}]   ;;  %s2213_s6 = inlined_call_operand.vmem [shape: f32[1,128], index: 6, kind: input, shape index: {}]   ;;  %s2214_s7 = inlined_call_operand.vmem [shape: f32[1,128], index: 7, kind: input, shape index: {}]   ;;  %s2215_s8 = inlined_call_operand.hbm [shape: f32[128,512], index: 8, kind: input, shape index: {}]   ;;  %s2216_s9 = inlined_call_operand.vmem [shape: f32[1,512], index: 9, kind: input, shape index: {}]   ;;  %s2217_s10 = inlined_call_operand.hbm [shape: f32[512,128], index: 10, kind: input, shape index: {}]   ;;  %s2218_s11 = inlined_call_operand.vmem [shape: f32[1,128], index: 11, kind: input, shape index: {}]   ;;  %s2219_s12 = inlined_call_operand.vmem [shape: f32[1,128], index: 12, kind: input, shape index: {}]   ;;  %s2220_s13 = inlined_call_operand.vmem [shape: f32[1,128], index: 13, kind: input, shape index: {}]   ;;  %s2221_s14 = inlined_call_operand.vmem [shape: f32[16,128], index: 14, kind: output, shape index: {}]  }
   0x1   :  { %20 = vsyncpa [#allocation7], 0  ;;  %s45_s15 = sshll.u32 %s2211_s4, 4  ;;  %s46_s15 = int_to_ptr.hbm [resolvable:$true] %s45_s15 }
   0x2   :  { %21 = vsyncpa [#allocation10], 0  ;;  %s1680_s16 = smov [#allocation6]   ;;  %s30_s20 = sshll.u32 %s2209_s2, 4  ;;  %s31_s20 = int_to_ptr.hbm [resolvable:$true] %s30_s20 }
   0x3   :  { %s47_s17 = sshll.u32 %s1680_s16, 4  ;;  %s1681_s21 = smov 128   ;;  %s48_s17 = int_to_ptr.vmem [resolvable:$true] %s47_s17 }
   0x4   :  { %s1682_s22 = smov 8   ;;  %s1683_s23 = smov [#allocation4]  }
   0x5   :  { %53 = dma.hbm_to_vmem [thread:$0]  %s46_s15, 4096, %s48_s17, [#allocation7], %s1681_s21, %s1681_s21, %s1682_s22  }
   0x6   :  { %s32_s24 = sshll.u32 %s1683_s23, 4  ;;  %s1684_s25 = smov 768   ;;  %s33_s24 = int_to_ptr.vmem [resolvable:$true] %s32_s24 }
   0x7   :  { %s1685_s26 = smov 48   ;;  %s64_s28 = sshll.u32 %s2215_s8, 4  ;;  %s65_s28 = int_to_ptr.hbm [resolvable:$true] %s64_s28 }
   0x8   :  { %38 = dma.hbm_to_vmem [thread:$0]  %s31_s20, 12288, %s33_s24, [#allocation5], %s1684_s25, %s1684_s25, %s1685_s26  }
   0x9   :  { %s1686_s29 = smov [#allocation8]   ;;  %s79_s18 = sshll.u32 %s2217_s10, 4  ;;  %s80_s18 = int_to_ptr.hbm [resolvable:$true] %s79_s18 }
   0xa   :  { %s66_s30 = sshll.u32 %s1686_s29, 4  ;;  %s1687_s15 = smov 512   ;;  %s67_s30 = int_to_ptr.vmem [resolvable:$true] %s66_s30 }
   0xb   :  { %s1688_s17 = smov 32   ;;  %s1689_s19 = smov [#allocation9]  }
   0xc   :  { %72 = dma.hbm_to_vmem [thread:$0]  %s65_s28, 8192, %s67_s30, [#allocation7], %s1687_s15, %s1687_s15, %s1688_s17  }
   0xd   :  { %s81_s23 = sshll.u32 %s1689_s19, 4  ;;  %s82_s23 = int_to_ptr.vmem [resolvable:$true] %s81_s23 }
   0xe   :  { %87 = dma.hbm_to_vmem [thread:$0]  %s80_s18, 8192, %s82_s23, [#allocation10], %s1681_s21, %s1681_s21, %s1682_s22  }
   0xf   :  { %1674 = dma.done.wait [#allocation5], 12288  }
  0x10   :  { %1675 = vsyncadd [#allocation5], 4294955008 }
  0x11   :  { %1676 = dma.done.wait [#allocation7], 12288  }
  0x12   :  { %1677 = vsyncadd [#allocation7], 4294955008 }
  0x13   :  { %1678 = dma.done.wait [#allocation10], 8192  }
  0x14   :  { %1679 = vsyncadd [#allocation10], 4294959104  ;;  %v202_v0 = vld [vmem:[#allocation4 + $0x2d0] sm:$0xff]  ;;  %v203_v1 = vld [vmem:[#allocation4 + $0x2d8] sm:$0xff]  ;;  %vm399_vm0 = vcmask 64512  }
  0x15   :  { %v196_v2 = vld [vmem:[#allocation4 + $0x2a0] sm:$0xff]  ;;  %222 = vmatpush.msra.mxu0 %v202_v0  ;;  %245 = vmatpush.msra.mxu1 %v203_v1  ;;  %v197_v3 = vld [vmem:[#allocation4 + $0x2a8] sm:$0xff]  ;;  %v190_v4 = vld [vmem:[#allocation4 + $0x270] sm:$0xff] }
  0x16   :  { %v191_v5 = vld [vmem:[#allocation4 + $0x278] sm:$0xff]  ;;  %v184_v6 = vld [vmem:[#allocation4 + $0x240] sm:$0xff]  ;;  %v185_v7 = vld [vmem:[#allocation4 + $0x248] sm:$0xff] }
  0x17   :  { %223 = vmatpush.msra.mxu0 %v196_v2  ;;  %246 = vmatpush.msra.mxu1 %v197_v3  ;;  %v178_v8 = vld [vmem:[#allocation4 + $0x210] sm:$0xff]  ;;  %v179_v9 = vld [vmem:[#allocation4 + $0x218] sm:$0xff]  ;;  %v172_v10 = vld [vmem:[#allocation4 + $0x1e0] sm:$0xff] }
  0x18   :  { %v173_v11 = vld [vmem:[#allocation4 + $0x1e8] sm:$0xff]  ;;  %v166_v12 = vld [vmem:[#allocation4 + $0x1b0] sm:$0xff]  ;;  %v167_v13 = vld [vmem:[#allocation4 + $0x1b8] sm:$0xff] }
  0x19   :  { %224 = vmatpush.msra.mxu0 %v190_v4  ;;  %247 = vmatpush.msra.mxu1 %v191_v5  ;;  %v205_v14 = vld [vmem:[#allocation4 + $0x2e8] sm:$0xff]  ;;  %v199_v15 = vld [vmem:[#allocation4 + $0x2b8] sm:$0xff]  ;;  %v160_v16 = vld [vmem:[#allocation4 + $0x180] sm:$0xff] }
  0x1a   :  { %v161_v17 = vld [vmem:[#allocation4 + $0x188] sm:$0xff]  ;;  %291 = vmatpush.msra.mxu3 %v205_v14  ;;  %v154_v19 = vld [vmem:[#allocation4 + $0x150] sm:$0xff]  ;;  %v155_v20 = vld [vmem:[#allocation4 + $0x158] sm:$0xff] }
  0x1b   :  { %225 = vmatpush.msra.mxu0 %v184_v6  ;;  %248 = vmatpush.msra.mxu1 %v185_v7  ;;  %v193_v18 = vld [vmem:[#allocation4 + $0x288] sm:$0xff]  ;;  %v187_v21 = vld [vmem:[#allocation4 + $0x258] sm:$0xff]  ;;  %v148_v22 = vld [vmem:[#allocation4 + $0x120] sm:$0xff] }
  0x1c   :  { %292 = vmatpush.msra.mxu3 %v199_v15  ;;  %v149_v23 = vld [vmem:[#allocation4 + $0x128] sm:$0xff]  ;;  %v142_v24 = vld [vmem:[#allocation4 + $0xf0] sm:$0xff]  ;;  %v143_v25 = vld [vmem:[#allocation4 + $0xf8] sm:$0xff] }
  0x1d   :  { %226 = vmatpush.msra.mxu0 %v178_v8  ;;  %249 = vmatpush.msra.mxu1 %v179_v9  ;;  %v181_v26 = vld [vmem:[#allocation4 + $0x228] sm:$0xff]  ;;  %v136_v27 = vld [vmem:[#allocation4 + $0xc0] sm:$0xff]  ;;  %v175_v28 = vld [vmem:[#allocation4 + $0x1f8] sm:$0xff] }
  0x1e   :  { %293 = vmatpush.msra.mxu3 %v193_v18  ;;  %v137_v29 = vld [vmem:[#allocation4 + $0xc8] sm:$0xff]  ;;  %v130_v31 = vld [vmem:[#allocation4 + $0x90] sm:$0xff]  ;;  %v131_v32 = vld [vmem:[#allocation4 + $0x98] sm:$0xff] }
  0x1f   :  { %227 = vmatpush.msra.mxu0 %v172_v10  ;;  %250 = vmatpush.msra.mxu1 %v173_v11  ;;  %v169_v30 = vld [vmem:[#allocation4 + $0x1c8] sm:$0xff]  ;;  %v163_v33 = vld [vmem:[#allocation4 + $0x198] sm:$0xff]  ;;  %v124_v34 = vld [vmem:[#allocation4 + $0x60] sm:$0xff] }
  0x20   :  { %294 = vmatpush.msra.mxu3 %v187_v21  ;;  %v125_v35 = vld [vmem:[#allocation4 + $0x68] sm:$0xff]  ;;  %v118_v37 = vld [vmem:[#allocation4 + $0x30] sm:$0xff]  ;;  %v119_v38 = vld [vmem:[#allocation4 + $0x38] sm:$0xff] }
  0x21   :  { %228 = vmatpush.msra.mxu0 %v166_v12  ;;  %251 = vmatpush.msra.mxu1 %v167_v13  ;;  %v157_v36 = vld [vmem:[#allocation4 + $0x168] sm:$0xff]  ;;  %v151_v39 = vld [vmem:[#allocation4 + $0x138] sm:$0xff]  ;;  %v112_v40 = vld [vmem:[#allocation4] sm:$0xff] }
  0x22   :  { %295 = vmatpush.msra.mxu3 %v181_v26  ;;  %v113_v41 = vld [vmem:[#allocation4 + $0x8] sm:$0xff]  ;;  %v1781_v42 = vld [vmem:[%s2207_s0] sm:$0xff]  ;;  %v206_v43 = vld [vmem:[#allocation4 + $0x2f0] sm:$0xff] }
  0x23   :  { %229 = vmatpush.msra.mxu0 %v160_v16  ;;  %252 = vmatpush.msra.mxu1 %v161_v17  ;;  %v145_v44 = vld [vmem:[#allocation4 + $0x108] sm:$0xff]  ;;  %v200_v45 = vld [vmem:[#allocation4 + $0x2c0] sm:$0xff]  ;;  %v139_v46 = vld [vmem:[#allocation4 + $0xd8] sm:$0xff] }
  0x24   :  { %296 = vmatpush.msra.mxu3 %v175_v28  ;;  %v194_v47 = vld [vmem:[#allocation4 + $0x290] sm:$0xff]  ;;  %v133_v48 = vld [vmem:[#allocation4 + $0xa8] sm:$0xff]  ;;  %v188_v49 = vld [vmem:[#allocation4 + $0x260] sm:$0xff] }
  0x25   :  { %230 = vmatpush.msra.mxu0 %v154_v19  ;;  %253 = vmatpush.msra.mxu1 %v155_v20  ;;  %v127_v50 = vld [vmem:[#allocation4 + $0x78] sm:$0xff]  ;;  %v182_v51 = vld [vmem:[#allocation4 + $0x230] sm:$0xff]  ;;  %v1788_v52 = vld [vmem:[%s2207_s0 + $0x8] sm:$0xff] }
  0x26   :  { %297 = vmatpush.msra.mxu3 %v169_v30  ;;  %v121_v53 = vld [vmem:[#allocation4 + $0x48] sm:$0xff]  ;;  %v176_v54 = vld [vmem:[#allocation4 + $0x200] sm:$0xff]  ;;  %v115_v56 = vld [vmem:[#allocation4 + $0x18] sm:$0xff] }
  0x27   :  { %231 = vmatpush.msra.mxu0 %v148_v22  ;;  %254 = vmatpush.msra.mxu1 %v149_v23  ;;  %v204_v55 = vld [vmem:[#allocation4 + $0x2e0] sm:$0xff]  ;;  %v170_v57 = vld [vmem:[#allocation4 + $0x1d0] sm:$0xff] }
  0x28   :  { %298 = vmatpush.msra.mxu3 %v163_v33  ;;  %268 = vmatpush.msra.mxu2 %v204_v55  ;;  %v198_v58 = vld [vmem:[#allocation4 + $0x2b0] sm:$0xff]  ;;  %v164_v59 = vld [vmem:[#allocation4 + $0x1a0] sm:$0xff]  ;;  %v177_v55 = vld [vmem:[#allocation4 + $0x208] sm:$0xff] }
  0x29   :  { %232 = vmatpush.msra.mxu0 %v142_v24  ;;  %255 = vmatpush.msra.mxu1 %v143_v25  ;;  %v192_v60 = vld [vmem:[#allocation4 + $0x280] sm:$0xff]  ;;  %v158_v61 = vld [vmem:[#allocation4 + $0x170] sm:$0xff] }
  0x2a   :  { %299 = vmatpush.msra.mxu3 %v157_v36  ;;  %269 = vmatpush.msra.mxu2 %v198_v58  ;;  %v186_v62 = vld [vmem:[#allocation4 + $0x250] sm:$0xff]  ;;  %v152_v63 = vld [vmem:[#allocation4 + $0x140] sm:$0xff] }
  0x2b   :  { %233 = vmatpush.msra.mxu0 %v136_v27  ;;  %256 = vmatpush.msra.mxu1 %v137_v29  ;;  %v180_v0 = vld [vmem:[#allocation4 + $0x220] sm:$0xff]  ;;  %v146_v1 = vld [vmem:[#allocation4 + $0x110] sm:$0xff] }
  0x2c   :  { %300 = vmatpush.msra.mxu3 %v151_v39  ;;  %270 = vmatpush.msra.mxu2 %v192_v60  ;;  %v174_v2 = vld [vmem:[#allocation4 + $0x1f0] sm:$0xff]  ;;  %v140_v3 = vld [vmem:[#allocation4 + $0xe0] sm:$0xff] }
  0x2d   :  { %234 = vmatpush.msra.mxu0 %v130_v31  ;;  %257 = vmatpush.msra.mxu1 %v131_v32  ;;  %v168_v4 = vld [vmem:[#allocation4 + $0x1c0] sm:$0xff]  ;;  %v134_v5 = vld [vmem:[#allocation4 + $0xb0] sm:$0xff] }
  0x2e   :  { %301 = vmatpush.msra.mxu3 %v145_v44  ;;  %271 = vmatpush.msra.mxu2 %v186_v62  ;;  %v162_v6 = vld [vmem:[#allocation4 + $0x190] sm:$0xff]  ;;  %v128_v7 = vld [vmem:[#allocation4 + $0x80] sm:$0xff] }
  0x2f   :  { %235 = vmatpush.msra.mxu0 %v124_v34  ;;  %258 = vmatpush.msra.mxu1 %v125_v35  ;;  %v156_v8 = vld [vmem:[#allocation4 + $0x160] sm:$0xff]  ;;  %v122_v9 = vld [vmem:[#allocation4 + $0x50] sm:$0xff] }
  0x30   :  { %302 = vmatpush.msra.mxu3 %v139_v46  ;;  %272 = vmatpush.msra.mxu2 %v180_v0  ;;  %v150_v10 = vld [vmem:[#allocation4 + $0x130] sm:$0xff]  ;;  %v116_v11 = vld [vmem:[#allocation4 + $0x20] sm:$0xff] }
  0x31   :  { %236 = vmatpush.msra.mxu0 %v118_v37  ;;  %259 = vmatpush.msra.mxu1 %v119_v38  ;;  %v144_v12 = vld [vmem:[#allocation4 + $0x100] sm:$0xff]  ;;  %v138_v13 = vld [vmem:[#allocation4 + $0xd0] sm:$0xff] }
  0x32   :  { %303 = vmatpush.msra.mxu3 %v133_v48  ;;  %273 = vmatpush.msra.mxu2 %v174_v2  ;;  %v132_v14 = vld [vmem:[#allocation4 + $0xa0] sm:$0xff]  ;;  %v126_v15 = vld [vmem:[#allocation4 + $0x70] sm:$0xff]  ;;  %v147_v2 = vld [vmem:[#allocation4 + $0x118] sm:$0xff] }
  0x33   :  { %237 = vmatpush.msra.mxu0 %v112_v40  ;;  %260 = vmatpush.msra.mxu1 %v113_v41  ;;  %v120_v16 = vld [vmem:[#allocation4 + $0x40] sm:$0xff]  ;;  %v114_v17 = vld [vmem:[#allocation4 + $0x10] sm:$0xff] }
  0x34   :  { %261 = vmatmul.f32.vlgmr.msra.gmra.mxu1 %v1781_v42  ;;  %238 = vmatmul.f32.vlgmr.msra.gmra.mxu0 %v1781_v42  ;;  %v1801_v18 = vld [vmem:[%s2210_s3] sm:$0x3f] }
  0x35   :  { %314 = vmatpush.msrb.mxu0 %v206_v43  ;;  %304 = vmatpush.msra.mxu3 %v127_v50  ;;  %v211_v19 = vperm.slane %v1801_v18, 1  ;;  %v210_v20 = vperm.slane %v1801_v18, 0  ;;  %v214_v26 = vperm.slane %v1801_v18, 4  ;;  %v213_v28 = vperm.slane %v1801_v18, 3  ;;  %v1528_v44 = vld [vmem:[%s2208_s1] ss:$0 sm:$0xff] }
  0x36   :  { %274 = vmatpush.msra.mxu2 %v168_v4  ;;  %v212_v37 = vperm.slane %v1801_v18, 2  ;;  %v201_v50 = vld [vmem:[#allocation4 + $0x2c8] sm:$0xff]  ;;  %v1529_v0 = vld [vmem:[%s2208_s1 + $0x1] ss:$0 sm:$0xff] }
  0x37   :  { %315 = vmatpush.msrb.mxu0 %v200_v45  ;;  %305 = vmatpush.msra.mxu3 %v121_v53  ;;  %v189_v53 = vld [vmem:[#allocation4 + $0x268] sm:$0xff] }
  0x38   :  { %275 = vmatpush.msra.mxu2 %v162_v6  ;;  %v141_v4 = vld [vmem:[#allocation4 + $0xe8] sm:$0xff] }
  0x39   :  { %316 = vmatpush.msrb.mxu0 %v194_v47  ;;  %306 = vmatpush.msra.mxu3 %v115_v56 }
  0x3a   :  { %307 = vmatmul.f32.vlgmr.msra.gmra.mxu3 %v1781_v42  ;;  %276 = vmatpush.msra.mxu2 %v156_v8 }
  0x3b   :  { %317 = vmatpush.msrb.mxu0 %v188_v49  ;;  %v207_v49 = vld [vmem:[#allocation4 + $0x2f8] sm:$0xff] }
  0x3c   :  { %264 = vmatmul.f32.gmra.mxu1 %v1788_v52  ;;  %241 = vmatmul.f32.gmra.mxu0 %v1788_v52 }
  0x3d   :  { %318 = vmatpush.msrb.mxu0 %v182_v51  ;;  %277 = vmatpush.msra.mxu2 %v150_v10  ;;  %v195_v51 = vld [vmem:[#allocation4 + $0x298] sm:$0xff] }
  0x3e   :  { %337 = vmatpush.msrb.mxu1 %v207_v49  ;;  %v633_v49 = vld [vmem:[#allocation6 + $0x60] sm:$0xff] }
  0x3f   :  { %319 = vmatpush.msrb.mxu0 %v176_v54  ;;  %278 = vmatpush.msra.mxu2 %v144_v12  ;;  %v183_v54 = vld [vmem:[#allocation4 + $0x238] sm:$0xff]  ;;  %v129_v12 = vld [vmem:[#allocation4 + $0x88] sm:$0xff] }
  0x40   :  { %338 = vmatpush.msrb.mxu1 %v201_v50 }
  0x41   :  { %320 = vmatpush.msrb.mxu0 %v170_v57  ;;  %279 = vmatpush.msra.mxu2 %v138_v13  ;;  %v171_v57 = vld [vmem:[#allocation4 + $0x1d8] sm:$0xff] }
  0x42   :  { %310 = vmatmul.f32.gmra.mxu3 %v1788_v52  ;;  %339 = vmatpush.msrb.mxu1 %v195_v51  ;;  %v123_v13 = vld [vmem:[#allocation4 + $0x58] sm:$0xff] }
  0x43   :  { %321 = vmatpush.msrb.mxu0 %v164_v59  ;;  %280 = vmatpush.msra.mxu2 %v132_v14  ;;  %v165_v59 = vld [vmem:[#allocation4 + $0x1a8] sm:$0xff]  ;;  %v632_v51 = vld [vmem:[#allocation6 + $0x58] sm:$0xff] }
  0x44   :  { %340 = vmatpush.msrb.mxu1 %v189_v53  ;;  %v117_v14 = vld [vmem:[#allocation4 + $0x28] sm:$0xff]  ;;  %v631_v53 = vld [vmem:[#allocation6 + $0x50] sm:$0xff] }
  0x45   :  { %322 = vmatpush.msrb.mxu0 %v158_v61  ;;  %281 = vmatpush.msra.mxu2 %v126_v15  ;;  %v159_v61 = vld [vmem:[#allocation4 + $0x178] sm:$0xff] }
  0x46   :  { %341 = vmatpush.msrb.mxu1 %v183_v54 }
  0x47   :  { %323 = vmatpush.msrb.mxu0 %v152_v63  ;;  %282 = vmatpush.msra.mxu2 %v120_v16  ;;  %v153_v63 = vld [vmem:[#allocation4 + $0x148] sm:$0xff] }
  0x48   :  { %342 = vmatpush.msrb.mxu1 %v177_v55 }
  0x49   :  { %324 = vmatpush.msrb.mxu0 %v146_v1  ;;  %283 = vmatpush.msra.mxu2 %v114_v17 }
  0x4a   :  { %284 = vmatmul.f32.vlgmr.msra.gmra.mxu2 %v1781_v42  ;;  %343 = vmatpush.msrb.mxu1 %v171_v57 }
  0x4b   :  { %325 = vmatpush.msrb.mxu0 %v140_v3 }
  0x4c   :  { %344 = vmatpush.msrb.mxu1 %v165_v59  ;;  %v627_v59 = vld [vmem:[#allocation6 + $0x30] sm:$0xff] }
  0x4d   :  { %326 = vmatpush.msrb.mxu0 %v134_v5 }
  0x4e   :  { %345 = vmatpush.msrb.mxu1 %v159_v61  ;;  %v625_v61 = vld [vmem:[#allocation6 + $0x20] sm:$0xff] }
  0x4f   :  { %327 = vmatpush.msrb.mxu0 %v128_v7 }
  0x50   :  { %346 = vmatpush.msrb.mxu1 %v153_v63 }
  0x51   :  { %328 = vmatpush.msrb.mxu0 %v122_v9 }
  0x52   :  { %287 = vmatmul.f32.gmra.mxu2 %v1788_v52  ;;  %347 = vmatpush.msrb.mxu1 %v147_v2  ;;  %v623_v2 = vld [vmem:[#allocation6 + $0x10] sm:$0xff] }
  0x53   :  { %329 = vmatpush.msrb.mxu0 %v116_v11  ;;  %v135_v11 = vld [vmem:[#allocation4 + $0xb8] sm:$0xff] }
  0x54   :  { %330 = vmatmul.f32.vlgmr.msrb.gmra.mxu0 %v1781_v42  ;;  %348 = vmatpush.msrb.mxu1 %v141_v4 }
  0x56   :  { %349 = vmatpush.msrb.mxu1 %v135_v11  ;;  %v648_v11 = vld [vmem:[#allocation6 + $0xd8] sm:$0xff] }
  0x58   :  { %350 = vmatpush.msrb.mxu1 %v129_v12  ;;  %v647_v12 = vld [vmem:[#allocation6 + $0xd0] sm:$0xff] }
  0x5a   :  { %351 = vmatpush.msrb.mxu1 %v123_v13  ;;  %v646_v13 = vld [vmem:[#allocation6 + $0xc8] sm:$0xff] }
  0x5c   :  { %333 = vmatmul.f32.gmra.mxu0 %v1788_v52  ;;  %352 = vmatpush.msrb.mxu1 %v117_v14  ;;  %v645_v14 = vld [vmem:[#allocation6 + $0xc0] sm:$0xff] }
  0x5d   :  { %353 = vmatmul.f32.vlgmr.msrb.gmra.mxu1 %v1781_v42 }
  0x65   :  { %356 = vmatmul.f32.gmra.mxu1 %v1788_v52 }
  0xb1   :  { %v262_v21 = vpop.f32.mrf.mxu1  ;;  %v239_v23 = vpop.f32.mrf.mxu0 }
  0xb2   :  { %v263_v22 = vadd.f32 %v262_v21, %v211_v19  ;;  %v240_v24 = vadd.f32 %v239_v23, %v210_v20 }
  0xb4   :  { %391 = vmatpush.xpose.msrb.mxu2 %v263_v22 }
  0xb7   :  { %392 = vmatmul.f32.vlgmr.msrb.gmra.mxu2 %v240_v24 }
  0xb9   :  { %v242_v25 = vpop.f32.mrf.mxu0  ;;  %v265_v27 = vpop.f32.mrf.mxu1 }
  0xba   :  { %v266_v31 = vadd.f32 %v265_v27, %v211_v19  ;;  %v243_v36 = vadd.f32 %v242_v25, %v210_v20 }
  0xbd   :  { %v308_v29 = vpop.f32.mrf.mxu3 }
  0xbe   :  { %v309_v33 = vadd.f32 %v308_v29, %v213_v28 }
  0xc5   :  { %v311_v38 = vpop.f32.mrf.mxu3 }
  0xc6   :  { %v312_v40 = vadd.f32 %v311_v38, %v213_v28 }
  0xcd   :  { %v285_v39 = vpop.f32.mrf.mxu2 }
  0xce   :  { %v286_v41 = vadd.f32 %v285_v39, %v212_v37 }
  0xd0   :  { %429 = vmatpush.msrb.mxu3 %v286_v41 }
  0xd1   :  { %v331_v30 = vpop.f32.mrf.mxu0 }
  0xd2   :  { %v332_v32 = vadd.f32 %v331_v30, %v214_v26 }
  0xd4   :  { %453 = vmatpush.xpose.msra.mxu2 %v332_v32 }
  0xd5   :  { %v1810_v43 = vpop.f32.mrf.mxu2 }
  0xd7   :  { %454 = vmatmul.f32.vlgmr.msra.gmra.mxu2 %v309_v33 }
  0xd8   :  { %514 = vmatpush.xpose.msrb.mxu2 %v266_v31 }
  0xd9   :  { %v334_v34 = vpop.f32.mrf.mxu0 }
  0xda   :  { %v335_v35 = vadd.f32 %v334_v34, %v214_v26  ;;  %v354_v38 = vpop.f32.mrf.mxu1 }
  0xdc   :  { %575 = vmatpush.xpose.msra.mxu2 %v335_v35 }
  0xdf   :  { %515 = vmatmul.f32.vlgmr.msrb.gmra.mxu2 %v243_v36  ;;  %v215_v36 = vperm.slane %v1801_v18, 5  ;;  %v630_v18 = vld [vmem:[#allocation6 + $0x48] sm:$0xff] }
  0xe1   :  { %v355_v39 = vadd.f32 %v354_v38, %v215_v36 }
  0xe2   :  { %v357_v54 = vpop.f32.mrf.mxu1 }
  0xe3   :  { %489 = vmatpush.msra.mxu3 %v355_v39  ;;  %v358_v55 = vadd.f32 %v357_v54, %v215_v36 }
  0xe7   :  { %576 = vmatmul.f32.vlgmr.msra.gmra.mxu2 %v312_v40 }
 0x13a   :  { %v393_v45 = vpop.f32.mrf.mxu2 }
 0x13b   :  { %v396_v46 = vmul.f32 0.125, %v393_v45  ;;  %v289_v45 = vadd.f32 %v1810_v43, %v212_v37  ;;  %v629_v37 = vld [vmem:[#allocation6 + $0x40] sm:$0xff] }
 0x13d   :  { %v398_v47 = vadd.f32 %v1528_v44, %v396_v46  ;;  %v636_v46 = vld [vmem:[#allocation6 + $0x78] sm:$0xff] }
 0x13e   :  { %657 = vmatpush.msra.mxu0 %v636_v46 }
 0x13f   :  { %v400_v48 = vsel %vm399_vm0, %v398_v47, -inf }
 0x140   :  { %401 = vmax.xlane.f32.xlu0 %v400_v48  ;;  %v634_v48 = vld [vmem:[#allocation6 + $0x68] sm:$0xff] }
 0x15a   :  { %v455_v56 = vpop.f32.mrf.mxu2 }
 0x15b   :  { %v458_v58 = vmul.f32 0.125, %v455_v56 }
 0x15d   :  { %v459_v60 = vadd.f32 %v1528_v44, %v458_v58  ;;  %v628_v58 = vld [vmem:[#allocation6 + $0x38] sm:$0xff] }
 0x15f   :  { %v460_v62 = vsel %vm399_vm0, %v459_v60, -inf }
 0x160   :  { %461 = vmax.xlane.f32.xlu0 %v460_v62 }
 0x162   :  { %v516_v1 = vpop.f32.mrf.mxu2 }
 0x163   :  { %v519_v3 = vmul.f32 0.125, %v516_v1  ;;  %v624_v1 = vld [vmem:[#allocation6 + $0x18] sm:$0xff] }
 0x165   :  { %v521_v5 = vadd.f32 %v1529_v0, %v519_v3  ;;  %v622_v3 = vld [vmem:[#allocation6 + $0x8] sm:$0xff] }
 0x167   :  { %v522_v6 = vsel %vm399_vm0, %v521_v5, -inf }
 0x168   :  { %523 = vmax.xlane.f32.xlu1 %v522_v6  ;;  %v621_v6 = vld [vmem:[#allocation6] sm:$0xff] }
 0x16a   :  { %v577_v7 = vpop.f32.mrf.mxu2 }
 0x16b   :  { %v580_v8 = vmul.f32 0.125, %v577_v7  ;;  %v652_v7 = vld [vmem:[#allocation6 + $0xf8] sm:$0xff] }
 0x16c   :  { %680 = vmatpush.msra.mxu1 %v652_v7  ;;  %v810_v7 = vld [vmem:[#allocation8 + $0x170] sm:$0xff] }
 0x16d   :  { %v581_v9 = vadd.f32 %v1529_v0, %v580_v8  ;;  %v651_v8 = vld [vmem:[#allocation6 + $0xf0] sm:$0xff] }
 0x16e   :  { %681 = vmatpush.msra.mxu1 %v651_v8  ;;  %v811_v8 = vld [vmem:[#allocation8 + $0x178] sm:$0xff] }
 0x16f   :  { %v582_v10 = vsel %vm399_vm0, %v581_v9, -inf }
 0x170   :  { %583 = vmax.xlane.f32.xlu1 %v582_v10  ;;  %v649_v10 = vld [vmem:[#allocation6 + $0xe0] sm:$0xff] }
 0x1b3   :  { %v402_v15 = vpop.xlane.xlu0 %401 }
 0x1b4   :  { %v403_v16 = vsub.f32 %v398_v47, %v402_v15  ;;  %v635_v47 = vld [vmem:[#allocation6 + $0x70] sm:$0xff]  ;;  %v644_v15 = vld [vmem:[#allocation6 + $0xb8] sm:$0xff] }
 0x1b5   :  { %658 = vmatpush.msra.mxu0 %v635_v47  ;;  %v824_v47 = vld [vmem:[#allocation8 + $0x1e0] sm:$0xff] }
 0x1b6   :  { %v404_v17 = vmul.f32 1.442695, %v403_v16  ;;  %v643_v16 = vld [vmem:[#allocation6 + $0xb0] sm:$0xff]  ;;  %838 = vmatpush.msrb.mxu2 %v824_v47 }
 0x1b7   :  { %659 = vmatpush.msra.mxu0 %v634_v48  ;;  %v825_v48 = vld [vmem:[#allocation8 + $0x1e8] sm:$0xff]  ;;  %v774_v47 = vld [vmem:[#allocation8 + $0x50] sm:$0xff] }
 0x1b8   :  { %1536 = vpow2.f32 %v404_v17  ;;  %v642_v17 = vld [vmem:[#allocation6 + $0xa8] sm:$0xff] }
 0x1b9   :  { %660 = vmatpush.msra.mxu0 %v633_v49  ;;  %v826_v49 = vld [vmem:[#allocation8 + $0x1f0] sm:$0xff] }
 0x1bb   :  { %661 = vmatpush.msra.mxu0 %v632_v51  ;;  %v822_v51 = vld [vmem:[#allocation8 + $0x1d0] sm:$0xff] }
 0x1bd   :  { %662 = vmatpush.msra.mxu0 %v631_v53  ;;  %v823_v53 = vld [vmem:[#allocation8 + $0x1d8] sm:$0xff] }
 0x1be   :  { %v1537_v19 = vpop.eup %1536 }
 0x1bf   :  { %v406_v20 = vsel %vm399_vm0, %v1537_v19, 0.0  ;;  %663 = vmatpush.msra.mxu0 %v630_v18 }
 0x1c0   :  { %407 = vadd.xlane.f32.xlu2 %v406_v20  ;;  %v640_v20 = vld [vmem:[#allocation6 + $0x98] sm:$0xff] }
 0x1c1   :  { %664 = vmatpush.msra.mxu0 %v629_v37 }
 0x1c3   :  { %665 = vmatpush.msra.mxu0 %v628_v58 }
 0x1c5   :  { %666 = vmatpush.msra.mxu0 %v627_v59 }
 0x1d3   :  { %v462_v21 = vpop.xlane.xlu0 %461 }
 0x1d4   :  { %v463_v22 = vsub.f32 %v459_v60, %v462_v21  ;;  %v626_v60 = vld [vmem:[#allocation6 + $0x28] sm:$0xff]  ;;  %v639_v21 = vld [vmem:[#allocation6 + $0x90] sm:$0xff] }
 0x1d5   :  { %667 = vmatpush.msra.mxu0 %v626_v60  ;;  %v821_v60 = vld [vmem:[#allocation8 + $0x1c8] sm:$0xff] }
 0x1d6   :  { %v464_v23 = vmul.f32 1.442695, %v463_v22  ;;  %v638_v22 = vld [vmem:[#allocation6 + $0x88] sm:$0xff] }
 0x1d7   :  { %668 = vmatpush.msra.mxu0 %v625_v61  ;;  %v816_v61 = vld [vmem:[#allocation8 + $0x1a0] sm:$0xff] }
 0x1d8   :  { %1538 = vpow2.f32 %v464_v23  ;;  %v637_v23 = vld [vmem:[#allocation6 + $0x80] sm:$0xff] }
 0x1d9   :  { %669 = vmatpush.msra.mxu0 %v624_v1  ;;  %v812_v1 = vld [vmem:[#allocation8 + $0x180] sm:$0xff] }
 0x1db   :  { %v524_v24 = vpop.xlane.xlu1 %523  ;;  %670 = vmatpush.msra.mxu0 %v623_v2  ;;  %v813_v2 = vld [vmem:[#allocation8 + $0x188] sm:$0xff] }
 0x1dc   :  { %v525_v25 = vsub.f32 %v521_v5, %v524_v24 }
 0x1dd   :  { %671 = vmatpush.msra.mxu0 %v622_v3  ;;  %v814_v3 = vld [vmem:[#allocation8 + $0x190] sm:$0xff] }
 0x1de   :  { %v1539_v26 = vpop.eup %1538  ;;  %v526_v27 = vmul.f32 1.442695, %v525_v25 }
 0x1df   :  { %v466_v28 = vsel %vm399_vm0, %v1539_v26, 0.0  ;;  %672 = vmatpush.msra.mxu0 %v621_v6  ;;  %v809_v6 = vld [vmem:[#allocation8 + $0x168] sm:$0xff] }
 0x1e0   :  { %1540 = vpow2.f32 %v526_v27  ;;  %467 = vadd.xlane.f32.xlu2 %v466_v28  ;;  %v1530_v28 = vld [vmem:[%s2212_s5] ss:$0 sm:$0xff] }
 0x1e1   :  { %884 = vmatpush.msrb.mxu0 %v826_v49  ;;  %v768_v49 = vld [vmem:[#allocation8 + $0x20] sm:$0xff] }
 0x1e3   :  { %v584_v29 = vpop.xlane.xlu1 %583  ;;  %885 = vmatpush.msrb.mxu0 %v822_v51  ;;  %v771_v51 = vld [vmem:[#allocation8 + $0x38] sm:$0xff] }
 0x1e4   :  { %v585_v30 = vsub.f32 %v581_v9, %v584_v29  ;;  %v650_v9 = vld [vmem:[#allocation6 + $0xe8] sm:$0xff] }
 0x1e5   :  { %682 = vmatpush.msra.mxu1 %v650_v9  ;;  %v804_v9 = vld [vmem:[#allocation8 + $0x140] sm:$0xff] }
 0x1e6   :  { %v1541_v31 = vpop.eup %1540  ;;  %v586_v32 = vmul.f32 1.442695, %v585_v30 }
 0x1e7   :  { %v528_v33 = vsel %vm399_vm0, %v1541_v31, 0.0  ;;  %683 = vmatpush.msra.mxu1 %v649_v10  ;;  %v805_v10 = vld [vmem:[#allocation8 + $0x148] sm:$0xff] }
 0x1e8   :  { %1542 = vpow2.f32 %v586_v32  ;;  %529 = vadd.xlane.f32.xlu0 %v528_v33 }
 0x1e9   :  { %684 = vmatpush.msra.mxu1 %v648_v11  ;;  %v806_v11 = vld [vmem:[#allocation8 + $0x150] sm:$0xff] }
 0x1eb   :  { %685 = vmatpush.msra.mxu1 %v647_v12  ;;  %v807_v12 = vld [vmem:[#allocation8 + $0x158] sm:$0xff] }
 0x1ed   :  { %686 = vmatpush.msra.mxu1 %v646_v13  ;;  %v800_v13 = vld [vmem:[#allocation8 + $0x120] sm:$0xff] }
 0x1ee   :  { %v1543_v34 = vpop.eup %1542 }
 0x1ef   :  { %v588_v35 = vsel %vm399_vm0, %v1543_v34, 0.0  ;;  %687 = vmatpush.msra.mxu1 %v645_v14  ;;  %v801_v14 = vld [vmem:[#allocation8 + $0x128] sm:$0xff] }
 0x1f0   :  { %589 = vadd.xlane.f32.xlu1 %v588_v35 }
 0x1f1   :  { %688 = vmatpush.msra.mxu1 %v644_v15  ;;  %v802_v15 = vld [vmem:[#allocation8 + $0x130] sm:$0xff] }
 0x1f3   :  { %689 = vmatpush.msra.mxu1 %v643_v16  ;;  %v803_v16 = vld [vmem:[#allocation8 + $0x138] sm:$0xff] }
 0x1f5   :  { %690 = vmatpush.msra.mxu1 %v642_v17  ;;  %v796_v17 = vld [vmem:[#allocation8 + $0x100] sm:$0xff] }
 0x233   :  { %v408_v40 = vpop.xlane.xlu2 %407 }
 0x234   :  { %1544 = vrcp.f32 %v408_v40  ;;  %v1690_v40 = vmov 128.0  }
 0x23a   :  { %v1545_v41 = vpop.eup %1544 }
 0x23b   :  { %v410_v44 = vmul.f32 %v1545_v41, %v1537_v19  ;;  %v641_v19 = vld [vmem:[#allocation6 + $0xa0] sm:$0xff] }
 0x23c   :  { %691 = vmatpush.msra.mxu1 %v641_v19  ;;  %v797_v19 = vld [vmem:[#allocation8 + $0x108] sm:$0xff] }
 0x23d   :  { %1505 = vmatmul.msk.f32.vlgmr.msrb.gmra.mxu3 %vm399_vm0, %v410_v44 }
 0x23e   :  { %551 = vmatpush.msrb.mxu3 %v289_v45  ;;  %692 = vmatpush.msra.mxu1 %v640_v20  ;;  %v798_v20 = vld [vmem:[#allocation8 + $0x110] sm:$0xff] }
 0x240   :  { %693 = vmatpush.msra.mxu1 %v639_v21  ;;  %v799_v21 = vld [vmem:[#allocation8 + $0x118] sm:$0xff] }
 0x242   :  { %694 = vmatpush.msra.mxu1 %v638_v22  ;;  %v792_v22 = vld [vmem:[#allocation8 + $0xe0] sm:$0xff] }
 0x244   :  { %695 = vmatpush.msra.mxu1 %v637_v23  ;;  %v793_v23 = vld [vmem:[#allocation8 + $0xe8] sm:$0xff] }
 0x253   :  { %v468_v50 = vpop.xlane.xlu2 %467 }
 0x254   :  { %1546 = vrcp.f32 %v468_v50  ;;  %v820_v50 = vld [vmem:[#allocation8 + $0x1c0] sm:$0xff] }
 0x255   :  { %839 = vmatpush.msrb.mxu2 %v820_v50  ;;  %v770_v50 = vld [vmem:[#allocation8 + $0x30] sm:$0xff] }
 0x257   :  { %840 = vmatpush.msrb.mxu2 %v816_v61 }
 0x259   :  { %841 = vmatpush.msrb.mxu2 %v812_v1 }
 0x25a   :  { %v1547_v43 = vpop.eup %1546 }
 0x25b   :  { %v470_v56 = vmul.f32 %v1547_v43, %v1539_v26  ;;  %v530_v57 = vpop.xlane.xlu0 %529 }
 0x25c   :  { %1548 = vrcp.f32 %v530_v57 }
 0x25d   :  { %1506 = vmatmul.msk.f32.vlgmr.msra.gmra.mxu3 %vm399_vm0, %v470_v56 }
 0x25e   :  { %611 = vmatpush.msra.mxu3 %v358_v55 }
 0x262   :  { %v1549_v62 = vpop.eup %1548 }
 0x263   :  { %v532_v63 = vmul.f32 %v1549_v62, %v1541_v31  ;;  %v590_v0 = vpop.xlane.xlu1 %589  ;;  %v817_v62 = vld [vmem:[#allocation8 + $0x1a8] sm:$0xff] }
 0x264   :  { %1550 = vrcp.f32 %v590_v0  ;;  %v819_v0 = vld [vmem:[#allocation8 + $0x1b8] sm:$0xff] }
 0x265   :  { %1507 = vmatmul.msk.f32.vlgmr.msrb.gmra.mxu3 %vm399_vm0, %v532_v63  ;;  %1552 = vrcp.f32 %v1690_v40  ;;  %v818_v63 = vld [vmem:[#allocation8 + $0x1b0] sm:$0xff]  ;;  %v777_v40 = vld [vmem:[#allocation8 + $0x68] sm:$0xff] }
 0x266   :  { %861 = vmatpush.msrb.mxu3 %v825_v48  ;;  %886 = vmatpush.msrb.mxu0 %v818_v63  ;;  %v775_v48 = vld [vmem:[#allocation8 + $0x58] sm:$0xff] }
 0x268   :  { %862 = vmatpush.msrb.mxu3 %v821_v60  ;;  %887 = vmatpush.msrb.mxu0 %v814_v3 }
 0x26a   :  { %v1551_v4 = vpop.eup %1550  ;;  %863 = vmatpush.msrb.mxu3 %v817_v62  ;;  %888 = vmatpush.msrb.mxu0 %v810_v7  ;;  %v1532_v7 = vld [vmem:[%s2214_s7] ss:$0 sm:$0xff] }
 0x26b   :  { %v592_v5 = vmul.f32 %v1551_v4, %v1543_v34  ;;  %v1553_v41 = vpop.eup %1552  ;;  %v815_v4 = vld [vmem:[#allocation8 + $0x198] sm:$0xff] }
 0x26c   :  { %v712_v44 = vmul.f32 128.0, %v1553_v41  ;;  %vm716_vm1 = vweird.f32 %v1553_v41  ;;  %864 = vmatpush.msrb.mxu3 %v813_v2  ;;  %889 = vmatpush.msrb.mxu0 %v806_v11 }
 0x26d   :  { %1508 = vmatmul.msk.f32.vlgmr.msra.gmra.mxu3 %vm399_vm0, %v592_v5  ;;  %v808_v5 = vld [vmem:[#allocation8 + $0x160] sm:$0xff] }
 0x26e   :  { %v713_v45 = vsub.f32 1.0, %v712_v44  ;;  %842 = vmatpush.msrb.mxu2 %v808_v5  ;;  %865 = vmatpush.msrb.mxu3 %v809_v6  ;;  %v779_v44 = vld [vmem:[#allocation8 + $0x78] sm:$0xff] }
 0x26f   :  { %890 = vmatpush.msrb.mxu0 %v802_v15 }
 0x270   :  { %v714_v46 = vmul.f32 %v1553_v41, %v713_v45  ;;  %843 = vmatpush.msrb.mxu2 %v804_v9  ;;  %866 = vmatpush.msrb.mxu3 %v805_v10  ;;  %v772_v45 = vld [vmem:[#allocation8 + $0x40] sm:$0xff] }
 0x271   :  { %891 = vmatpush.msrb.mxu0 %v798_v20  ;;  %v1878_v20 = vld [vmem:[%s2216_s9] sm:$0xf] }
 0x272   :  { %v715_v54 = vadd.f32 %v1553_v41, %v714_v46  ;;  %844 = vmatpush.msrb.mxu2 %v800_v13  ;;  %867 = vmatpush.msrb.mxu3 %v801_v14  ;;  %v773_v46 = vld [vmem:[#allocation8 + $0x48] sm:$0xff] }
 0x274   :  { %845 = vmatpush.msrb.mxu2 %v796_v17  ;;  %868 = vmatpush.msrb.mxu3 %v797_v19 }
 0x276   :  { %846 = vmatpush.msrb.mxu2 %v792_v22  ;;  %869 = vmatpush.msrb.mxu3 %v793_v23 }
 0x2c0   :  { %v431_v24 = vpop.f32.mrf.mxu3 }
 0x2c1   :  { %673 = vmatmul.f32.vlgmr.msra.gmra.mxu0 %v431_v24  ;;  %v794_v24 = vld [vmem:[#allocation8 + $0xf0] sm:$0xff] }
 0x2c2   :  { %892 = vmatpush.msrb.mxu0 %v794_v24 }
 0x2e0   :  { %v491_v25 = vpop.f32.mrf.mxu3 }
 0x2e1   :  { %696 = vmatmul.f32.vlgmr.msra.gmra.mxu1 %v491_v25  ;;  %v795_v25 = vld [vmem:[#allocation8 + $0xf8] sm:$0xff] }
 0x2e8   :  { %v553_v26 = vpop.f32.mrf.mxu3 }
 0x2e9   :  { %676 = vmatmul.f32.gmra.mxu0 %v553_v26  ;;  %v788_v26 = vld [vmem:[#allocation8 + $0xc0] sm:$0xff] }
 0x2ea   :  { %847 = vmatpush.msrb.mxu2 %v788_v26  ;;  %v830_v26 = vperm.slane %v1878_v20, 0 }
 0x2f0   :  { %v613_v27 = vpop.f32.mrf.mxu3 }
 0x2f1   :  { %699 = vmatmul.f32.gmra.mxu1 %v613_v27  ;;  %v789_v27 = vld [vmem:[#allocation8 + $0xc8] sm:$0xff] }
 0x2f2   :  { %870 = vmatpush.msrb.mxu3 %v789_v27  ;;  %v831_v27 = vperm.slane %v1878_v20, 1 }
 0x33e   :  { %v674_v29 = vpop.f32.mrf.mxu0 }
 0x33f   :  { %v675_v30 = vadd.f32 %v1530_v28, %v674_v29  ;;  %v791_v29 = vld [vmem:[#allocation8 + $0xd8] sm:$0xff] }
 0x35e   :  { %v697_v31 = vpop.f32.mrf.mxu1 }
 0x35f   :  { %v698_v32 = vadd.f32 %v697_v31, %v675_v30  ;;  %v784_v30 = vld [vmem:[#allocation8 + $0xa0] sm:$0xff]  ;;  %v785_v31 = vld [vmem:[#allocation8 + $0xa8] sm:$0xff] }
 0x360   :  { %848 = vmatpush.msrb.mxu2 %v784_v30  ;;  %871 = vmatpush.msrb.mxu3 %v785_v31 }
 0x361   :  { %v703_v33 = vadd.f32 %v698_v32, %v1781_v42  ;;  %v827_v42 = vld [vmem:[#allocation8 + $0x1f8] sm:$0xff]  ;;  %v786_v32 = vld [vmem:[#allocation8 + $0xb0] sm:$0xff] }
 0x362   :  { %907 = vmatpush.msrb.mxu1 %v827_v42  ;;  %v769_v42 = vld [vmem:[#allocation8 + $0x28] sm:$0xff] }
 0x363   :  { %707 = vadd.xlane.f32.xlu2 %v703_v33 }
 0x364   :  { %908 = vmatpush.msrb.mxu1 %v823_v53  ;;  %v764_v53 = vld [vmem:[#allocation8] sm:$0xff] }
 0x366   :  { %v677_v34 = vpop.f32.mrf.mxu0  ;;  %909 = vmatpush.msrb.mxu1 %v819_v0 }
 0x367   :  { %v678_v35 = vadd.f32 %v1530_v28, %v677_v34  ;;  %v790_v28 = vld [vmem:[#allocation8 + $0xd0] sm:$0xff]  ;;  %v780_v34 = vld [vmem:[#allocation8 + $0x80] sm:$0xff] }
 0x368   :  { %910 = vmatpush.msrb.mxu1 %v815_v4  ;;  %893 = vmatpush.msrb.mxu0 %v790_v28  ;;  %v1531_v4 = vld [vmem:[%s2213_s6] ss:$0 sm:$0xff] }
 0x369   :  { %849 = vmatpush.msrb.mxu2 %v780_v34 }
 0x36a   :  { %911 = vmatpush.msrb.mxu1 %v811_v8  ;;  %894 = vmatpush.msrb.mxu0 %v786_v32 }
 0x36c   :  { %912 = vmatpush.msrb.mxu1 %v807_v12 }
 0x36e   :  { %v700_v36 = vpop.f32.mrf.mxu1  ;;  %913 = vmatpush.msrb.mxu1 %v803_v16 }
 0x36f   :  { %v701_v38 = vadd.f32 %v700_v36, %v678_v35  ;;  %v781_v35 = vld [vmem:[#allocation8 + $0x88] sm:$0xff]  ;;  %v782_v36 = vld [vmem:[#allocation8 + $0x90] sm:$0xff] }
 0x370   :  { %914 = vmatpush.msrb.mxu1 %v799_v21  ;;  %872 = vmatpush.msrb.mxu3 %v781_v35  ;;  %v832_v21 = vperm.slane %v1878_v20, 2 }
 0x371   :  { %v704_v39 = vadd.f32 %v701_v38, %v1788_v52  ;;  %v1841_v52 = vsel %vm716_vm1, %v1553_v41, %v715_v54  ;;  %v783_v38 = vld [vmem:[#allocation8 + $0x98] sm:$0xff]  ;;  %895 = vmatpush.msrb.mxu0 %v782_v36  ;;  %v778_v41 = vld [vmem:[#allocation8 + $0x70] sm:$0xff]  ;;  %v765_v54 = vld [vmem:[#allocation8 + $0x8] sm:$0xff] }
 0x372   :  { %915 = vmatpush.msrb.mxu1 %v795_v25  ;;  %873 = vmatpush.msrb.mxu3 %v777_v40 }
 0x373   :  { %709 = vadd.xlane.f32.xlu0 %v704_v39  ;;  %896 = vmatpush.msrb.mxu0 %v778_v41 }
 0x374   :  { %916 = vmatpush.msrb.mxu1 %v791_v29  ;;  %874 = vmatpush.msrb.mxu3 %v773_v46 }
 0x375   :  { %897 = vmatpush.msrb.mxu0 %v774_v47 }
 0x376   :  { %875 = vmatpush.msrb.mxu3 %v769_v42 }
 0x377   :  { %898 = vmatpush.msrb.mxu0 %v770_v50 }
 0x378   :  { %876 = vmatpush.msrb.mxu3 %v765_v54 }
 0x3d6   :  { %v708_v18 = vpop.xlane.xlu2 %707 }
 0x3d7   :  { %v718_v37 = vmul.f32 %v1841_v52, %v708_v18  ;;  %v766_v18 = vld [vmem:[#allocation8 + $0x10] sm:$0xff] }
 0x3d8   :  { %899 = vmatpush.msrb.mxu0 %v766_v18 }
 0x3d9   :  { %v1844_v43 = vsub.f32 %v703_v33, %v718_v37  ;;  %v787_v33 = vld [vmem:[#allocation8 + $0xb8] sm:$0xff] }
 0x3da   :  { %917 = vmatpush.msrb.mxu1 %v787_v33  ;;  %v767_v37 = vld [vmem:[#allocation8 + $0x18] sm:$0xff] }
 0x3db   :  { %v722_v55 = vmul.f32 %v1844_v43, %v1844_v43 }
 0x3dc   :  { %918 = vmatpush.msrb.mxu1 %v783_v38 }
 0x3dd   :  { %724 = vadd.xlane.f32.xlu1 %v722_v55 }
 0x3de   :  { %919 = vmatpush.msrb.mxu1 %v779_v44 }
 0x3e0   :  { %920 = vmatpush.msrb.mxu1 %v775_v48 }
 0x3e2   :  { %921 = vmatpush.msrb.mxu1 %v771_v51 }
 0x3e4   :  { %922 = vmatpush.msrb.mxu1 %v767_v37 }
 0x3e6   :  { %v710_v56 = vpop.xlane.xlu0 %709 }
 0x3e7   :  { %v719_v57 = vmul.f32 %v1841_v52, %v710_v56 }
 0x3e9   :  { %v1849_v58 = vsub.f32 %v704_v39, %v719_v57  ;;  %v776_v39 = vld [vmem:[#allocation8 + $0x60] sm:$0xff] }
 0x3ea   :  { %850 = vmatpush.msrb.mxu2 %v776_v39 }
 0x3eb   :  { %v723_v59 = vmul.f32 %v1849_v58, %v1849_v58 }
 0x3ec   :  { %851 = vmatpush.msrb.mxu2 %v772_v45 }
 0x3ed   :  { %726 = vadd.xlane.f32.xlu2 %v723_v59 }
 0x3ee   :  { %852 = vmatpush.msrb.mxu2 %v768_v49 }
 0x3f0   :  { %853 = vmatpush.msrb.mxu2 %v764_v53 }
 0x450   :  { %v725_v55 = vpop.xlane.xlu1 %724 }
 0x451   :  { %v728_v56 = vmul.f32 %v725_v55, %v1841_v52 }
 0x453   :  { %v730_v57 = vadd.f32 1e-12, %v728_v56 }
 0x455   :  { %1554 = vrsqrt.f32 %v730_v57  ;;  %vm738_vm3 = vweird.f32 %v730_v57 }
 0x45b   :  { %v1555_v59 = vpop.eup %1554 }
 0x45c   :  { %v733_v60 = vmul.f32 %v1555_v59, %v730_v57  ;;  %vm739_vm2 = vweird.f32 %v1555_v59 }
 0x45d   :  { %vm740_vm4 = vmor %vm738_vm3, %vm739_vm2 }
 0x45e   :  { %v734_v61 = vmul.f32 %v1555_v59, %v733_v60 }
 0x460   :  { %v735_v62 = vmul.f32 0.5, %v734_v61  ;;  %v727_v63 = vpop.xlane.xlu2 %726 }
 0x461   :  { %v729_v0 = vmul.f32 %v727_v63, %v1841_v52 }
 0x462   :  { %v736_v1 = vsub.f32 1.5, %v735_v62 }
 0x463   :  { %v731_v2 = vadd.f32 1e-12, %v729_v0 }
 0x464   :  { %v737_v3 = vmul.f32 %v1555_v59, %v736_v1 }
 0x465   :  { %1556 = vrsqrt.f32 %v731_v2  ;;  %vm748_vm6 = vweird.f32 %v731_v2 }
 0x466   :  { %v741_v5 = vsel %vm740_vm4, %v1555_v59, %v737_v3 }
 0x467   :  { %v752_v6 = vmul.f32 %v741_v5, %v1844_v43 }
 0x469   :  { %v757_v8 = vmul.f32 %v1531_v4, %v752_v6 }
 0x46b   :  { %v1557_v9 = vpop.eup %1556  ;;  %v1862_v10 = vadd.f32 %v1532_v7, %v757_v8  ;;  %v1345_v8 = vld [vmem:[#allocation9 + $0x1f8] sm:$0xff] }
 0x46c   :  { %v743_v11 = vmul.f32 %v1557_v9, %v731_v2  ;;  %vm749_vm5 = vweird.f32 %v1557_v9  ;;  %1419 = vmatpush.msra.mxu1 %v1345_v8 }
 0x46d   :  { %854 = vmatmul.f32.vlgmr.msrb.gmra.mxu2 %v1862_v10  ;;  %877 = vmatmul.f32.vlgmr.msrb.gmra.mxu3 %v1862_v10  ;;  %vm750_vm7 = vmor %vm748_vm6, %vm749_vm5 }
 0x46e   :  { %v744_v12 = vmul.f32 %v1557_v9, %v743_v11  ;;  %900 = vmatmul.f32.vlgmr.msrb.gmra.mxu0 %v1862_v10  ;;  %923 = vmatmul.f32.vlgmr.msrb.gmra.mxu1 %v1862_v10 }
 0x470   :  { %v745_v13 = vmul.f32 0.5, %v744_v12 }
 0x472   :  { %v746_v43 = vsub.f32 1.5, %v745_v13 }
 0x474   :  { %v747_v14 = vmul.f32 %v1557_v9, %v746_v43 }
 0x476   :  { %v751_v15 = vsel %vm750_vm7, %v1557_v9, %v747_v14  ;;  %v1328_v9 = vld [vmem:[#allocation9 + $0x170] sm:$0xff] }
 0x477   :  { %v753_v16 = vmul.f32 %v751_v15, %v1849_v58  ;;  %v833_v58 = vperm.slane %v1878_v20, 3  ;;  %v1344_v14 = vld [vmem:[#allocation9 + $0x1f0] sm:$0xff]  ;;  %v1286_v20 = vld [vmem:[#allocation9 + $0x20] sm:$0xff] }
 0x478   :  { %1420 = vmatpush.msra.mxu1 %v1344_v14  ;;  %v1324_v14 = vld [vmem:[#allocation9 + $0x150] sm:$0xff] }
 0x479   :  { %v758_v17 = vmul.f32 %v1531_v4, %v753_v16 }
 0x47b   :  { %v1869_v19 = vadd.f32 %v1532_v7, %v758_v17  ;;  %v1329_v7 = vld [vmem:[#allocation9 + $0x178] sm:$0xff] }
 0x47c   :  { %1396 = vmatpush.msra.mxu0 %v1329_v7 }
 0x47d   :  { %857 = vmatmul.f32.gmra.mxu2 %v1869_v19  ;;  %880 = vmatmul.f32.gmra.mxu3 %v1869_v19 }
 0x47e   :  { %903 = vmatmul.f32.gmra.mxu0 %v1869_v19  ;;  %926 = vmatmul.f32.gmra.mxu1 %v1869_v19 }
 0x47f   :  { %1397 = vmatpush.msra.mxu0 %v1328_v9  ;;  %v1341_v9 = vld [vmem:[#allocation9 + $0x1d8] sm:$0xff] }
 0x4eb   :  { %v901_v22 = vpop.f32.mrf.mxu0  ;;  %v924_v23 = vpop.f32.mrf.mxu1 }
 0x4ec   :  { %v1884_v24 = vadd.f32 %v901_v22, %v832_v21  ;;  %v1888_v25 = vadd.f32 %v924_v23, %v833_v58 }
 0x4ee   :  { %v1893_v28 = vmul.f32 0.70710677, %v1884_v24  ;;  %v1896_v29 = vmul.f32 0.70710677, %v1888_v25 }
 0x4f0   :  { %v1026_v30 = vmul.f32 %v1893_v28, %v1893_v28  ;;  %v1066_v31 = vmul.f32 %v1896_v29, %v1896_v29  ;;  %v855_v32 = vpop.f32.mrf.mxu2  ;;  %v878_v33 = vpop.f32.mrf.mxu3 }
 0x4f1   :  { %v1904_v34 = vadd.f32 %v855_v32, %v830_v26  ;;  %v1908_v35 = vadd.f32 %v878_v33, %v831_v27 }
 0x4f2   :  { %v1910_v36 = vmin.f32 %v1026_v30, 16.0  ;;  %v1912_v38 = vmin.f32 %v1066_v31, 16.0 }
 0x4f3   :  { %v1915_v39 = vmul.f32 0.70710677, %v1904_v34  ;;  %v1918_v40 = vmul.f32 0.70710677, %v1908_v35 }
 0x4f4   :  { %v1028_v41 = vmul.f32 2.1237322e-06, %v1910_v36  ;;  %v1039_v44 = vmul.f32 3.8918573e-05, %v1910_v36  ;;  %v1068_v45 = vmul.f32 2.1237322e-06, %v1912_v38 }
 0x4f5   :  { %v1079_v46 = vmul.f32 3.8918573e-05, %v1912_v38  ;;  %v946_v47 = vmul.f32 %v1915_v39, %v1915_v39  ;;  %v986_v48 = vmul.f32 %v1918_v40, %v1918_v40 }
 0x4f6   :  { %v1029_v49 = vadd.f32 0.00028619796, %v1028_v41  ;;  %v1040_v42 = vadd.f32 0.001143296, %v1039_v44  ;;  %v1069_v50 = vadd.f32 0.00028619796, %v1068_v45 }
 0x4f7   :  { %v1080_v51 = vadd.f32 0.001143296, %v1079_v46  ;;  %v1928_v53 = vmin.f32 %v946_v47, 16.0  ;;  %v1930_v54 = vmin.f32 %v986_v48, 16.0  ;;  %v1327_v45 = vld [vmem:[#allocation9 + $0x168] sm:$0xff]  ;;  %v1297_v47 = vld [vmem:[#allocation9 + $0x78] sm:$0xff] }
 0x4f8   :  { %v1030_v18 = vmul.f32 %v1029_v49, %v1910_v36  ;;  %v1041_v37 = vmul.f32 %v1040_v42, %v1910_v36  ;;  %v1070_v55 = vmul.f32 %v1069_v50, %v1912_v38  ;;  %v1343_v46 = vld [vmem:[#allocation9 + $0x1e8] sm:$0xff]  ;;  %1398 = vmatpush.msra.mxu0 %v1327_v45  ;;  %1350 = vmatpush.msra.mxu2 %v1297_v47  ;;  %v1293_v45 = vld [vmem:[#allocation9 + $0x58] sm:$0xff] }
 0x4f9   :  { %v1081_v56 = vmul.f32 %v1080_v51, %v1912_v38  ;;  %v948_v57 = vmul.f32 2.1237322e-06, %v1928_v53  ;;  %v959_v59 = vmul.f32 3.8918573e-05, %v1928_v53  ;;  %v988_v60 = vmul.f32 2.1237322e-06, %v1930_v54  ;;  %1421 = vmatpush.msra.mxu1 %v1343_v46 }
 0x4fa   :  { %v1031_v61 = vadd.f32 0.0036580483, %v1030_v18  ;;  %v1042_v62 = vadd.f32 0.014752088, %v1041_v37  ;;  %v1071_v63 = vadd.f32 0.0036580483, %v1070_v55 }
 0x4fb   :  { %v1082_v0 = vadd.f32 0.014752088, %v1081_v56  ;;  %v949_v1 = vadd.f32 0.00028619796, %v948_v57  ;;  %v960_v2 = vadd.f32 0.001143296, %v959_v59 }
 0x4fc   :  { %v1032_v3 = vmul.f32 %v1031_v61, %v1910_v36  ;;  %v1043_v4 = vmul.f32 %v1042_v62, %v1910_v36  ;;  %v1072_v5 = vmul.f32 %v1071_v63, %v1912_v38  ;;  %v989_v6 = vadd.f32 0.00028619796, %v988_v60  ;;  %v1313_v51 = vld [vmem:[#allocation9 + $0xf8] sm:$0xff]  ;;  %v1326_v18 = vld [vmem:[#allocation9 + $0x160] sm:$0xff] }
 0x4fd   :  { %v1083_v11 = vmul.f32 %v1082_v0, %v1912_v38  ;;  %v950_v12 = vmul.f32 %v949_v1, %v1928_v53  ;;  %v961_v13 = vmul.f32 %v960_v2, %v1928_v53  ;;  %v999_v43 = vmul.f32 3.8918573e-05, %v1930_v54  ;;  %v1342_v37 = vld [vmem:[#allocation9 + $0x1e0] sm:$0xff]  ;;  %1373 = vmatpush.msra.mxu3 %v1313_v51  ;;  %1399 = vmatpush.msra.mxu0 %v1326_v18  ;;  %v1296_v2 = vld [vmem:[#allocation9 + $0x70] sm:$0xff]  ;;  %v1309_v46 = vld [vmem:[#allocation9 + $0xd8] sm:$0xff] }
 0x4fe   :  { %v1033_v15 = vadd.f32 0.05243302, %v1032_v3  ;;  %v1044_v16 = vadd.f32 0.112945676, %v1043_v4  ;;  %v1073_v17 = vadd.f32 0.05243302, %v1072_v5  ;;  %v990_v22 = vmul.f32 %v989_v6, %v1930_v54  ;;  %1422 = vmatpush.msra.mxu1 %v1342_v37  ;;  %1351 = vmatpush.msra.mxu2 %v1296_v2 }
 0x4ff   :  { %v1084_v23 = vadd.f32 0.112945676, %v1083_v11  ;;  %v951_v30 = vadd.f32 0.0036580483, %v950_v12  ;;  %v962_v31 = vadd.f32 0.014752088, %v961_v13 }
 0x500   :  { %v1034_v32 = vmul.f32 %v1033_v15, %v1910_v36  ;;  %v1045_v33 = vmul.f32 %v1044_v16, %v1910_v36  ;;  %v1074_v41 = vmul.f32 %v1073_v17, %v1912_v38  ;;  %v991_v44 = vadd.f32 0.0036580483, %v990_v22  ;;  %v1312_v3 = vld [vmem:[#allocation9 + $0xf0] sm:$0xff]  ;;  %v1325_v4 = vld [vmem:[#allocation9 + $0x158] sm:$0xff]  ;;  %v1295_v11 = vld [vmem:[#allocation9 + $0x68] sm:$0xff]  ;;  %1423 = vmatpush.msra.mxu1 %v1341_v9 }
 0x501   :  { %v1085_v48 = vmul.f32 %v1084_v23, %v1912_v38  ;;  %v952_v49 = vmul.f32 %v951_v30, %v1928_v53  ;;  %v963_v42 = vmul.f32 %v962_v31, %v1928_v53  ;;  %v1000_v50 = vadd.f32 0.001143296, %v999_v43  ;;  %1374 = vmatpush.msra.mxu3 %v1312_v3  ;;  %v1311_v12 = vld [vmem:[#allocation9 + $0xe8] sm:$0xff]  ;;  %1400 = vmatpush.msra.mxu0 %v1325_v4  ;;  %v1340_v23 = vld [vmem:[#allocation9 + $0x1d0] sm:$0xff]  ;;  %v1294_v31 = vld [vmem:[#allocation9 + $0x60] sm:$0xff] }
 0x502   :  { %v1035_v55 = vadd.f32 0.18741608, %v1034_v32  ;;  %v1046_v56 = vadd.f32 0.4994258, %v1045_v33  ;;  %v1075_v57 = vadd.f32 0.18741608, %v1074_v41  ;;  %v992_v59 = vmul.f32 %v991_v44, %v1930_v54  ;;  %1352 = vmatpush.msra.mxu2 %v1295_v11  ;;  %1424 = vmatpush.msra.mxu1 %v1340_v23 }
 0x503   :  { %v1086_v60 = vadd.f32 0.4994258, %v1085_v48  ;;  %v953_v61 = vadd.f32 0.05243302, %v952_v49  ;;  %v964_v62 = vadd.f32 0.112945676, %v963_v42  ;;  %v1001_v63 = vmul.f32 %v1000_v50, %v1930_v54  ;;  %1375 = vmatpush.msra.mxu3 %v1311_v12  ;;  %1401 = vmatpush.msra.mxu0 %v1324_v14 }
 0x504   :  { %v1036_v0 = vmul.f32 %v1035_v55, %v1910_v36  ;;  %v1047_v1 = vmul.f32 %v1046_v56, %v1910_v36  ;;  %v1076_v43 = vmul.f32 %v1075_v57, %v1912_v38  ;;  %v904_v36 = vpop.f32.mrf.mxu0  ;;  %v993_v17 = vadd.f32 0.05243302, %v992_v59  ;;  %v1323_v32 = vld [vmem:[#allocation9 + $0x148] sm:$0xff]  ;;  %1353 = vmatpush.msra.mxu2 %v1294_v31  ;;  %v1322_v48 = vld [vmem:[#allocation9 + $0x140] sm:$0xff]  ;;  %v1308_v57 = vld [vmem:[#allocation9 + $0xd0] sm:$0xff] }
 0x505   :  { %v1087_v5 = vmul.f32 %v1086_v60, %v1912_v38  ;;  %v954_v6 = vmul.f32 %v953_v61, %v1928_v53  ;;  %v965_v7 = vmul.f32 %v964_v62, %v1928_v53  ;;  %v1002_v8 = vadd.f32 0.014752088, %v1001_v63  ;;  %v1310_v38 = vld [vmem:[#allocation9 + $0xe0] sm:$0xff]  ;;  %v1339_v44 = vld [vmem:[#allocation9 + $0x1c8] sm:$0xff]  ;;  %1402 = vmatpush.msra.mxu0 %v1323_v32  ;;  %v927_v62 = vpop.f32.mrf.mxu1  ;;  %v1320_v4 = vld [vmem:[#allocation9 + $0x130] sm:$0xff] }
 0x506   :  { %v1960_v13 = vadd.f32 1.0, %v1047_v1  ;;  %v1037_v30 = vadd.f32 1.1283791, %v1036_v0  ;;  %v1970_v41 = vadd.f32 %v904_v36, %v832_v21  ;;  %1376 = vmatpush.msra.mxu3 %v1310_v38  ;;  %v1077_v47 = vadd.f32 1.1283791, %v1076_v43  ;;  %1425 = vmatpush.msra.mxu1 %v1339_v44  ;;  %v1338_v49 = vld [vmem:[#allocation9 + $0x1c0] sm:$0xff] }
 0x507   :  { %v1963_v15 = vadd.f32 1.0, %v1087_v5  ;;  %v966_v16 = vadd.f32 0.4994258, %v965_v7  ;;  %v1003_v22 = vmul.f32 %v1002_v8, %v1930_v54  ;;  %v955_v33 = vadd.f32 0.18741608, %v954_v6  ;;  %1354 = vmatpush.msra.mxu2 %v1293_v45  ;;  %v1292_v21 = vld [vmem:[#allocation9 + $0x50] sm:$0xff]  ;;  %1403 = vmatpush.msra.mxu0 %v1322_v48  ;;  %v881_v45 = vpop.f32.mrf.mxu3 }
 0x508   :  { %1558 = vrcp.f32 %v1960_v13  ;;  %v1973_v42 = vmul.f32 0.5, %v1884_v24  ;;  %v1058_v50 = vand.u32 2147483647, %v1960_v13  ;;  %1377 = vmatpush.msra.mxu3 %v1309_v46  ;;  %v1978_v37 = vmul.f32 %v1037_v30, %v1893_v28  ;;  %1426 = vmatpush.msra.mxu1 %v1338_v49  ;;  %v1291_v63 = vld [vmem:[#allocation9 + $0x48] sm:$0xff]  ;;  %v1336_v5 = vld [vmem:[#allocation9 + $0x1b0] sm:$0xff]  ;;  %v1306_v9 = vld [vmem:[#allocation9 + $0xc0] sm:$0xff] }
 0x509   :  { %1560 = vrcp.f32 %v1963_v15  ;;  %v967_v51 = vmul.f32 %v966_v16, %v1928_v53  ;;  %v1004_v18 = vadd.f32 0.112945676, %v1003_v22  ;;  %v1981_v55 = vmul.f32 0.5, %v1888_v25  ;;  %1355 = vmatpush.msra.mxu2 %v1292_v21  ;;  %v1321_v25 = vld [vmem:[#allocation9 + $0x138] sm:$0xff]  ;;  %v1307_v3 = vld [vmem:[#allocation9 + $0xc8] sm:$0xff]  ;;  %v858_v16 = vpop.f32.mrf.mxu2  ;;  %v1318_v46 = vld [vmem:[#allocation9 + $0x120] sm:$0xff] }
 0x50a   :  { %v1984_v56 = vmul.f32 0.5, %v1904_v34  ;;  %v994_v24 = vmul.f32 %v993_v17, %v1930_v54  ;;  %v956_v59 = vmul.f32 %v955_v33, %v1928_v53  ;;  %v1992_v28 = vmul.f32 0.70710677, %v1970_v41  ;;  %1378 = vmatpush.msra.mxu3 %v1308_v57  ;;  %v1337_v34 = vld [vmem:[#allocation9 + $0x1b8] sm:$0xff]  ;;  %1404 = vmatpush.msra.mxu0 %v1321_v25  ;;  %v1319_v11 = vld [vmem:[#allocation9 + $0x128] sm:$0xff]  ;;  %v1304_v21 = vld [vmem:[#allocation9 + $0xb0] sm:$0xff] }
 0x50b   :  { %v1988_v60 = vadd.f32 1.0, %v967_v51  ;;  %v1005_v61 = vmul.f32 %v1004_v18, %v1930_v54  ;;  %vm1054_vm8 = vweird.f32 %v1960_v13  ;;  %v1060_v1 = vand.u32 2147483648, %v1960_v13  ;;  %1427 = vmatpush.msra.mxu1 %v1337_v34  ;;  %1356 = vmatpush.msra.mxu2 %v1291_v63  ;;  %v1335_v17 = vld [vmem:[#allocation9 + $0x1a8] sm:$0xff]  ;;  %v1289_v22 = vld [vmem:[#allocation9 + $0x38] sm:$0xff]  ;;  %v1288_v18 = vld [vmem:[#allocation9 + $0x30] sm:$0xff] }
 0x50c   :  { %v1999_v53 = vmul.f32 %v1077_v47, %v1896_v29  ;;  %v1098_v2 = vand.u32 2147483647, %v1963_v15  ;;  %vm2006_vm9 = vcmp.eq.f32.partialorder %v1058_v50, 8.507059e+37  ;;  %vm1094_vm10 = vweird.f32 %v1963_v15  ;;  %v1290_v29 = vld [vmem:[#allocation9 + $0x40] sm:$0xff]  ;;  %1379 = vmatpush.msra.mxu3 %v1307_v3  ;;  %1405 = vmatpush.msra.mxu0 %v1320_v4  ;;  %v1305_v32 = vld [vmem:[#allocation9 + $0xb8] sm:$0xff]  ;;  %v1303_v3 = vld [vmem:[#allocation9 + $0xa8] sm:$0xff] }
 0x50d   :  { %1562 = vrcp.f32 %v1988_v60  ;;  %v1100_v43 = vand.u32 2147483648, %v1963_v15  ;;  %v995_v36 = vadd.f32 0.18741608, %v994_v24  ;;  %v2017_v14 = vadd.f32 %v927_v62, %v833_v58  ;;  %1428 = vmatpush.msra.mxu1 %v1336_v5  ;;  %1357 = vmatpush.msra.mxu2 %v1290_v29  ;;  %v1334_v47 = vld [vmem:[#allocation9 + $0x1a0] sm:$0xff]  ;;  %v1317_v24 = vld [vmem:[#allocation9 + $0x118] sm:$0xff]  ;;  %v1332_v29 = vld [vmem:[#allocation9 + $0x190] sm:$0xff] }
 0x50e   :  { %v1994_v0 = vpop.eup %1558  ;;  %v957_v30 = vadd.f32 1.1283791, %v956_v59  ;;  %v1006_v31 = vadd.f32 0.4994258, %v1005_v61  ;;  %v1186_v38 = vmul.f32 %v1992_v28, %v1992_v28  ;;  %v1061_v33 = vor.u32 1.1754944e-38, %v1060_v1  ;;  %1380 = vmatpush.msra.mxu3 %v1306_v9  ;;  %1406 = vmatpush.msra.mxu0 %v1319_v11  ;;  %v1333_v62 = vld [vmem:[#allocation9 + $0x198] sm:$0xff] }
 0x50f   :  { %v2002_v6 = vpop.eup %1560  ;;  %v1050_v7 = vmul.f32 %v1994_v0, %v1960_v13  ;;  %vm1055_vm11 = vweird.f32 %v1994_v0  ;;  %vm2022_vm12 = vcmp.eq.f32.partialorder %v1098_v2, 8.507059e+37  ;;  %v2032_v51 = vadd.f32 %v858_v16, %v830_v26  ;;  %1429 = vmatpush.msra.mxu1 %v1335_v17  ;;  %1358 = vmatpush.msra.mxu2 %v1289_v22  ;;  %v1287_v2 = vld [vmem:[#allocation9 + $0x28] sm:$0xff]  ;;  %v1285_v22 = vld [vmem:[#allocation9 + $0x18] sm:$0xff]  ;;  %v1284_v58 = vld [vmem:[#allocation9 + $0x10] sm:$0xff] }
 0x510   :  { %v1090_v12 = vmul.f32 %v2002_v6, %v1963_v15  ;;  %v1007_v49 = vmul.f32 %v1006_v31, %v1930_v54  ;;  %v2028_v50 = vmin.f32 %v1186_v38, 16.0  ;;  %vm1095_vm13 = vweird.f32 %v2002_v6  ;;  %1381 = vmatpush.msra.mxu3 %v1305_v32  ;;  %1407 = vmatpush.msra.mxu0 %v1318_v46  ;;  %vm2047_vm14 = vmor %vm1054_vm8, %vm1055_vm11  ;;  %v1331_v17 = vld [vmem:[#allocation9 + $0x188] sm:$0xff]  ;;  %v1301_v38 = vld [vmem:[#allocation9 + $0x98] sm:$0xff] }
 0x511   :  { %v1051_v23 = vsub.f32 1.0, %v1050_v7  ;;  %v996_v59 = vmul.f32 %v995_v36, %v1930_v54  ;;  %v2038_v61 = vmul.f32 0.70710677, %v2017_v14  ;;  %v2052_v54 = vmul.f32 %v957_v30, %v1915_v39  ;;  %1430 = vmatpush.msra.mxu1 %v1334_v47  ;;  %1359 = vmatpush.msra.mxu2 %v1288_v18  ;;  %v1316_v7 = vld [vmem:[#allocation9 + $0x110] sm:$0xff]  ;;  %vm2072_vm15 = vmor %vm1094_vm10, %vm1095_vm13  ;;  %v1315_v36 = vld [vmem:[#allocation9 + $0x108] sm:$0xff] }
 0x512   :  { %v1091_v44 = vsub.f32 1.0, %v1090_v12  ;;  %v2054_v63 = vadd.f32 1.0, %v1007_v49  ;;  %v2058_v1 = vadd.f32 %v881_v45, %v831_v27  ;;  %v1101_v13 = vor.u32 1.1754944e-38, %v1100_v43  ;;  %1382 = vmatpush.msra.mxu3 %v1304_v21  ;;  %1408 = vmatpush.msra.mxu0 %v1317_v24  ;;  %v1302_v43 = vld [vmem:[#allocation9 + $0xa0] sm:$0xff]  ;;  %v1300_v49 = vld [vmem:[#allocation9 + $0x90] sm:$0xff]  ;;  %v1299_v34 = vld [vmem:[#allocation9 + $0x88] sm:$0xff] }
 0x513   :  { %v1052_v48 = vmul.f32 %v1994_v0, %v1051_v23  ;;  %v2040_v25 = vpop.eup %1562  ;;  %v1226_v39 = vmul.f32 %v2038_v61, %v2038_v61  ;;  %v1188_v11 = vmul.f32 2.1237322e-06, %v2028_v50  ;;  %v2079_v12 = vmul.f32 0.70710677, %v2032_v51  ;;  %1431 = vmatpush.msra.mxu1 %v1333_v62  ;;  %1360 = vmatpush.msra.mxu2 %v1287_v2 }
 0x514   :  { %v1092_v57 = vmul.f32 %v2002_v6, %v1091_v44  ;;  %v970_v5 = vmul.f32 %v2040_v25, %v1988_v60  ;;  %1564 = vrcp.f32 %v2054_v63  ;;  %vm974_vm0 = vweird.f32 %v1988_v60  ;;  %1383 = vmatpush.msra.mxu3 %v1303_v3  ;;  %1409 = vmatpush.msra.mxu0 %v1316_v7 }
 0x515   :  { %v1053_v26 = vadd.f32 %v1994_v0, %v1052_v48  ;;  %v978_v31 = vand.u32 2147483647, %v1988_v60  ;;  %v980_v8 = vand.u32 2147483648, %v1988_v60  ;;  %1432 = vmatpush.msra.mxu1 %v1332_v29  ;;  %1361 = vmatpush.msra.mxu2 %v1286_v20  ;;  %vm975_vm1 = vweird.f32 %v2040_v25 }
 0x516   :  { %v1093_v4 = vadd.f32 %v2002_v6, %v1092_v57  ;;  %v971_v16 = vsub.f32 1.0, %v970_v5  ;;  %v2095_v44 = vmin.f32 %v1226_v39, 16.0  ;;  %1384 = vmatpush.msra.mxu3 %v1302_v43  ;;  %1410 = vmatpush.msra.mxu0 %v1315_v36  ;;  %v997_v46 = vadd.f32 1.1283791, %v996_v59  ;;  %v1283_v57 = vld [vmem:[#allocation9 + $0x8] sm:$0xff]  ;;  %vm976_vm2 = vmor %vm974_vm0, %vm975_vm1  ;;  %v1282_v39 = vld [vmem:[#allocation9] sm:$0xff] }
 0x517   :  { %v1057_v27 = vsel %vm2047_vm14, %v1994_v0, %v1053_v26  ;;  %v1189_v47 = vadd.f32 0.00028619796, %v1188_v11  ;;  %v1106_v48 = vmul.f32 %v2079_v12, %v2079_v12  ;;  %1433 = vmatpush.msra.mxu1 %v1331_v17  ;;  %1362 = vmatpush.msra.mxu2 %v1285_v22  ;;  %v2102_v24 = vmul.f32 0.70710677, %v2058_v1 }
 0x518   :  { %v1062_v0 = vsel %vm2006_vm9, %v1061_v33, %v1057_v27  ;;  %v1097_v15 = vsel %vm2072_vm15, %v2002_v6, %v1093_v4  ;;  %v1314_v6 = vld [vmem:[#allocation9 + $0x100] sm:$0xff]  ;;  %v972_v33 = vmul.f32 %v2040_v25, %v971_v16  ;;  %v1228_v21 = vmul.f32 2.1237322e-06, %v2095_v44  ;;  %1385 = vmatpush.msra.mxu3 %v1301_v38 }
 0x519   :  { %v1063_v23 = vmul.f32 %v1062_v0, %v1978_v37  ;;  %v1102_v30 = vsel %vm2022_vm12, %v1101_v13, %v1097_v15  ;;  %v1330_v37 = vld [vmem:[#allocation9 + $0x180] sm:$0xff]  ;;  %1411 = vmatpush.msra.mxu0 %v1314_v6  ;;  %vm979_vm3 = vcmp.eq.f32.partialorder %v978_v31, 8.507059e+37  ;;  %v981_v26 = vor.u32 1.1754944e-38, %v980_v8  ;;  %1363 = vmatpush.msra.mxu2 %v1284_v58 }
 0x51a   :  { %v1103_v32 = vmul.f32 %v1102_v30, %v1999_v53  ;;  %v973_v18 = vadd.f32 %v2040_v25, %v972_v33  ;;  %v1565_v62 = vpop.eup %1564  ;;  %1434 = vmatpush.msra.mxu1 %v1330_v37  ;;  %v1199_v2 = vmul.f32 3.8918573e-05, %v2028_v50  ;;  %v2111_v5 = vmin.f32 %v1106_v48, 16.0  ;;  %1386 = vmatpush.msra.mxu3 %v1300_v49  ;;  %v1298_v27 = vld [vmem:[#allocation9 + $0x80] sm:$0xff] }
 0x51b   :  { %v1511_v45 = vclamps-f32 %v1063_v23, 1.0  ;;  %v1010_v13 = vmul.f32 %v1565_v62, %v2054_v63  ;;  %v1190_v29 = vmul.f32 %v1189_v47, %v2028_v50  ;;  %v1229_v20 = vadd.f32 0.00028619796, %v1228_v21  ;;  %1364 = vmatpush.msra.mxu2 %v1283_v57 }
 0x51c   :  { %v1512_v53 = vclamps-f32 %v1103_v32, 1.0  ;;  %v977_v4 = vsel %vm976_vm2, %v2040_v25, %v973_v18  ;;  %v1146_v25 = vmul.f32 %v2102_v24, %v2102_v24  ;;  %1387 = vmatpush.msra.mxu3 %v1299_v34  ;;  %vm1015_vm4 = vweird.f32 %v1565_v62 }
 0x51d   :  { %v1268_v59 = vadd.f32 1.0, %v1511_v45  ;;  %v982_v60 = vsel %vm979_vm3, %v981_v26, %v977_v4  ;;  %v1011_v43 = vsub.f32 1.0, %v1010_v13  ;;  %v1018_v36 = vand.u32 2147483647, %v2054_v63  ;;  %1365 = vmatpush.msra.mxu2 %v1282_v39 }
 0x51e   :  { %v1269_v3 = vadd.f32 1.0, %v1512_v53  ;;  %v983_v11 = vmul.f32 %v982_v60, %v2052_v54  ;;  %v1200_v0 = vadd.f32 0.001143296, %v1199_v2  ;;  %v1108_v17 = vmul.f32 2.1237322e-06, %v2111_v5  ;;  %1388 = vmatpush.msra.mxu3 %v1298_v27 }
 0x51f   :  { %v1276_v7 = vmul.f32 %v1268_v59, %v1973_v42  ;;  %v1020_v42 = vand.u32 2147483648, %v2054_v63  ;;  %v1012_v16 = vmul.f32 %v1565_v62, %v1011_v43  ;;  %vm1014_vm5 = vweird.f32 %v2054_v63 }
 0x520   :  { %v1277_v9 = vmul.f32 %v1269_v3, %v1981_v55  ;;  %v1509_v15 = vclamps-f32 %v983_v11, 1.0  ;;  %v1239_v55 = vmul.f32 3.8918573e-05, %v2095_v44  ;;  %v1191_v54 = vadd.f32 0.0036580483, %v1190_v29  ;;  %vm1016_vm6 = vmor %vm1014_vm5, %vm1015_vm4 }
 0x521   :  { %1412 = vmatmul.f32.vlgmr.msra.gmra.mxu0 %v1276_v7  ;;  %v1230_v22 = vmul.f32 %v1229_v20, %v2095_v44  ;;  %v1201_v23 = vmul.f32 %v1200_v0, %v2028_v50  ;;  %v1013_v31 = vadd.f32 %v1565_v62, %v1012_v16  ;;  %v2126_v8 = vmin.f32 %v1146_v25, 16.0 }
 0x522   :  { %1435 = vmatmul.f32.vlgmr.msra.gmra.mxu1 %v1277_v9  ;;  %v1266_v30 = vadd.f32 1.0, %v1509_v15  ;;  %v1240_v38 = vadd.f32 0.001143296, %v1239_v55  ;;  %v998_v6 = vmul.f32 %v997_v46, %v1918_v40  ;;  %vm1019_vm7 = vcmp.eq.f32.partialorder %v1018_v36, 8.507059e+37 }
 0x523   :  { %v1021_v32 = vor.u32 1.1754944e-38, %v1020_v42  ;;  %v1202_v33 = vadd.f32 0.014752088, %v1201_v23  ;;  %v1017_v63 = vsel %vm1016_vm6, %v1565_v62, %v1013_v31  ;;  %v1109_v58 = vadd.f32 0.00028619796, %v1108_v17 }
 0x524   :  { %v1274_v37 = vmul.f32 %v1266_v30, %v1984_v56  ;;  %v1241_v45 = vmul.f32 %v1240_v38, %v2095_v44  ;;  %v1192_v48 = vmul.f32 %v1191_v54, %v2028_v50  ;;  %v1231_v49 = vadd.f32 0.0036580483, %v1230_v22 }
 0x525   :  { %v1022_v47 = vsel %vm1019_vm7, %v1021_v32, %v1017_v63  ;;  %v1148_v18 = vmul.f32 2.1237322e-06, %v2126_v8  ;;  %v1203_v40 = vmul.f32 %v1202_v33, %v2028_v50  ;;  %v1119_v21 = vmul.f32 3.8918573e-05, %v2111_v5 }
 0x526   :  { %v1023_v53 = vmul.f32 %v1022_v47, %v998_v6  ;;  %1366 = vmatmul.f32.vlgmr.msra.gmra.mxu2 %v1274_v37  ;;  %v1242_v46 = vadd.f32 0.014752088, %v1241_v45  ;;  %v1110_v56 = vmul.f32 %v1109_v58, %v2111_v5  ;;  %v931_v26 = vmul.f32 0.5, %v1908_v35 }
 0x527   :  { %v1204_v62 = vadd.f32 0.112945676, %v1203_v40  ;;  %v1193_v34 = vadd.f32 0.05243302, %v1192_v48  ;;  %v1232_v2 = vmul.f32 %v1231_v49, %v2095_v44  ;;  %v1120_v3 = vadd.f32 0.001143296, %v1119_v21 }
 0x528   :  { %v1510_v57 = vclamps-f32 %v1023_v53, 1.0  ;;  %v1243_v59 = vmul.f32 %v1242_v46, %v2095_v44  ;;  %v1149_v13 = vadd.f32 0.00028619796, %v1148_v18  ;;  %v1159_v29 = vmul.f32 3.8918573e-05, %v2126_v8 }
 0x529   :  { %v1205_v39 = vmul.f32 %v1204_v62, %v2028_v50  ;;  %v1121_v60 = vmul.f32 %v1120_v3, %v2111_v5  ;;  %v1111_v27 = vadd.f32 0.0036580483, %v1110_v56  ;;  %v1194_v35 = vmul.f32 %v1193_v34, %v2028_v50 }
 0x52a   :  { %v1267_v4 = vadd.f32 1.0, %v1510_v57  ;;  %v1244_v7 = vadd.f32 0.112945676, %v1243_v59  ;;  %v1160_v25 = vadd.f32 0.001143296, %v1159_v29  ;;  %v1150_v42 = vmul.f32 %v1149_v13, %v2126_v8 }
 0x52b   :  { %v1206_v9 = vadd.f32 0.4994258, %v1205_v39  ;;  %v1122_v43 = vadd.f32 0.014752088, %v1121_v60  ;;  %v1233_v36 = vadd.f32 0.05243302, %v1232_v2  ;;  %v1112_v55 = vmul.f32 %v1111_v27, %v2111_v5 }
 0x52c   :  { %v1275_v20 = vmul.f32 %v1267_v4, %v931_v26  ;;  %v1245_v11 = vmul.f32 %v1244_v7, %v2095_v44  ;;  %v1161_v17 = vmul.f32 %v1160_v25, %v2126_v8  ;;  %v1195_v31 = vadd.f32 0.18741608, %v1194_v35 }
 0x52d   :  { %v1207_v0 = vmul.f32 %v1206_v9, %v2028_v50  ;;  %v1123_v16 = vmul.f32 %v1122_v43, %v2111_v5  ;;  %v1234_v38 = vmul.f32 %v1233_v36, %v2095_v44  ;;  %v1151_v6 = vadd.f32 0.0036580483, %v1150_v42 }
 0x52e   :  { %1389 = vmatmul.f32.vlgmr.msra.gmra.mxu3 %v1275_v20  ;;  %v1246_v15 = vadd.f32 0.4994258, %v1245_v11  ;;  %v1162_v30 = vadd.f32 0.014752088, %v1161_v17  ;;  %v1113_v37 = vadd.f32 0.05243302, %v1112_v55  ;;  %v1196_v58 = vmul.f32 %v1195_v31, %v2028_v50 }
 0x52f   :  { %v1208_v54 = vadd.f32 1.0, %v1207_v0  ;;  %v1124_v23 = vadd.f32 0.112945676, %v1123_v16  ;;  %v1235_v45 = vadd.f32 0.18741608, %v1234_v38  ;;  %v1152_v47 = vmul.f32 %v1151_v6, %v2126_v8 }
 0x530   :  { %v1247_v22 = vmul.f32 %v1246_v15, %v2095_v44  ;;  %v1163_v63 = vmul.f32 %v1162_v30, %v2126_v8  ;;  %v1114_v18 = vmul.f32 %v1113_v37, %v2111_v5  ;;  %v1197_v57 = vadd.f32 1.1283791, %v1196_v58 }
 0x531   :  { %1566 = vrcp.f32 %v1208_v54  ;;  %v1125_v33 = vmul.f32 %v1124_v23, %v2111_v5  ;;  %v1236_v56 = vmul.f32 %v1235_v45, %v2095_v44  ;;  %v1153_v62 = vadd.f32 0.05243302, %v1152_v47 }
 0x532   :  { %v1248_v32 = vadd.f32 1.0, %v1247_v22  ;;  %v1164_v49 = vadd.f32 0.112945676, %v1163_v63  ;;  %v1115_v2 = vadd.f32 0.18741608, %v1114_v18  ;;  %v1220_v3 = vand.u32 2147483648, %v1208_v54 }
 0x533   :  { %v1126_v48 = vadd.f32 0.4994258, %v1125_v33  ;;  %v1218_v39 = vand.u32 2147483647, %v1208_v54  ;;  %v1198_v60 = vmul.f32 %v1197_v57, %v1992_v28  ;;  %v1237_v29 = vadd.f32 1.1283791, %v1236_v56 }
 0x534   :  { %1568 = vrcp.f32 %v1248_v32  ;;  %v1165_v21 = vmul.f32 %v1164_v49, %v2126_v8  ;;  %v1154_v44 = vmul.f32 %v1153_v62, %v2126_v8  ;;  %vm1214_vm9 = vweird.f32 %v1208_v54 }
 0x535   :  { %v1127_v40 = vmul.f32 %v1126_v48, %v2111_v5  ;;  %v1260_v9 = vand.u32 2147483648, %v1248_v32  ;;  %v1221_v35 = vor.u32 1.1754944e-38, %v1220_v3  ;;  %v1258_v25 = vand.u32 2147483647, %v1248_v32 }
 0x536   :  { %v1166_v34 = vadd.f32 0.4994258, %v1165_v21  ;;  %v1116_v36 = vmul.f32 %v1115_v2, %v2111_v5  ;;  %vm1219_vm12 = vcmp.eq.f32.partialorder %v1218_v39, 8.507059e+37  ;;  %v1155_v0 = vadd.f32 0.18741608, %v1154_v44 }
 0x537   :  { %v1567_v53 = vpop.eup %1566  ;;  %v2160_v59 = vadd.f32 1.0, %v1127_v40  ;;  %vm1254_vm13 = vweird.f32 %v1248_v32  ;;  %v1261_v55 = vor.u32 1.1754944e-38, %v1260_v9  ;;  %v1238_v22 = vmul.f32 %v1237_v29, %v2038_v61 }
 0x538   :  { %v1210_v46 = vmul.f32 %v1567_v53, %v1208_v54  ;;  %vm1215_vm8 = vweird.f32 %v1567_v53  ;;  %v1167_v7 = vmul.f32 %v1166_v34, %v2126_v8  ;;  %vm1259_vm15 = vcmp.eq.f32.partialorder %v1258_v25, 8.507059e+37 }
 0x539   :  { %1570 = vrcp.f32 %v2160_v59  ;;  %vm1216_vm10 = vmor %vm1214_vm9, %vm1215_vm8  ;;  %v1117_v30 = vadd.f32 1.1283791, %v1116_v36  ;;  %v936_v6 = vmul.f32 0.5, %v1970_v41  ;;  %v1156_v33 = vmul.f32 %v1155_v0, %v2126_v8 }
 0x53a   :  { %v1569_v50 = vpop.eup %1568  ;;  %v1211_v26 = vsub.f32 1.0, %v1210_v46  ;;  %v2166_v11 = vadd.f32 1.0, %v1167_v7  ;;  %v1138_v47 = vand.u32 2147483647, %v2160_v59  ;;  %v937_v61 = vmul.f32 0.5, %v2017_v14 }
 0x53b   :  { %v1250_v4 = vmul.f32 %v1569_v50, %v1248_v32  ;;  %vm1255_vm11 = vweird.f32 %v1569_v50  ;;  %v1140_v32 = vand.u32 2147483648, %v2160_v59  ;;  %vm1134_vm1 = vweird.f32 %v2160_v59 }
 0x53c   :  { %v1212_v13 = vmul.f32 %v1567_v53, %v1211_v26  ;;  %1572 = vrcp.f32 %v2166_v11  ;;  %vm1256_vm14 = vmor %vm1254_vm13, %vm1255_vm11  ;;  %v1157_v8 = vadd.f32 1.1283791, %v1156_v33  ;;  %vm1139_vm3 = vcmp.eq.f32.partialorder %v1138_v47, 8.507059e+37 }
 0x53d   :  { %v1251_v20 = vsub.f32 1.0, %v1250_v4  ;;  %v1141_v46 = vor.u32 1.1754944e-38, %v1140_v32  ;;  %v1178_v56 = vand.u32 2147483647, %v2166_v11  ;;  %v1180_v14 = vand.u32 2147483648, %v2166_v11 }
 0x53e   :  { %v1213_v27 = vadd.f32 %v1567_v53, %v1212_v13  ;;  %vm1174_vm5 = vweird.f32 %v2166_v11  ;;  %v1158_v3 = vmul.f32 %v1157_v8, %v2102_v24  ;;  %v934_v13 = vmul.f32 0.5, %v2032_v51  ;;  %v1535_v8 = vld [vmem:[%s2220_s13] ss:$0 sm:$0xff] }
 0x53f   :  { %v1252_v43 = vmul.f32 %v1569_v50, %v1251_v20  ;;  %v1571_v28 = vpop.eup %1570  ;;  %v1181_v2 = vor.u32 1.1754944e-38, %v1180_v14  ;;  %vm1179_vm7 = vcmp.eq.f32.partialorder %v1178_v56, 8.507059e+37  ;;  %v935_v20 = vmul.f32 0.5, %v2058_v1 }
 0x540   :  { %v1217_v42 = vsel %vm1216_vm10, %v1567_v53, %v1213_v27  ;;  %v1130_v54 = vmul.f32 %v1571_v28, %v2160_v59  ;;  %vm1135_vm0 = vweird.f32 %v1571_v28  ;;  %v1118_v53 = vmul.f32 %v1117_v30, %v2079_v12 }
 0x541   :  { %v1222_v15 = vsel %vm1219_vm12, %v1221_v35, %v1217_v42  ;;  %v1253_v16 = vadd.f32 %v1569_v50, %v1252_v43  ;;  %vm1136_vm2 = vmor %vm1134_vm1, %vm1135_vm0 }
 0x542   :  { %v1223_v17 = vmul.f32 %v1222_v15, %v1198_v60  ;;  %v1131_v38 = vsub.f32 1.0, %v1130_v54  ;;  %v1573_v63 = vpop.eup %1572 }
 0x543   :  { %v1257_v23 = vsel %vm1256_vm14, %v1569_v50, %v1253_v16  ;;  %v1170_v49 = vmul.f32 %v1573_v63, %v2166_v11  ;;  %vm1175_vm4 = vweird.f32 %v1573_v63  ;;  %v1533_v11 = vld [vmem:[%s2218_s11] ss:$0 sm:$0xff] }
 0x544   :  { %v1515_v5 = vclamps-f32 %v1223_v17, 1.0  ;;  %v1262_v31 = vsel %vm1259_vm15, %v1261_v55, %v1257_v23  ;;  %v1132_v45 = vmul.f32 %v1571_v28, %v1131_v38  ;;  %vm1176_vm6 = vmor %vm1174_vm5, %vm1175_vm4 }
 0x545   :  { %v1263_v37 = vmul.f32 %v1262_v31, %v1238_v22  ;;  %v1171_v21 = vsub.f32 1.0, %v1170_v49 }
 0x546   :  { %v1272_v58 = vadd.f32 1.0, %v1515_v5  ;;  %v1133_v41 = vadd.f32 %v1571_v28, %v1132_v45 }
 0x547   :  { %v1516_v48 = vclamps-f32 %v1263_v37, 1.0  ;;  %v1172_v26 = vmul.f32 %v1573_v63, %v1171_v21 }
 0x548   :  { %v1280_v18 = vmul.f32 %v1272_v58, %v936_v6  ;;  %v1137_v57 = vsel %vm1136_vm2, %v1571_v28, %v1133_v41 }
 0x549   :  { %v1273_v40 = vadd.f32 1.0, %v1516_v48  ;;  %v1142_v50 = vsel %vm1139_vm3, %v1141_v46, %v1137_v57  ;;  %v1173_v34 = vadd.f32 %v1573_v63, %v1172_v26 }
 0x54a   :  { %1415 = vmatmul.f32.gmra.mxu0 %v1280_v18  ;;  %v1143_v12 = vmul.f32 %v1142_v50, %v1118_v53  ;;  %v1534_v18 = vld [vmem:[%s2219_s12] ss:$0 sm:$0xff] }
 0x54b   :  { %v1281_v62 = vmul.f32 %v1273_v40, %v937_v61  ;;  %v1177_v4 = vsel %vm1176_vm6, %v1573_v63, %v1173_v34 }
 0x54c   :  { %v1513_v59 = vclamps-f32 %v1143_v12, 1.0  ;;  %v1182_v7 = vsel %vm1179_vm7, %v1181_v2, %v1177_v4 }
 0x54d   :  { %1438 = vmatmul.f32.gmra.mxu1 %v1281_v62  ;;  %v1183_v60 = vmul.f32 %v1182_v7, %v1158_v3 }
 0x54e   :  { %v1270_v39 = vadd.f32 1.0, %v1513_v59 }
 0x54f   :  { %v1514_v44 = vclamps-f32 %v1183_v60, 1.0 }
 0x550   :  { %v1278_v29 = vmul.f32 %v1270_v39, %v934_v13 }
 0x551   :  { %v1271_v27 = vadd.f32 1.0, %v1514_v44 }
 0x552   :  { %1369 = vmatmul.f32.gmra.mxu2 %v1278_v29 }
 0x553   :  { %v1279_v9 = vmul.f32 %v1271_v27, %v935_v20 }
 0x555   :  { %1392 = vmatmul.f32.gmra.mxu3 %v1279_v9 }
 0x59e   :  { %v1413_v51 = vpop.f32.mrf.mxu0 }
 0x59f   :  { %v1436_v42 = vpop.f32.mrf.mxu1 }
 0x5a9   :  { %v1367_v24 = vpop.f32.mrf.mxu2 }
 0x5aa   :  { %v1368_v35 = vadd.f32 %v1533_v11, %v1367_v24 }
 0x5b1   :  { %v1390_v43 = vpop.f32.mrf.mxu3 }
 0x5b2   :  { %v1391_v25 = vadd.f32 %v1390_v43, %v1368_v35 }
 0x5b4   :  { %v1414_v36 = vadd.f32 %v1413_v51, %v1391_v25 }
 0x5b6   :  { %v1437_v28 = vadd.f32 %v1436_v42, %v1414_v36 }
 0x5b8   :  { %v1442_v0 = vadd.f32 %v1437_v28, %v1862_v10 }
 0x5ba   :  { %1446 = vadd.xlane.f32.xlu0 %v1442_v0 }
 0x5c7   :  { %v1416_v55 = vpop.f32.mrf.mxu0 }
 0x5ca   :  { %v1439_v22 = vpop.f32.mrf.mxu1 }
 0x5d5   :  { %v1370_v15 = vpop.f32.mrf.mxu2 }
 0x5d6   :  { %v1371_v1 = vadd.f32 %v1533_v11, %v1370_v15 }
 0x5d8   :  { %v1393_v16 = vpop.f32.mrf.mxu3 }
 0x5d9   :  { %v1394_v17 = vadd.f32 %v1393_v16, %v1371_v1 }
 0x5db   :  { %v1417_v54 = vadd.f32 %v1416_v55, %v1394_v17 }
 0x5dd   :  { %v1440_v23 = vadd.f32 %v1439_v22, %v1417_v54 }
 0x5df   :  { %v1443_v30 = vadd.f32 %v1440_v23, %v1869_v19 }
 0x5e1   :  { %1448 = vadd.xlane.f32.xlu1 %v1443_v30 }
 0x62d   :  { %v1447_v5 = vpop.xlane.xlu0 %1446 }
 0x62e   :  { %v1450_v31 = vmul.f32 %v1447_v5, %v1841_v52 }
 0x630   :  { %v1452_v38 = vsub.f32 %v1442_v0, %v1450_v31 }
 0x632   :  { %v1454_v6 = vmul.f32 %v1452_v38, %v1452_v38 }
 0x634   :  { %1456 = vadd.xlane.f32.xlu2 %v1454_v6 }
 0x654   :  { %v1449_v33 = vpop.xlane.xlu1 %1448 }
 0x655   :  { %v1451_v10 = vmul.f32 %v1449_v33, %v1841_v52 }
 0x657   :  { %v1453_v37 = vsub.f32 %v1443_v30, %v1451_v10 }
 0x659   :  { %v1455_v32 = vmul.f32 %v1453_v37, %v1453_v37 }
 0x65b   :  { %1458 = vadd.xlane.f32.xlu0 %v1455_v32 }
 0x6a7   :  { %v1457_v63 = vpop.xlane.xlu2 %1456 }
 0x6a8   :  { %v1460_v58 = vmul.f32 %v1457_v63, %v1841_v52 }
 0x6aa   :  { %v1462_v45 = vadd.f32 1e-12, %v1460_v58 }
 0x6ac   :  { %1574 = vrsqrt.f32 %v1462_v45  ;;  %vm1470_vm9 = vweird.f32 %v1462_v45 }
 0x6b2   :  { %v1575_v47 = vpop.eup %1574 }
 0x6b3   :  { %v1465_v19 = vmul.f32 %v1575_v47, %v1462_v45  ;;  %vm1471_vm8 = vweird.f32 %v1575_v47 }
 0x6b4   :  { %vm1472_vm10 = vmor %vm1470_vm9, %vm1471_vm8 }
 0x6b5   :  { %v1466_v61 = vmul.f32 %v1575_v47, %v1465_v19 }
 0x6b7   :  { %v1467_v48 = vmul.f32 0.5, %v1466_v61 }
 0x6b9   :  { %v1468_v49 = vsub.f32 1.5, %v1467_v48 }
 0x6bb   :  { %v1469_v53 = vmul.f32 %v1575_v47, %v1468_v49 }
 0x6bd   :  { %v1473_v41 = vsel %vm1472_vm10, %v1575_v47, %v1469_v53 }
 0x6be   :  { %v1484_v40 = vmul.f32 %v1473_v41, %v1452_v38 }
 0x6c0   :  { %v1489_v46 = vmul.f32 %v1534_v18, %v1484_v40 }
 0x6c2   :  { %v1494_v21 = vadd.f32 %v1535_v8, %v1489_v46 }
 0x6c4   :  { %1496 = vst [vmem:[%s2221_s14] sm:$0xff] %v1494_v21 }
 0x6ce   :  { %v1459_v57 = vpop.xlane.xlu0 %1458 }
 0x6cf   :  { %v1461_v56 = vmul.f32 %v1459_v57, %v1841_v52 }
 0x6d1   :  { %v1463_v14 = vadd.f32 1e-12, %v1461_v56 }
 0x6d3   :  { %1576 = vrsqrt.f32 %v1463_v14  ;;  %vm1480_vm12 = vweird.f32 %v1463_v14 }
 0x6d9   :  { %v1577_v62 = vpop.eup %1576 }
 0x6da   :  { %v1475_v50 = vmul.f32 %v1577_v62, %v1463_v14  ;;  %vm1481_vm11 = vweird.f32 %v1577_v62 }
 0x6db   :  { %vm1482_vm13 = vmor %vm1480_vm12, %vm1481_vm11 }
 0x6dc   :  { %v1476_v26 = vmul.f32 %v1577_v62, %v1475_v50 }
 0x6de   :  { %v1477_v12 = vmul.f32 0.5, %v1476_v26 }
 0x6e0   :  { %v1478_v34 = vsub.f32 1.5, %v1477_v12 }
 0x6e2   :  { %v1479_v59 = vmul.f32 %v1577_v62, %v1478_v34 }
 0x6e4   :  { %v1483_v2 = vsel %vm1482_vm13, %v1577_v62, %v1479_v59 }
 0x6e5   :  { %v1485_v3 = vmul.f32 %v1483_v2, %v1453_v37 }
 0x6e7   :  { %v1490_v4 = vmul.f32 %v1534_v18, %v1485_v3 }
 0x6e9   :  { %v1495_v13 = vadd.f32 %v1535_v8, %v1490_v4 }
 0x6eb   :  { %1497 = vst [vmem:[%s2221_s14 + $0x8] sm:$0xff] %v1495_v13 }
 0x6ec   :  { %1502 = vsyncpa [#allocation5], 1 }
 0x6ed   :  { %1503 = vsyncpa [#allocation7], 1 }
 0x6ee   :  { %1504 = vsyncpa [#allocation10], 1 }

</bundles_post_ra>
